<compile_context>
chip_gen: v6e
topology: v6e:2x2x1
jax: 0.10.0
libtpu: 0.0.40
codegen_flags: <defaults>
</compile_context>

<pallas_src>
import jax
import jax.numpy as jnp
from jax import lax
from jax.experimental import pallas as pl
from jax.experimental.pallas import tpu as pltpu


def _signed_sqrt(x):
    return jnp.sqrt(jnp.maximum(x, 0.0)) - jnp.sqrt(jnp.maximum(-x, 0.0))


# ---------------------------------------------------------------------------
# Fused forward kernel
# ---------------------------------------------------------------------------
def _make_fused_kernel(B, T, H, Gq, Gi, C, S, O, J):
    def kernel(x_ref, img_ref, pool_ref,
               wih_ref, whh_ref, lstm_b_ref,
               qatt_w1_ref, qatt_b1_ref, qatt_w2_ref, qatt_b2_ref,
               qproj_w_ref, qproj_b_ref,
               c1i_w_ref, c1i_b_ref,
               iatt_w1_ref, iatt_b1_ref, iatt_w2_ref, iatt_b2_ref,
               iproj_w_ref, iproj_b_ref,
               pred_w_ref, pred_b_ref,
               out_ref,
               lstm_rows_ref, ifeat_ref):
        f32 = jnp.float32

        # ---------------- LSTM over the question ----------------
        # Input projection hoisted out of the recurrence (one big matmul).
        gx = jnp.dot(x_ref[...], wih_ref[...],
                     preferred_element_type=f32) + lstm_b_ref[...]      # (T*B, 4H)
        whh = whh_ref[...]
        h = jnp.zeros((B, H), f32)
        c = jnp.zeros((B, H), f32)
        hs = []
        for t in range(T):                       # T is small & static -> fully unrolled
            g = gx[t * B:(t + 1) * B, :] + jnp.dot(h, whh, preferred_element_type=f32)
            i_g = jax.nn.sigmoid(g[:, 0:H])      # PyTorch gate order (i, f, g, o)
            f_g = jax.nn.sigmoid(g[:, H:2 * H])
            g_g = jnp.tanh(g[:, 2 * H:3 * H])
            o_g = jax.nn.sigmoid(g[:, 3 * H:4 * H])
            c = f_g * c + i_g * g_g
            h = o_g * jnp.tanh(c)
            hs.append(h)
            lstm_rows_ref[t * B:(t + 1) * B, :] = h        # time-major rows (t*B + b)
        # Dropout_L: eval-mode identity.

        # ---------------- Question attention (1x1 conv -> relu -> 1x1 conv) ----------------
        lstm_rows = lstm_rows_ref[...]                                  # (T*B, H)
        qh = jnp.maximum(
            jnp.dot(lstm_rows, qatt_w1_ref[...], preferred_element_type=f32)
            + qatt_b1_ref[...], 0.0)
        qlog = (jnp.dot(qh, qatt_w2_ref[...], preferred_element_type=f32)
                + qatt_b2_ref[...])                                     # (T*B, Gq)

        # softmax over the T time-steps for each (batch, glimpse) -- all in-register
        lts = [qlog[t * B:(t + 1) * B, :] for t in range(T)]            # each (B, Gq)
        mx = lts[0]
        for t in range(1, T):
            mx = jnp.maximum(mx, lts[t])
        es = [jnp.exp(l - mx) for l in lts]
        den = es[0]
        for t in range(1, T):
            den = den + es[t]
        inv = pl.reciprocal(den, approx=True)
        att_q = [e * inv for e in es]                                   # each (B, Gq)

        # Glimpse-weighted LSTM states folded straight into the MERGED q projection
        # (Linear1/2/3_q_proj concatenated along the output dim).
        qproj_w = qproj_w_ref[...]
        q_all = None
        for gl in range(Gq):
            feat = att_q[0][:, gl:gl + 1] * hs[0]
            for t in range(1, T):
                feat = feat + att_q[t][:, gl:gl + 1] * hs[t]            # (B, H)
            contrib = jnp.dot(feat, qproj_w[gl * H:(gl + 1) * H, :],
                              preferred_element_type=f32)
            q_all = contrib if q_all is None else q_all + contrib
        q_all = q_all + qproj_b_ref[...]                                # (B, 3J)
        qp1 = q_all[:, 0:J]              # Linear1_q_proj (image-attention branch)
        q2 = q_all[:, J:2 * J]           # Linear2_q_proj
        q3 = q_all[:, 2 * J:3 * J]       # Linear3_q_proj

        # ---------------- Image attention with MFB ----------------
        img_rows = img_ref[...]                                          # (B*S, C)
        ic = (jnp.dot(img_rows, c1i_w_ref[...], preferred_element_type=f32)
              + c1i_b_ref[...])                                          # (B*S, J)
        pool = pool_ref[...]                                             # (J, O) sum over factor
        iw1 = iatt_w1_ref[...]
        ib1 = iatt_b1_ref[...]
        iw2 = iatt_w2_ref[...]
        ib2 = iatt_b2_ref[...]

        for b in range(B):
            ic_b = ic[b * S:(b + 1) * S, :]                              # (S, J)
            prod = ic_b * qp1[b:b + 1, :]                                # MFB eltwise (Dropout_M id.)
            pooled = jnp.dot(prod, pool, preferred_element_type=f32)     # (S, O)
            sq = _signed_sqrt(pooled)
            ss = jnp.sum(jnp.sum(sq * sq, axis=1, keepdims=True),
                         axis=0, keepdims=True)                          # (1, 1)
            nrm = sq * lax.rsqrt(jnp.maximum(ss, 1e-24))                 # global L2 norm / example
            ih = jnp.maximum(jnp.dot(nrm, iw1, preferred_element_type=f32) + ib1, 0.0)
            ilog = jnp.dot(ih, iw2, preferred_element_type=f32) + ib2    # (S, Gi)
            im = jnp.max(ilog, axis=0, keepdims=True)
            ie = jnp.exp(ilog - im)
            iatt = ie * pl.reciprocal(jnp.sum(ie, axis=0, keepdims=True), approx=True)
            img_b = img_rows[b * S:(b + 1) * S, :]                       # (S, C)
            for gl in range(Gi):
                feat = jnp.sum(iatt[:, gl:gl + 1] * img_b, axis=0, keepdims=True)  # (1, C)
                ifeat_ref[b, gl:gl + 1, :] = feat

        # Merged i projection (Linear2/3_i_proj concatenated), split over glimpses so the
        # attended features never need a re-layout / concat.
        ifeat = ifeat_ref[...]                                           # (B, Gi, C)
        iproj_w = iproj_w_ref[...]
        i_all = None
        for gl in range(Gi):
            contrib = jnp.dot(ifeat[:, gl, :], iproj_w[gl * C:(gl + 1) * C, :],
                              preferred_element_type=f32)
            i_all = contrib if i_all is None else i_all + contrib
        i_all = i_all + iproj_b_ref[...]                                 # (B, 2J)
        i2 = i_all[:, 0:J]
        i3 = i_all[:, J:2 * J]

        # ---------------- Fine-grained MFH fusion (order 2 & 3) ----------------
        o2 = q2 * i2                                                     # Dropout_M identity
        o3 = q3 * i3 * o2
        p2 = jnp.dot(o2, pool, preferred_element_type=f32)               # (B, O)
        p3 = jnp.dot(o3, pool, preferred_element_type=f32)

        def _pool_norm(p):
            s = _signed_sqrt(p)
            n2 = jnp.sum(s * s, axis=1, keepdims=True)
            return s * lax.rsqrt(jnp.maximum(n2, 1e-24))                 # == F.normalize(eps=1e-12)

        o2n = _pool_norm(p2)
        o3n = _pool_norm(p3)

        # ---------------- Prediction head (concat folded into split matmul) ----------------
        pred_w = pred_w_ref[...]
        logits = (jnp.dot(o2n, pred_w[0:O, :], preferred_element_type=f32)
                  + jnp.dot(o3n, pred_w[O:2 * O, :], preferred_element_type=f32)
                  + pred_b_ref[...])
        prob = jax.nn.sigmoid(logits)
        m = jnp.max(prob, axis=1, keepdims=True)
        lse = m + jnp.log(jnp.sum(jnp.exp(prob - m), axis=1, keepdims=True))
        out_ref[...] = prob - lse                                        # log_softmax(sigmoid(.))

    return kernel


# ---------------------------------------------------------------------------
# Parameter init (deterministic, synthetic)
# ---------------------------------------------------------------------------
def init_params(key, cfg):
    H = cfg['LSTM_UNIT_NUM']
    Gq = cfg['NUM_QUESTION_GLIMPSE']
    Gi = cfg['NUM_IMG_GLIMPSE']
    C = cfg['IMAGE_CHANNEL']
    O = cfg['MFB_OUT_DIM']
    F_ = cfg['MFB_FACTOR_NUM']
    J = O * F_
    NOUT = cfg['NUM_OUTPUT_UNITS']
    IN = 200

    keys = iter(jax.random.split(key, 32))

    def nrm(shape, scale=0.05):
        return (scale * jax.random.normal(next(keys), shape)).astype(jnp.float32)

    return {
        # LSTM (PyTorch gate order i, f, g, o); b_ih + b_hh folded into one bias.
        'lstm_wih': nrm((IN, 4 * H)),
        'lstm_whh': nrm((H, 4 * H)),
        'lstm_b':   nrm((1, 4 * H)),
        # Question attention 1x1 convs
        'qatt_w1': nrm((H, 512)),  'qatt_b1': nrm((1, 512)),
        'qatt_w2': nrm((512, Gq)), 'qatt_b2': nrm((1, Gq)),
        # Image attention 1x1 convs
        'iatt_w1': nrm((O, 512)),  'iatt_b1': nrm((1, 512)),
        'iatt_w2': nrm((512, Gi)), 'iatt_b2': nrm((1, Gi)),
        # Linear1/2/3_q_proj merged along the output dim: columns [0:J | J:2J | 2J:3J]
        'qproj_w': nrm((Gq * H, 3 * J)), 'qproj_b': nrm((1, 3 * J)),
        # Conv1_i_proj (1x1)
        'c1i_w': nrm((C, J)), 'c1i_b': nrm((1, J)),
        # Linear2/3_i_proj merged: columns [0:J | J:2J]
        'iproj_w': nrm((Gi * C, 2 * J)), 'iproj_b': nrm((1, 2 * J)),
        # predictor
        'pred_w': nrm((2 * O, NOUT)), 'pred_b': nrm((1, NOUT)),
    }


# ---------------------------------------------------------------------------
# Forward pass: one fused pallas_call
# ---------------------------------------------------------------------------
def mfh_coatt_med_forward(params, img_feature, q_matrix, cfg):
    B, T, IN = q_matrix.shape
    H = cfg['LSTM_UNIT_NUM']
    Gq = cfg['NUM_QUESTION_GLIMPSE']
    Gi = cfg['NUM_IMG_GLIMPSE']
    C = cfg['IMAGE_CHANNEL']
    S = cfg['IMG_FEAT_SIZE']
    F_ = cfg['MFB_FACTOR_NUM']
    O = cfg['MFB_OUT_DIM']
    J = O * F_
    NOUT = cfg['NUM_OUTPUT_UNITS']
    f32 = jnp.float32

    # Layout plumbing on the raw inputs only (mirrors torch permute/view):
    #   time-major question rows (t*B + b) and position-major image rows (b*S + s).
    x_rows = jnp.transpose(q_matrix, (1, 0, 2)).reshape(T * B, IN)
    img_rows = jnp.transpose(img_feature, (0, 2, 1)).reshape(B * S, C)
    # Constant sum-pool-over-factor matrix: pool[j, o] = 1 iff j // F == o.
    pool = (jnp.arange(J)[:, None] // F_ == jnp.arange(O)[None, :]).astype(f32)

    kernel = _make_fused_kernel(B, T, H, Gq, Gi, C, S, O, J)
    vspec = pl.BlockSpec(memory_space=pltpu.MemorySpace.VMEM)   # whole array, single-buffered
    inputs = (x_rows, img_rows, pool,
              params['lstm_wih'], params['lstm_whh'], params['lstm_b'],
              params['qatt_w1'], params['qatt_b1'], params['qatt_w2'], params['qatt_b2'],
              params['qproj_w'], params['qproj_b'],
              params['c1i_w'], params['c1i_b'],
              params['iatt_w1'], params['iatt_b1'], params['iatt_w2'], params['iatt_b2'],
              params['iproj_w'], params['iproj_b'],
              params['pred_w'], params['pred_b'])

    return pl.pallas_call(
        kernel,
        out_shape=jax.ShapeDtypeStruct((B, NOUT), f32),
        in_specs=[vspec] * len(inputs),
        out_specs=vspec,
        scratch_shapes=[pltpu.VMEM((T * B, H), f32),      # stacked LSTM hidden states
                        pltpu.VMEM((B, Gi, C), f32)],     # attended image features
    )(*inputs)


# ---------------------------------------------------------------------------
# Demo
# ---------------------------------------------------------------------------
if __name__ == "__main__":
    cfg = dict(
        BATCH_SIZE=2,
        LSTM_UNIT_NUM=32,
        NUM_QUESTION_GLIMPSE=2,
        NUM_IMG_GLIMPSE=2,
        IMAGE_CHANNEL=64,
        IMG_FEAT_SIZE=16,
        MFB_FACTOR_NUM=2,
        MFB_OUT_DIM=64,
        NUM_OUTPUT_UNITS=32,
        LSTM_DROPOUT_RATIO=0.3,
        MFB_DROPOUT_RATIO=0.1,
    )
    B, T = cfg['BATCH_SIZE'], 8

    key = jax.random.PRNGKey(0)
    k_params, k_q, k_img = jax.random.split(key, 3)
    params = init_params(k_params, cfg)

    q_MED_Matrix = jax.random.normal(k_q, (B, T, 200), dtype=jnp.float32)
    # TODO(synk): ResNet-152 backbone not translated; pre-extracted image features fed directly.
    img_feature = jax.random.normal(
        k_img, (B, cfg['IMAGE_CHANNEL'], cfg['IMG_FEAT_SIZE']), dtype=jnp.float32)

    fwd = jax.jit(lambda p, img, q: mfh_coatt_med_forward(p, img, q, cfg))
    out = fwd(params, img_feature, q_MED_Matrix)
    out = jax.block_until_ready(out)

    assert out.shape == (B, cfg['NUM_OUTPUT_UNITS'])
    assert bool(jnp.all(jnp.isfinite(out)))
    print("KERNEL_OK")
</pallas_src>

<mosaic_0001>
module attributes {stable_mosaic.version = 11 : i64} {
  func.func @kernel(%arg0: memref<16x200xf32, #tpu.memory_space<vmem>>, %arg1: memref<32x64xf32, #tpu.memory_space<vmem>>, %arg2: memref<128x64xf32, #tpu.memory_space<vmem>>, %arg3: memref<200x128xf32, #tpu.memory_space<vmem>>, %arg4: memref<32x128xf32, #tpu.memory_space<vmem>>, %arg5: memref<1x128xf32, #tpu.memory_space<vmem>>, %arg6: memref<32x512xf32, #tpu.memory_space<vmem>>, %arg7: memref<1x512xf32, #tpu.memory_space<vmem>>, %arg8: memref<512x2xf32, #tpu.memory_space<vmem>>, %arg9: memref<1x2xf32, #tpu.memory_space<vmem>>, %arg10: memref<64x384xf32, #tpu.memory_space<vmem>>, %arg11: memref<1x384xf32, #tpu.memory_space<vmem>>, %arg12: memref<64x128xf32, #tpu.memory_space<vmem>>, %arg13: memref<1x128xf32, #tpu.memory_space<vmem>>, %arg14: memref<64x512xf32, #tpu.memory_space<vmem>>, %arg15: memref<1x512xf32, #tpu.memory_space<vmem>>, %arg16: memref<512x2xf32, #tpu.memory_space<vmem>>, %arg17: memref<1x2xf32, #tpu.memory_space<vmem>>, %arg18: memref<128x256xf32, #tpu.memory_space<vmem>>, %arg19: memref<1x256xf32, #tpu.memory_space<vmem>>, %arg20: memref<128x32xf32, #tpu.memory_space<vmem>>, %arg21: memref<1x32xf32, #tpu.memory_space<vmem>>, %arg22: memref<2x32xf32, #tpu.memory_space<vmem>>, %arg23: memref<16x32xf32, #tpu.memory_space<vmem>>, %arg24: memref<2x2x64xf32, #tpu.memory_space<vmem>>) attributes {dimension_semantics = [], scalar_prefetch = 0 : i64, scratch_operands = 2 : i64, tpu.core_type = #tpu.core_type<tc>} {
    %c0 = arith.constant 0 : index
    %c0_0 = arith.constant 0 : index
    %0 = vector.load %arg0[%c0, %c0_0] : memref<16x200xf32, #tpu.memory_space<vmem>>, vector<16x200xf32>
    %c0_1 = arith.constant 0 : index
    %c0_2 = arith.constant 0 : index
    %1 = vector.load %arg3[%c0_1, %c0_2] : memref<200x128xf32, #tpu.memory_space<vmem>>, vector<200x128xf32>
    %cst = arith.constant dense<0.000000e+00> : vector<16x128xf32>
    %2 = tpu.matmul %0, %1, %cst {dimension_numbers = #tpu.dot_dimension_numbers<[1], [0], [0], [1], [0, 0, 1, 1], [], []>} : vector<16x200xf32>, vector<200x128xf32>, vector<16x128xf32> -> vector<16x128xf32>
    %c0_3 = arith.constant 0 : index
    %c0_4 = arith.constant 0 : index
    %3 = vector.load %arg5[%c0_3, %c0_4] : memref<1x128xf32, #tpu.memory_space<vmem>>, vector<1x128xf32>
    %4 = vector.broadcast %3 : vector<1x128xf32> to vector<16x128xf32>
    %5 = arith.addf %2, %4 : vector<16x128xf32>
    %c0_5 = arith.constant 0 : index
    %c0_6 = arith.constant 0 : index
    %6 = vector.load %arg4[%c0_5, %c0_6] : memref<32x128xf32, #tpu.memory_space<vmem>>, vector<32x128xf32>
    %cst_7 = arith.constant 0.000000e+00 : f32
    %7 = vector.broadcast %cst_7 : f32 to vector<2x32xf32>
    %cst_8 = arith.constant 0.000000e+00 : f32
    %8 = vector.broadcast %cst_8 : f32 to vector<2x32xf32>
    %9 = vector.extract_strided_slice %5 {offsets = [0, 0], sizes = [2, 128], strides = [1, 1]} : vector<16x128xf32> to vector<2x128xf32>
    %cst_9 = arith.constant dense<0.000000e+00> : vector<2x128xf32>
    %10 = tpu.matmul %7, %6, %cst_9 {dimension_numbers = #tpu.dot_dimension_numbers<[1], [0], [0], [1], [0, 0, 1, 1], [], []>} : vector<2x32xf32>, vector<32x128xf32>, vector<2x128xf32> -> vector<2x128xf32>
    %11 = arith.addf %9, %10 : vector<2x128xf32>
    %12 = vector.extract_strided_slice %11 {offsets = [0, 0], sizes = [2, 32], strides = [1, 1]} : vector<2x128xf32> to vector<2x32xf32>
    %13 = arith.negf %12 : vector<2x32xf32>
    %14 = math.exp %13 : vector<2x32xf32>
    %cst_10 = arith.constant 1.000000e+00 : f32
    %15 = vector.broadcast %cst_10 : f32 to vector<2x32xf32>
    %16 = arith.addf %15, %14 : vector<2x32xf32>
    %17 = arith.divf %15, %16 : vector<2x32xf32>
    %18 = vector.extract_strided_slice %11 {offsets = [0, 32], sizes = [2, 32], strides = [1, 1]} : vector<2x128xf32> to vector<2x32xf32>
    %19 = arith.negf %18 : vector<2x32xf32>
    %20 = math.exp %19 : vector<2x32xf32>
    %cst_11 = arith.constant 1.000000e+00 : f32
    %21 = vector.broadcast %cst_11 : f32 to vector<2x32xf32>
    %22 = arith.addf %21, %20 : vector<2x32xf32>
    %23 = arith.divf %21, %22 : vector<2x32xf32>
    %24 = vector.extract_strided_slice %11 {offsets = [0, 64], sizes = [2, 32], strides = [1, 1]} : vector<2x128xf32> to vector<2x32xf32>
    %25 = math.tanh %24 : vector<2x32xf32>
    %26 = vector.extract_strided_slice %11 {offsets = [0, 96], sizes = [2, 32], strides = [1, 1]} : vector<2x128xf32> to vector<2x32xf32>
    %27 = arith.negf %26 : vector<2x32xf32>
    %28 = math.exp %27 : vector<2x32xf32>
    %cst_12 = arith.constant 1.000000e+00 : f32
    %29 = vector.broadcast %cst_12 : f32 to vector<2x32xf32>
    %30 = arith.addf %29, %28 : vector<2x32xf32>
    %31 = arith.divf %29, %30 : vector<2x32xf32>
    %32 = arith.mulf %23, %8 : vector<2x32xf32>
    %33 = arith.mulf %17, %25 : vector<2x32xf32>
    %34 = arith.addf %32, %33 : vector<2x32xf32>
    %35 = math.tanh %34 : vector<2x32xf32>
    %36 = arith.mulf %31, %35 : vector<2x32xf32>
    %c0_13 = arith.constant 0 : index
    %c0_14 = arith.constant 0 : index
    %37 = vector.load %arg23[%c0_13, %c0_14] : memref<16x32xf32, #tpu.memory_space<vmem>>, vector<2x32xf32>
    tpu.vector_store %arg23[%c0_13, %c0_14], %36 {strides = array<i32>} : memref<16x32xf32, #tpu.memory_space<vmem>>, vector<2x32xf32>,
    %38 = vector.extract_strided_slice %5 {offsets = [2, 0], sizes = [2, 128], strides = [1, 1]} : vector<16x128xf32> to vector<2x128xf32>
    %cst_15 = arith.constant dense<0.000000e+00> : vector<2x128xf32>
    %39 = tpu.matmul %36, %6, %cst_15 {dimension_numbers = #tpu.dot_dimension_numbers<[1], [0], [0], [1], [0, 0, 1, 1], [], []>} : vector<2x32xf32>, vector<32x128xf32>, vector<2x128xf32> -> vector<2x128xf32>
    %40 = arith.addf %38, %39 : vector<2x128xf32>
    %41 = vector.extract_strided_slice %40 {offsets = [0, 0], sizes = [2, 32], strides = [1, 1]} : vector<2x128xf32> to vector<2x32xf32>
    %42 = arith.negf %41 : vector<2x32xf32>
    %43 = math.exp %42 : vector<2x32xf32>
    %cst_16 = arith.constant 1.000000e+00 : f32
    %44 = vector.broadcast %cst_16 : f32 to vector<2x32xf32>
    %45 = arith.addf %44, %43 : vector<2x32xf32>
    %46 = arith.divf %44, %45 : vector<2x32xf32>
    %47 = vector.extract_strided_slice %40 {offsets = [0, 32], sizes = [2, 32], strides = [1, 1]} : vector<2x128xf32> to vector<2x32xf32>
    %48 = arith.negf %47 : vector<2x32xf32>
    %49 = math.exp %48 : vector<2x32xf32>
    %cst_17 = arith.constant 1.000000e+00 : f32
    %50 = vector.broadcast %cst_17 : f32 to vector<2x32xf32>
    %51 = arith.addf %50, %49 : vector<2x32xf32>
    %52 = arith.divf %50, %51 : vector<2x32xf32>
    %53 = vector.extract_strided_slice %40 {offsets = [0, 64], sizes = [2, 32], strides = [1, 1]} : vector<2x128xf32> to vector<2x32xf32>
    %54 = math.tanh %53 : vector<2x32xf32>
    %55 = vector.extract_strided_slice %40 {offsets = [0, 96], sizes = [2, 32], strides = [1, 1]} : vector<2x128xf32> to vector<2x32xf32>
    %56 = arith.negf %55 : vector<2x32xf32>
    %57 = math.exp %56 : vector<2x32xf32>
    %cst_18 = arith.constant 1.000000e+00 : f32
    %58 = vector.broadcast %cst_18 : f32 to vector<2x32xf32>
    %59 = arith.addf %58, %57 : vector<2x32xf32>
    %60 = arith.divf %58, %59 : vector<2x32xf32>
    %61 = arith.mulf %52, %34 : vector<2x32xf32>
    %62 = arith.mulf %46, %54 : vector<2x32xf32>
    %63 = arith.addf %61, %62 : vector<2x32xf32>
    %64 = math.tanh %63 : vector<2x32xf32>
    %65 = arith.mulf %60, %64 : vector<2x32xf32>
    %c2 = arith.constant 2 : index
    %c0_19 = arith.constant 0 : index
    %66 = vector.load %arg23[%c2, %c0_19] : memref<16x32xf32, #tpu.memory_space<vmem>>, vector<2x32xf32>
    tpu.vector_store %arg23[%c2, %c0_19], %65 {strides = array<i32>} : memref<16x32xf32, #tpu.memory_space<vmem>>, vector<2x32xf32>,
    %67 = vector.extract_strided_slice %5 {offsets = [4, 0], sizes = [2, 128], strides = [1, 1]} : vector<16x128xf32> to vector<2x128xf32>
    %cst_20 = arith.constant dense<0.000000e+00> : vector<2x128xf32>
    %68 = tpu.matmul %65, %6, %cst_20 {dimension_numbers = #tpu.dot_dimension_numbers<[1], [0], [0], [1], [0, 0, 1, 1], [], []>} : vector<2x32xf32>, vector<32x128xf32>, vector<2x128xf32> -> vector<2x128xf32>
    %69 = arith.addf %67, %68 : vector<2x128xf32>
    %70 = vector.extract_strided_slice %69 {offsets = [0, 0], sizes = [2, 32], strides = [1, 1]} : vector<2x128xf32> to vector<2x32xf32>
    %71 = arith.negf %70 : vector<2x32xf32>
    %72 = math.exp %71 : vector<2x32xf32>
    %cst_21 = arith.constant 1.000000e+00 : f32
    %73 = vector.broadcast %cst_21 : f32 to vector<2x32xf32>
    %74 = arith.addf %73, %72 : vector<2x32xf32>
    %75 = arith.divf %73, %74 : vector<2x32xf32>
    %76 = vector.extract_strided_slice %69 {offsets = [0, 32], sizes = [2, 32], strides = [1, 1]} : vector<2x128xf32> to vector<2x32xf32>
    %77 = arith.negf %76 : vector<2x32xf32>
    %78 = math.exp %77 : vector<2x32xf32>
    %cst_22 = arith.constant 1.000000e+00 : f32
    %79 = vector.broadcast %cst_22 : f32 to vector<2x32xf32>
    %80 = arith.addf %79, %78 : vector<2x32xf32>
    %81 = arith.divf %79, %80 : vector<2x32xf32>
    %82 = vector.extract_strided_slice %69 {offsets = [0, 64], sizes = [2, 32], strides = [1, 1]} : vector<2x128xf32> to vector<2x32xf32>
    %83 = math.tanh %82 : vector<2x32xf32>
    %84 = vector.extract_strided_slice %69 {offsets = [0, 96], sizes = [2, 32], strides = [1, 1]} : vector<2x128xf32> to vector<2x32xf32>
    %85 = arith.negf %84 : vector<2x32xf32>
    %86 = math.exp %85 : vector<2x32xf32>
    %cst_23 = arith.constant 1.000000e+00 : f32
    %87 = vector.broadcast %cst_23 : f32 to vector<2x32xf32>
    %88 = arith.addf %87, %86 : vector<2x32xf32>
    %89 = arith.divf %87, %88 : vector<2x32xf32>
    %90 = arith.mulf %81, %63 : vector<2x32xf32>
    %91 = arith.mulf %75, %83 : vector<2x32xf32>
    %92 = arith.addf %90, %91 : vector<2x32xf32>
    %93 = math.tanh %92 : vector<2x32xf32>
    %94 = arith.mulf %89, %93 : vector<2x32xf32>
    %c4 = arith.constant 4 : index
    %c0_24 = arith.constant 0 : index
    %95 = vector.load %arg23[%c4, %c0_24] : memref<16x32xf32, #tpu.memory_space<vmem>>, vector<2x32xf32>
    tpu.vector_store %arg23[%c4, %c0_24], %94 {strides = array<i32>} : memref<16x32xf32, #tpu.memory_space<vmem>>, vector<2x32xf32>,
    %96 = vector.extract_strided_slice %5 {offsets = [6, 0], sizes = [2, 128], strides = [1, 1]} : vector<16x128xf32> to vector<2x128xf32>
    %cst_25 = arith.constant dense<0.000000e+00> : vector<2x128xf32>
    %97 = tpu.matmul %94, %6, %cst_25 {dimension_numbers = #tpu.dot_dimension_numbers<[1], [0], [0], [1], [0, 0, 1, 1], [], []>} : vector<2x32xf32>, vector<32x128xf32>, vector<2x128xf32> -> vector<2x128xf32>
    %98 = arith.addf %96, %97 : vector<2x128xf32>
    %99 = vector.extract_strided_slice %98 {offsets = [0, 0], sizes = [2, 32], strides = [1, 1]} : vector<2x128xf32> to vector<2x32xf32>
    %100 = arith.negf %99 : vector<2x32xf32>
    %101 = math.exp %100 : vector<2x32xf32>
    %cst_26 = arith.constant 1.000000e+00 : f32
    %102 = vector.broadcast %cst_26 : f32 to vector<2x32xf32>
    %103 = arith.addf %102, %101 : vector<2x32xf32>
    %104 = arith.divf %102, %103 : vector<2x32xf32>
    %105 = vector.extract_strided_slice %98 {offsets = [0, 32], sizes = [2, 32], strides = [1, 1]} : vector<2x128xf32> to vector<2x32xf32>
    %106 = arith.negf %105 : vector<2x32xf32>
    %107 = math.exp %106 : vector<2x32xf32>
    %cst_27 = arith.constant 1.000000e+00 : f32
    %108 = vector.broadcast %cst_27 : f32 to vector<2x32xf32>
    %109 = arith.addf %108, %107 : vector<2x32xf32>
    %110 = arith.divf %108, %109 : vector<2x32xf32>
    %111 = vector.extract_strided_slice %98 {offsets = [0, 64], sizes = [2, 32], strides = [1, 1]} : vector<2x128xf32> to vector<2x32xf32>
    %112 = math.tanh %111 : vector<2x32xf32>
    %113 = vector.extract_strided_slice %98 {offsets = [0, 96], sizes = [2, 32], strides = [1, 1]} : vector<2x128xf32> to vector<2x32xf32>
    %114 = arith.negf %113 : vector<2x32xf32>
    %115 = math.exp %114 : vector<2x32xf32>
    %cst_28 = arith.constant 1.000000e+00 : f32
    %116 = vector.broadcast %cst_28 : f32 to vector<2x32xf32>
    %117 = arith.addf %116, %115 : vector<2x32xf32>
    %118 = arith.divf %116, %117 : vector<2x32xf32>
    %119 = arith.mulf %110, %92 : vector<2x32xf32>
    %120 = arith.mulf %104, %112 : vector<2x32xf32>
    %121 = arith.addf %119, %120 : vector<2x32xf32>
    %122 = math.tanh %121 : vector<2x32xf32>
    %123 = arith.mulf %118, %122 : vector<2x32xf32>
    %c6 = arith.constant 6 : index
    %c0_29 = arith.constant 0 : index
    %124 = vector.load %arg23[%c6, %c0_29] : memref<16x32xf32, #tpu.memory_space<vmem>>, vector<2x32xf32>
    tpu.vector_store %arg23[%c6, %c0_29], %123 {strides = array<i32>} : memref<16x32xf32, #tpu.memory_space<vmem>>, vector<2x32xf32>,
    %125 = vector.extract_strided_slice %5 {offsets = [8, 0], sizes = [2, 128], strides = [1, 1]} : vector<16x128xf32> to vector<2x128xf32>
    %cst_30 = arith.constant dense<0.000000e+00> : vector<2x128xf32>
    %126 = tpu.matmul %123, %6, %cst_30 {dimension_numbers = #tpu.dot_dimension_numbers<[1], [0], [0], [1], [0, 0, 1, 1], [], []>} : vector<2x32xf32>, vector<32x128xf32>, vector<2x128xf32> -> vector<2x128xf32>
    %127 = arith.addf %125, %126 : vector<2x128xf32>
    %128 = vector.extract_strided_slice %127 {offsets = [0, 0], sizes = [2, 32], strides = [1, 1]} : vector<2x128xf32> to vector<2x32xf32>
    %129 = arith.negf %128 : vector<2x32xf32>
    %130 = math.exp %129 : vector<2x32xf32>
    %cst_31 = arith.constant 1.000000e+00 : f32
    %131 = vector.broadcast %cst_31 : f32 to vector<2x32xf32>
    %132 = arith.addf %131, %130 : vector<2x32xf32>
    %133 = arith.divf %131, %132 : vector<2x32xf32>
    %134 = vector.extract_strided_slice %127 {offsets = [0, 32], sizes = [2, 32], strides = [1, 1]} : vector<2x128xf32> to vector<2x32xf32>
    %135 = arith.negf %134 : vector<2x32xf32>
    %136 = math.exp %135 : vector<2x32xf32>
    %cst_32 = arith.constant 1.000000e+00 : f32
    %137 = vector.broadcast %cst_32 : f32 to vector<2x32xf32>
    %138 = arith.addf %137, %136 : vector<2x32xf32>
    %139 = arith.divf %137, %138 : vector<2x32xf32>
    %140 = vector.extract_strided_slice %127 {offsets = [0, 64], sizes = [2, 32], strides = [1, 1]} : vector<2x128xf32> to vector<2x32xf32>
    %141 = math.tanh %140 : vector<2x32xf32>
    %142 = vector.extract_strided_slice %127 {offsets = [0, 96], sizes = [2, 32], strides = [1, 1]} : vector<2x128xf32> to vector<2x32xf32>
    %143 = arith.negf %142 : vector<2x32xf32>
    %144 = math.exp %143 : vector<2x32xf32>
    %cst_33 = arith.constant 1.000000e+00 : f32
    %145 = vector.broadcast %cst_33 : f32 to vector<2x32xf32>
    %146 = arith.addf %145, %144 : vector<2x32xf32>
    %147 = arith.divf %145, %146 : vector<2x32xf32>
    %148 = arith.mulf %139, %121 : vector<2x32xf32>
    %149 = arith.mulf %133, %141 : vector<2x32xf32>
    %150 = arith.addf %148, %149 : vector<2x32xf32>
    %151 = math.tanh %150 : vector<2x32xf32>
    %152 = arith.mulf %147, %151 : vector<2x32xf32>
    %c8 = arith.constant 8 : index
    %c0_34 = arith.constant 0 : index
    %153 = vector.load %arg23[%c8, %c0_34] : memref<16x32xf32, #tpu.memory_space<vmem>>, vector<2x32xf32>
    tpu.vector_store %arg23[%c8, %c0_34], %152 {strides = array<i32>} : memref<16x32xf32, #tpu.memory_space<vmem>>, vector<2x32xf32>,
    %154 = vector.extract_strided_slice %5 {offsets = [10, 0], sizes = [2, 128], strides = [1, 1]} : vector<16x128xf32> to vector<2x128xf32>
    %cst_35 = arith.constant dense<0.000000e+00> : vector<2x128xf32>
    %155 = tpu.matmul %152, %6, %cst_35 {dimension_numbers = #tpu.dot_dimension_numbers<[1], [0], [0], [1], [0, 0, 1, 1], [], []>} : vector<2x32xf32>, vector<32x128xf32>, vector<2x128xf32> -> vector<2x128xf32>
    %156 = arith.addf %154, %155 : vector<2x128xf32>
    %157 = vector.extract_strided_slice %156 {offsets = [0, 0], sizes = [2, 32], strides = [1, 1]} : vector<2x128xf32> to vector<2x32xf32>
    %158 = arith.negf %157 : vector<2x32xf32>
    %159 = math.exp %158 : vector<2x32xf32>
    %cst_36 = arith.constant 1.000000e+00 : f32
    %160 = vector.broadcast %cst_36 : f32 to vector<2x32xf32>
    %161 = arith.addf %160, %159 : vector<2x32xf32>
    %162 = arith.divf %160, %161 : vector<2x32xf32>
    %163 = vector.extract_strided_slice %156 {offsets = [0, 32], sizes = [2, 32], strides = [1, 1]} : vector<2x128xf32> to vector<2x32xf32>
    %164 = arith.negf %163 : vector<2x32xf32>
    %165 = math.exp %164 : vector<2x32xf32>
    %cst_37 = arith.constant 1.000000e+00 : f32
    %166 = vector.broadcast %cst_37 : f32 to vector<2x32xf32>
    %167 = arith.addf %166, %165 : vector<2x32xf32>
    %168 = arith.divf %166, %167 : vector<2x32xf32>
    %169 = vector.extract_strided_slice %156 {offsets = [0, 64], sizes = [2, 32], strides = [1, 1]} : vector<2x128xf32> to vector<2x32xf32>
    %170 = math.tanh %169 : vector<2x32xf32>
    %171 = vector.extract_strided_slice %156 {offsets = [0, 96], sizes = [2, 32], strides = [1, 1]} : vector<2x128xf32> to vector<2x32xf32>
    %172 = arith.negf %171 : vector<2x32xf32>
    %173 = math.exp %172 : vector<2x32xf32>
    %cst_38 = arith.constant 1.000000e+00 : f32
    %174 = vector.broadcast %cst_38 : f32 to vector<2x32xf32>
    %175 = arith.addf %174, %173 : vector<2x32xf32>
    %176 = arith.divf %174, %175 : vector<2x32xf32>
    %177 = arith.mulf %168, %150 : vector<2x32xf32>
    %178 = arith.mulf %162, %170 : vector<2x32xf32>
    %179 = arith.addf %177, %178 : vector<2x32xf32>
    %180 = math.tanh %179 : vector<2x32xf32>
    %181 = arith.mulf %176, %180 : vector<2x32xf32>
    %c10 = arith.constant 10 : index
    %c0_39 = arith.constant 0 : index
    %182 = vector.load %arg23[%c10, %c0_39] : memref<16x32xf32, #tpu.memory_space<vmem>>, vector<2x32xf32>
    tpu.vector_store %arg23[%c10, %c0_39], %181 {strides = array<i32>} : memref<16x32xf32, #tpu.memory_space<vmem>>, vector<2x32xf32>,
    %183 = vector.extract_strided_slice %5 {offsets = [12, 0], sizes = [2, 128], strides = [1, 1]} : vector<16x128xf32> to vector<2x128xf32>
    %cst_40 = arith.constant dense<0.000000e+00> : vector<2x128xf32>
    %184 = tpu.matmul %181, %6, %cst_40 {dimension_numbers = #tpu.dot_dimension_numbers<[1], [0], [0], [1], [0, 0, 1, 1], [], []>} : vector<2x32xf32>, vector<32x128xf32>, vector<2x128xf32> -> vector<2x128xf32>
    %185 = arith.addf %183, %184 : vector<2x128xf32>
    %186 = vector.extract_strided_slice %185 {offsets = [0, 0], sizes = [2, 32], strides = [1, 1]} : vector<2x128xf32> to vector<2x32xf32>
    %187 = arith.negf %186 : vector<2x32xf32>
    %188 = math.exp %187 : vector<2x32xf32>
    %cst_41 = arith.constant 1.000000e+00 : f32
    %189 = vector.broadcast %cst_41 : f32 to vector<2x32xf32>
    %190 = arith.addf %189, %188 : vector<2x32xf32>
    %191 = arith.divf %189, %190 : vector<2x32xf32>
    %192 = vector.extract_strided_slice %185 {offsets = [0, 32], sizes = [2, 32], strides = [1, 1]} : vector<2x128xf32> to vector<2x32xf32>
    %193 = arith.negf %192 : vector<2x32xf32>
    %194 = math.exp %193 : vector<2x32xf32>
    %cst_42 = arith.constant 1.000000e+00 : f32
    %195 = vector.broadcast %cst_42 : f32 to vector<2x32xf32>
    %196 = arith.addf %195, %194 : vector<2x32xf32>
    %197 = arith.divf %195, %196 : vector<2x32xf32>
    %198 = vector.extract_strided_slice %185 {offsets = [0, 64], sizes = [2, 32], strides = [1, 1]} : vector<2x128xf32> to vector<2x32xf32>
    %199 = math.tanh %198 : vector<2x32xf32>
    %200 = vector.extract_strided_slice %185 {offsets = [0, 96], sizes = [2, 32], strides = [1, 1]} : vector<2x128xf32> to vector<2x32xf32>
    %201 = arith.negf %200 : vector<2x32xf32>
    %202 = math.exp %201 : vector<2x32xf32>
    %cst_43 = arith.constant 1.000000e+00 : f32
    %203 = vector.broadcast %cst_43 : f32 to vector<2x32xf32>
    %204 = arith.addf %203, %202 : vector<2x32xf32>
    %205 = arith.divf %203, %204 : vector<2x32xf32>
    %206 = arith.mulf %197, %179 : vector<2x32xf32>
    %207 = arith.mulf %191, %199 : vector<2x32xf32>
    %208 = arith.addf %206, %207 : vector<2x32xf32>
    %209 = math.tanh %208 : vector<2x32xf32>
    %210 = arith.mulf %205, %209 : vector<2x32xf32>
    %c12 = arith.constant 12 : index
    %c0_44 = arith.constant 0 : index
    %211 = vector.load %arg23[%c12, %c0_44] : memref<16x32xf32, #tpu.memory_space<vmem>>, vector<2x32xf32>
    tpu.vector_store %arg23[%c12, %c0_44], %210 {strides = array<i32>} : memref<16x32xf32, #tpu.memory_space<vmem>>, vector<2x32xf32>,
    %212 = vector.extract_strided_slice %5 {offsets = [14, 0], sizes = [2, 128], strides = [1, 1]} : vector<16x128xf32> to vector<2x128xf32>
    %cst_45 = arith.constant dense<0.000000e+00> : vector<2x128xf32>
    %213 = tpu.matmul %210, %6, %cst_45 {dimension_numbers = #tpu.dot_dimension_numbers<[1], [0], [0], [1], [0, 0, 1, 1], [], []>} : vector<2x32xf32>, vector<32x128xf32>, vector<2x128xf32> -> vector<2x128xf32>
    %214 = arith.addf %212, %213 : vector<2x128xf32>
    %215 = vector.extract_strided_slice %214 {offsets = [0, 0], sizes = [2, 32], strides = [1, 1]} : vector<2x128xf32> to vector<2x32xf32>
    %216 = arith.negf %215 : vector<2x32xf32>
    %217 = math.exp %216 : vector<2x32xf32>
    %cst_46 = arith.constant 1.000000e+00 : f32
    %218 = vector.broadcast %cst_46 : f32 to vector<2x32xf32>
    %219 = arith.addf %218, %217 : vector<2x32xf32>
    %220 = arith.divf %218, %219 : vector<2x32xf32>
    %221 = vector.extract_strided_slice %214 {offsets = [0, 32], sizes = [2, 32], strides = [1, 1]} : vector<2x128xf32> to vector<2x32xf32>
    %222 = arith.negf %221 : vector<2x32xf32>
    %223 = math.exp %222 : vector<2x32xf32>
    %cst_47 = arith.constant 1.000000e+00 : f32
    %224 = vector.broadcast %cst_47 : f32 to vector<2x32xf32>
    %225 = arith.addf %224, %223 : vector<2x32xf32>
    %226 = arith.divf %224, %225 : vector<2x32xf32>
    %227 = vector.extract_strided_slice %214 {offsets = [0, 64], sizes = [2, 32], strides = [1, 1]} : vector<2x128xf32> to vector<2x32xf32>
    %228 = math.tanh %227 : vector<2x32xf32>
    %229 = vector.extract_strided_slice %214 {offsets = [0, 96], sizes = [2, 32], strides = [1, 1]} : vector<2x128xf32> to vector<2x32xf32>
    %230 = arith.negf %229 : vector<2x32xf32>
    %231 = math.exp %230 : vector<2x32xf32>
    %cst_48 = arith.constant 1.000000e+00 : f32
    %232 = vector.broadcast %cst_48 : f32 to vector<2x32xf32>
    %233 = arith.addf %232, %231 : vector<2x32xf32>
    %234 = arith.divf %232, %233 : vector<2x32xf32>
    %235 = arith.mulf %226, %208 : vector<2x32xf32>
    %236 = arith.mulf %220, %228 : vector<2x32xf32>
    %237 = arith.addf %235, %236 : vector<2x32xf32>
    %238 = math.tanh %237 : vector<2x32xf32>
    %239 = arith.mulf %234, %238 : vector<2x32xf32>
    %c14 = arith.constant 14 : index
    %c0_49 = arith.constant 0 : index
    %240 = vector.load %arg23[%c14, %c0_49] : memref<16x32xf32, #tpu.memory_space<vmem>>, vector<2x32xf32>
    tpu.vector_store %arg23[%c14, %c0_49], %239 {strides = array<i32>} : memref<16x32xf32, #tpu.memory_space<vmem>>, vector<2x32xf32>,
    %c0_50 = arith.constant 0 : index
    %c0_51 = arith.constant 0 : index
    %241 = vector.load %arg23[%c0_50, %c0_51] : memref<16x32xf32, #tpu.memory_space<vmem>>, vector<16x32xf32>
    %c0_52 = arith.constant 0 : index
    %c0_53 = arith.constant 0 : index
    %242 = vector.load %arg6[%c0_52, %c0_53] : memref<32x512xf32, #tpu.memory_space<vmem>>, vector<32x512xf32>
    %cst_54 = arith.constant dense<0.000000e+00> : vector<16x512xf32>
    %243 = tpu.matmul %241, %242, %cst_54 {dimension_numbers = #tpu.dot_dimension_numbers<[1], [0], [0], [1], [0, 0, 1, 1], [], []>} : vector<16x32xf32>, vector<32x512xf32>, vector<16x512xf32> -> vector<16x512xf32>
    %c0_55 = arith.constant 0 : index
    %c0_56 = arith.constant 0 : index
    %244 = vector.load %arg7[%c0_55, %c0_56] : memref<1x512xf32, #tpu.memory_space<vmem>>, vector<1x512xf32>
    %245 = vector.broadcast %244 : vector<1x512xf32> to vector<16x512xf32>
    %246 = arith.addf %243, %245 : vector<16x512xf32>
    %cst_57 = arith.constant 0.000000e+00 : f32
    %247 = vector.broadcast %cst_57 : f32 to vector<16x512xf32>
    %248 = arith.maximumf %246, %247 : vector<16x512xf32>
    %c0_58 = arith.constant 0 : index
    %c0_59 = arith.constant 0 : index
    %249 = vector.load %arg8[%c0_58, %c0_59] : memref<512x2xf32, #tpu.memory_space<vmem>>, vector<512x2xf32>
    %cst_60 = arith.constant dense<0.000000e+00> : vector<16x2xf32>
    %250 = tpu.matmul %248, %249, %cst_60 {dimension_numbers = #tpu.dot_dimension_numbers<[1], [0], [0], [1], [0, 0, 1, 1], [], []>} : vector<16x512xf32>, vector<512x2xf32>, vector<16x2xf32> -> vector<16x2xf32>
    %c0_61 = arith.constant 0 : index
    %c0_62 = arith.constant 0 : index
    %251 = vector.load %arg9[%c0_61, %c0_62] : memref<1x2xf32, #tpu.memory_space<vmem>>, vector<1x2xf32>
    %252 = vector.broadcast %251 : vector<1x2xf32> to vector<16x2xf32>
    %253 = arith.addf %250, %252 : vector<16x2xf32>
    %254 = vector.extract_strided_slice %253 {offsets = [0, 0], sizes = [2, 2], strides = [1, 1]} : vector<16x2xf32> to vector<2x2xf32>
    %255 = vector.extract_strided_slice %253 {offsets = [2, 0], sizes = [2, 2], strides = [1, 1]} : vector<16x2xf32> to vector<2x2xf32>
    %256 = vector.extract_strided_slice %253 {offsets = [4, 0], sizes = [2, 2], strides = [1, 1]} : vector<16x2xf32> to vector<2x2xf32>
    %257 = vector.extract_strided_slice %253 {offsets = [6, 0], sizes = [2, 2], strides = [1, 1]} : vector<16x2xf32> to vector<2x2xf32>
    %258 = vector.extract_strided_slice %253 {offsets = [8, 0], sizes = [2, 2], strides = [1, 1]} : vector<16x2xf32> to vector<2x2xf32>
    %259 = vector.extract_strided_slice %253 {offsets = [10, 0], sizes = [2, 2], strides = [1, 1]} : vector<16x2xf32> to vector<2x2xf32>
    %260 = vector.extract_strided_slice %253 {offsets = [12, 0], sizes = [2, 2], strides = [1, 1]} : vector<16x2xf32> to vector<2x2xf32>
    %261 = vector.extract_strided_slice %253 {offsets = [14, 0], sizes = [2, 2], strides = [1, 1]} : vector<16x2xf32> to vector<2x2xf32>
    %262 = arith.maximumf %254, %255 : vector<2x2xf32>
    %263 = arith.maximumf %262, %256 : vector<2x2xf32>
    %264 = arith.maximumf %263, %257 : vector<2x2xf32>
    %265 = arith.maximumf %264, %258 : vector<2x2xf32>
    %266 = arith.maximumf %265, %259 : vector<2x2xf32>
    %267 = arith.maximumf %266, %260 : vector<2x2xf32>
    %268 = arith.maximumf %267, %261 : vector<2x2xf32>
    %269 = arith.subf %254, %268 : vector<2x2xf32>
    %270 = math.exp %269 : vector<2x2xf32>
    %271 = arith.subf %255, %268 : vector<2x2xf32>
    %272 = math.exp %271 : vector<2x2xf32>
    %273 = arith.subf %256, %268 : vector<2x2xf32>
    %274 = math.exp %273 : vector<2x2xf32>
    %275 = arith.subf %257, %268 : vector<2x2xf32>
    %276 = math.exp %275 : vector<2x2xf32>
    %277 = arith.subf %258, %268 : vector<2x2xf32>
    %278 = math.exp %277 : vector<2x2xf32>
    %279 = arith.subf %259, %268 : vector<2x2xf32>
    %280 = math.exp %279 : vector<2x2xf32>
    %281 = arith.subf %260, %268 : vector<2x2xf32>
    %282 = math.exp %281 : vector<2x2xf32>
    %283 = arith.subf %261, %268 : vector<2x2xf32>
    %284 = math.exp %283 : vector<2x2xf32>
    %285 = arith.addf %270, %272 : vector<2x2xf32>
    %286 = arith.addf %285, %274 : vector<2x2xf32>
    %287 = arith.addf %286, %276 : vector<2x2xf32>
    %288 = arith.addf %287, %278 : vector<2x2xf32>
    %289 = arith.addf %288, %280 : vector<2x2xf32>
    %290 = arith.addf %289, %282 : vector<2x2xf32>
    %291 = arith.addf %290, %284 : vector<2x2xf32>
    %292 = tpu.reciprocal %291 {approx = true} : vector<2x2xf32> -> vector<2x2xf32>
    %293 = arith.mulf %270, %292 : vector<2x2xf32>
    %294 = arith.mulf %272, %292 : vector<2x2xf32>
    %295 = arith.mulf %274, %292 : vector<2x2xf32>
    %296 = arith.mulf %276, %292 : vector<2x2xf32>
    %297 = arith.mulf %278, %292 : vector<2x2xf32>
    %298 = arith.mulf %280, %292 : vector<2x2xf32>
    %299 = arith.mulf %282, %292 : vector<2x2xf32>
    %300 = arith.mulf %284, %292 : vector<2x2xf32>
    %c0_63 = arith.constant 0 : index
    %c0_64 = arith.constant 0 : index
    %301 = vector.load %arg10[%c0_63, %c0_64] : memref<64x384xf32, #tpu.memory_space<vmem>>, vector<64x384xf32>
    %302 = vector.extract_strided_slice %293 {offsets = [0, 0], sizes = [2, 1], strides = [1, 1]} : vector<2x2xf32> to vector<2x1xf32>
    %303 = vector.broadcast %302 : vector<2x1xf32> to vector<2x32xf32>
    %304 = arith.mulf %303, %36 : vector<2x32xf32>
    %305 = vector.extract_strided_slice %294 {offsets = [0, 0], sizes = [2, 1], strides = [1, 1]} : vector<2x2xf32> to vector<2x1xf32>
    %306 = vector.broadcast %305 : vector<2x1xf32> to vector<2x32xf32>
    %307 = arith.mulf %306, %65 : vector<2x32xf32>
    %308 = arith.addf %304, %307 : vector<2x32xf32>
    %309 = vector.extract_strided_slice %295 {offsets = [0, 0], sizes = [2, 1], strides = [1, 1]} : vector<2x2xf32> to vector<2x1xf32>
    %310 = vector.broadcast %309 : vector<2x1xf32> to vector<2x32xf32>
    %311 = arith.mulf %310, %94 : vector<2x32xf32>
    %312 = arith.addf %308, %311 : vector<2x32xf32>
    %313 = vector.extract_strided_slice %296 {offsets = [0, 0], sizes = [2, 1], strides = [1, 1]} : vector<2x2xf32> to vector<2x1xf32>
    %314 = vector.broadcast %313 : vector<2x1xf32> to vector<2x32xf32>
    %315 = arith.mulf %314, %123 : vector<2x32xf32>
    %316 = arith.addf %312, %315 : vector<2x32xf32>
    %317 = vector.extract_strided_slice %297 {offsets = [0, 0], sizes = [2, 1], strides = [1, 1]} : vector<2x2xf32> to vector<2x1xf32>
    %318 = vector.broadcast %317 : vector<2x1xf32> to vector<2x32xf32>
    %319 = arith.mulf %318, %152 : vector<2x32xf32>
    %320 = arith.addf %316, %319 : vector<2x32xf32>
    %321 = vector.extract_strided_slice %298 {offsets = [0, 0], sizes = [2, 1], strides = [1, 1]} : vector<2x2xf32> to vector<2x1xf32>
    %322 = vector.broadcast %321 : vector<2x1xf32> to vector<2x32xf32>
    %323 = arith.mulf %322, %181 : vector<2x32xf32>
    %324 = arith.addf %320, %323 : vector<2x32xf32>
    %325 = vector.extract_strided_slice %299 {offsets = [0, 0], sizes = [2, 1], strides = [1, 1]} : vector<2x2xf32> to vector<2x1xf32>
    %326 = vector.broadcast %325 : vector<2x1xf32> to vector<2x32xf32>
    %327 = arith.mulf %326, %210 : vector<2x32xf32>
    %328 = arith.addf %324, %327 : vector<2x32xf32>
    %329 = vector.extract_strided_slice %300 {offsets = [0, 0], sizes = [2, 1], strides = [1, 1]} : vector<2x2xf32> to vector<2x1xf32>
    %330 = vector.broadcast %329 : vector<2x1xf32> to vector<2x32xf32>
    %331 = arith.mulf %330, %239 : vector<2x32xf32>
    %332 = arith.addf %328, %331 : vector<2x32xf32>
    %333 = vector.extract_strided_slice %301 {offsets = [0, 0], sizes = [32, 384], strides = [1, 1]} : vector<64x384xf32> to vector<32x384xf32>
    %cst_65 = arith.constant dense<0.000000e+00> : vector<2x384xf32>
    %334 = tpu.matmul %332, %333, %cst_65 {dimension_numbers = #tpu.dot_dimension_numbers<[1], [0], [0], [1], [0, 0, 1, 1], [], []>} : vector<2x32xf32>, vector<32x384xf32>, vector<2x384xf32> -> vector<2x384xf32>
    %335 = vector.extract_strided_slice %293 {offsets = [0, 1], sizes = [2, 1], strides = [1, 1]} : vector<2x2xf32> to vector<2x1xf32>
    %336 = vector.broadcast %335 : vector<2x1xf32> to vector<2x32xf32>
    %337 = arith.mulf %336, %36 : vector<2x32xf32>
    %338 = vector.extract_strided_slice %294 {offsets = [0, 1], sizes = [2, 1], strides = [1, 1]} : vector<2x2xf32> to vector<2x1xf32>
    %339 = vector.broadcast %338 : vector<2x1xf32> to vector<2x32xf32>
    %340 = arith.mulf %339, %65 : vector<2x32xf32>
    %341 = arith.addf %337, %340 : vector<2x32xf32>
    %342 = vector.extract_strided_slice %295 {offsets = [0, 1], sizes = [2, 1], strides = [1, 1]} : vector<2x2xf32> to vector<2x1xf32>
    %343 = vector.broadcast %342 : vector<2x1xf32> to vector<2x32xf32>
    %344 = arith.mulf %343, %94 : vector<2x32xf32>
    %345 = arith.addf %341, %344 : vector<2x32xf32>
    %346 = vector.extract_strided_slice %296 {offsets = [0, 1], sizes = [2, 1], strides = [1, 1]} : vector<2x2xf32> to vector<2x1xf32>
    %347 = vector.broadcast %346 : vector<2x1xf32> to vector<2x32xf32>
    %348 = arith.mulf %347, %123 : vector<2x32xf32>
    %349 = arith.addf %345, %348 : vector<2x32xf32>
    %350 = vector.extract_strided_slice %297 {offsets = [0, 1], sizes = [2, 1], strides = [1, 1]} : vector<2x2xf32> to vector<2x1xf32>
    %351 = vector.broadcast %350 : vector<2x1xf32> to vector<2x32xf32>
    %352 = arith.mulf %351, %152 : vector<2x32xf32>
    %353 = arith.addf %349, %352 : vector<2x32xf32>
    %354 = vector.extract_strided_slice %298 {offsets = [0, 1], sizes = [2, 1], strides = [1, 1]} : vector<2x2xf32> to vector<2x1xf32>
    %355 = vector.broadcast %354 : vector<2x1xf32> to vector<2x32xf32>
    %356 = arith.mulf %355, %181 : vector<2x32xf32>
    %357 = arith.addf %353, %356 : vector<2x32xf32>
    %358 = vector.extract_strided_slice %299 {offsets = [0, 1], sizes = [2, 1], strides = [1, 1]} : vector<2x2xf32> to vector<2x1xf32>
    %359 = vector.broadcast %358 : vector<2x1xf32> to vector<2x32xf32>
    %360 = arith.mulf %359, %210 : vector<2x32xf32>
    %361 = arith.addf %357, %360 : vector<2x32xf32>
    %362 = vector.extract_strided_slice %300 {offsets = [0, 1], sizes = [2, 1], strides = [1, 1]} : vector<2x2xf32> to vector<2x1xf32>
    %363 = vector.broadcast %362 : vector<2x1xf32> to vector<2x32xf32>
    %364 = arith.mulf %363, %239 : vector<2x32xf32>
    %365 = arith.addf %361, %364 : vector<2x32xf32>
    %366 = vector.extract_strided_slice %301 {offsets = [32, 0], sizes = [32, 384], strides = [1, 1]} : vector<64x384xf32> to vector<32x384xf32>
    %cst_66 = arith.constant dense<0.000000e+00> : vector<2x384xf32>
    %367 = tpu.matmul %365, %366, %cst_66 {dimension_numbers = #tpu.dot_dimension_numbers<[1], [0], [0], [1], [0, 0, 1, 1], [], []>} : vector<2x32xf32>, vector<32x384xf32>, vector<2x384xf32> -> vector<2x384xf32>
    %368 = arith.addf %334, %367 : vector<2x384xf32>
    %c0_67 = arith.constant 0 : index
    %c0_68 = arith.constant 0 : index
    %369 = vector.load %arg11[%c0_67, %c0_68] : memref<1x384xf32, #tpu.memory_space<vmem>>, vector<1x384xf32>
    %370 = vector.broadcast %369 : vector<1x384xf32> to vector<2x384xf32>
    %371 = arith.addf %368, %370 : vector<2x384xf32>
    %372 = vector.extract_strided_slice %371 {offsets = [0, 0], sizes = [2, 128], strides = [1, 1]} : vector<2x384xf32> to vector<2x128xf32>
    %373 = vector.extract_strided_slice %371 {offsets = [0, 128], sizes = [2, 128], strides = [1, 1]} : vector<2x384xf32> to vector<2x128xf32>
    %374 = vector.extract_strided_slice %371 {offsets = [0, 256], sizes = [2, 128], strides = [1, 1]} : vector<2x384xf32> to vector<2x128xf32>
    %c0_69 = arith.constant 0 : index
    %c0_70 = arith.constant 0 : index
    %375 = vector.load %arg1[%c0_69, %c0_70] : memref<32x64xf32, #tpu.memory_space<vmem>>, vector<32x64xf32>
    %c0_71 = arith.constant 0 : index
    %c0_72 = arith.constant 0 : index
    %376 = vector.load %arg12[%c0_71, %c0_72] : memref<64x128xf32, #tpu.memory_space<vmem>>, vector<64x128xf32>
    %cst_73 = arith.constant dense<0.000000e+00> : vector<32x128xf32>
    %377 = tpu.matmul %375, %376, %cst_73 {dimension_numbers = #tpu.dot_dimension_numbers<[1], [0], [0], [1], [0, 0, 1, 1], [], []>} : vector<32x64xf32>, vector<64x128xf32>, vector<32x128xf32> -> vector<32x128xf32>
    %c0_74 = arith.constant 0 : index
    %c0_75 = arith.constant 0 : index
    %378 = vector.load %arg13[%c0_74, %c0_75] : memref<1x128xf32, #tpu.memory_space<vmem>>, vector<1x128xf32>
    %379 = vector.broadcast %378 : vector<1x128xf32> to vector<32x128xf32>
    %380 = arith.addf %377, %379 : vector<32x128xf32>
    %c0_76 = arith.constant 0 : index
    %c0_77 = arith.constant 0 : index
    %381 = vector.load %arg2[%c0_76, %c0_77] : memref<128x64xf32, #tpu.memory_space<vmem>>, vector<128x64xf32>
    %c0_78 = arith.constant 0 : index
    %c0_79 = arith.constant 0 : index
    %382 = vector.load %arg14[%c0_78, %c0_79] : memref<64x512xf32, #tpu.memory_space<vmem>>, vector<64x512xf32>
    %c0_80 = arith.constant 0 : index
    %c0_81 = arith.constant 0 : index
    %383 = vector.load %arg15[%c0_80, %c0_81] : memref<1x512xf32, #tpu.memory_space<vmem>>, vector<1x512xf32>
    %c0_82 = arith.constant 0 : index
    %c0_83 = arith.constant 0 : index
    %384 = vector.load %arg16[%c0_82, %c0_83] : memref<512x2xf32, #tpu.memory_space<vmem>>, vector<512x2xf32>
    %c0_84 = arith.constant 0 : index
    %c0_85 = arith.constant 0 : index
    %385 = vector.load %arg17[%c0_84, %c0_85] : memref<1x2xf32, #tpu.memory_space<vmem>>, vector<1x2xf32>
    %386 = vector.extract_strided_slice %380 {offsets = [0, 0], sizes = [16, 128], strides = [1, 1]} : vector<32x128xf32> to vector<16x128xf32>
    %387 = vector.extract_strided_slice %372 {offsets = [0, 0], sizes = [1, 128], strides = [1, 1]} : vector<2x128xf32> to vector<1x128xf32>
    %388 = vector.broadcast %387 : vector<1x128xf32> to vector<16x128xf32>
    %389 = arith.mulf %386, %388 : vector<16x128xf32>
    %cst_86 = arith.constant dense<0.000000e+00> : vector<16x64xf32>
    %390 = tpu.matmul %389, %381, %cst_86 {dimension_numbers = #tpu.dot_dimension_numbers<[1], [0], [0], [1], [0, 0, 1, 1], [], []>} : vector<16x128xf32>, vector<128x64xf32>, vector<16x64xf32> -> vector<16x64xf32>
    %cst_87 = arith.constant 0.000000e+00 : f32
    %391 = vector.broadcast %cst_87 : f32 to vector<16x64xf32>
    %392 = arith.maximumf %390, %391 : vector<16x64xf32>
    %393 = math.sqrt %392 : vector<16x64xf32>
    %cst_88 = arith.constant 0.000000e+00 : f32
    %394 = vector.broadcast %cst_88 : f32 to vector<16x64xf32>
    %395 = arith.subf %394, %390 : vector<16x64xf32>
    %cst_89 = arith.constant 0.000000e+00 : f32
    %396 = vector.broadcast %cst_89 : f32 to vector<16x64xf32>
    %397 = arith.maximumf %395, %396 : vector<16x64xf32>
    %398 = math.sqrt %397 : vector<16x64xf32>
    %399 = arith.subf %393, %398 : vector<16x64xf32>
    %400 = arith.mulf %399, %399 : vector<16x64xf32>
    %cst_90 = arith.constant dense<0.000000e+00> : vector<16xf32>
    %401 = vector.multi_reduction <add>, %400, %cst_90 [1] : vector<16x64xf32> to vector<16xf32>
    %402 = vector.shape_cast %401 : vector<16xf32> to vector<16x1xf32>
    %cst_91 = arith.constant dense<0.000000e+00> : vector<1xf32>
    %403 = vector.multi_reduction <add>, %402, %cst_91 [0] : vector<16x1xf32> to vector<1xf32>
    %404 = vector.shape_cast %403 : vector<1xf32> to vector<1x1xf32>
    %cst_92 = arith.constant 1.000000e-24 : f32
    %405 = vector.broadcast %cst_92 : f32 to vector<1x1xf32>
    %406 = arith.maximumf %404, %405 : vector<1x1xf32>
    %407 = math.rsqrt %406 : vector<1x1xf32>
    %408 = vector.broadcast %407 : vector<1x1xf32> to vector<16x64xf32>
    %409 = arith.mulf %399, %408 : vector<16x64xf32>
    %cst_93 = arith.constant dense<0.000000e+00> : vector<16x512xf32>
    %410 = tpu.matmul %409, %382, %cst_93 {dimension_numbers = #tpu.dot_dimension_numbers<[1], [0], [0], [1], [0, 0, 1, 1], [], []>} : vector<16x64xf32>, vector<64x512xf32>, vector<16x512xf32> -> vector<16x512xf32>
    %411 = vector.broadcast %383 : vector<1x512xf32> to vector<16x512xf32>
    %412 = arith.addf %410, %411 : vector<16x512xf32>
    %cst_94 = arith.constant 0.000000e+00 : f32
    %413 = vector.broadcast %cst_94 : f32 to vector<16x512xf32>
    %414 = arith.maximumf %412, %413 : vector<16x512xf32>
    %cst_95 = arith.constant dense<0.000000e+00> : vector<16x2xf32>
    %415 = tpu.matmul %414, %384, %cst_95 {dimension_numbers = #tpu.dot_dimension_numbers<[1], [0], [0], [1], [0, 0, 1, 1], [], []>} : vector<16x512xf32>, vector<512x2xf32>, vector<16x2xf32> -> vector<16x2xf32>
    %416 = vector.broadcast %385 : vector<1x2xf32> to vector<16x2xf32>
    %417 = arith.addf %415, %416 : vector<16x2xf32>
    %cst_96 = arith.constant dense<0xFF800000> : vector<2xf32>
    %418 = vector.multi_reduction <maximumf>, %417, %cst_96 [0] : vector<16x2xf32> to vector<2xf32>
    %419 = vector.shape_cast %418 : vector<2xf32> to vector<1x2xf32>
    %420 = vector.broadcast %419 : vector<1x2xf32> to vector<16x2xf32>
    %421 = arith.subf %417, %420 : vector<16x2xf32>
    %422 = math.exp %421 : vector<16x2xf32>
    %cst_97 = arith.constant dense<0.000000e+00> : vector<2xf32>
    %423 = vector.multi_reduction <add>, %422, %cst_97 [0] : vector<16x2xf32> to vector<2xf32>
    %424 = vector.shape_cast %423 : vector<2xf32> to vector<1x2xf32>
    %425 = tpu.reciprocal %424 {approx = true} : vector<1x2xf32> -> vector<1x2xf32>
    %426 = vector.broadcast %425 : vector<1x2xf32> to vector<16x2xf32>
    %427 = arith.mulf %422, %426 : vector<16x2xf32>
    %428 = vector.extract_strided_slice %375 {offsets = [0, 0], sizes = [16, 64], strides = [1, 1]} : vector<32x64xf32> to vector<16x64xf32>
    %429 = vector.extract_strided_slice %427 {offsets = [0, 0], sizes = [16, 1], strides = [1, 1]} : vector<16x2xf32> to vector<16x1xf32>
    %430 = vector.broadcast %429 : vector<16x1xf32> to vector<16x64xf32>
    %431 = arith.mulf %430, %428 : vector<16x64xf32>
    %cst_98 = arith.constant dense<0.000000e+00> : vector<64xf32>
    %432 = vector.multi_reduction <add>, %431, %cst_98 [0] : vector<16x64xf32> to vector<64xf32>
    %433 = vector.shape_cast %432 : vector<64xf32> to vector<1x64xf32>
    %c0_99 = arith.constant 0 : index
    %c0_100 = arith.constant 0 : index
    %c0_101 = arith.constant 0 : index
    %434 = vector.load %arg24[%c0_99, %c0_100, %c0_101] : memref<2x2x64xf32, #tpu.memory_space<vmem>>, vector<1x1x64xf32>
    %435 = vector.shape_cast %434 : vector<1x1x64xf32> to vector<1x64xf32>
    %436 = vector.shape_cast %433 : vector<1x64xf32> to vector<1x1x64xf32>
    tpu.vector_store %arg24[%c0_99, %c0_100, %c0_101], %436 {strides = array<i32>} : memref<2x2x64xf32, #tpu.memory_space<vmem>>, vector<1x1x64xf32>,
    %437 = vector.extract_strided_slice %427 {offsets = [0, 1], sizes = [16, 1], strides = [1, 1]} : vector<16x2xf32> to vector<16x1xf32>
    %438 = vector.broadcast %437 : vector<16x1xf32> to vector<16x64xf32>
    %439 = arith.mulf %438, %428 : vector<16x64xf32>
    %cst_102 = arith.constant dense<0.000000e+00> : vector<64xf32>
    %440 = vector.multi_reduction <add>, %439, %cst_102 [0] : vector<16x64xf32> to vector<64xf32>
    %441 = vector.shape_cast %440 : vector<64xf32> to vector<1x64xf32>
    %c0_103 = arith.constant 0 : index
    %c1 = arith.constant 1 : index
    %c0_104 = arith.constant 0 : index
    %442 = vector.load %arg24[%c0_103, %c1, %c0_104] : memref<2x2x64xf32, #tpu.memory_space<vmem>>, vector<1x1x64xf32>
    %443 = vector.shape_cast %442 : vector<1x1x64xf32> to vector<1x64xf32>
    %444 = vector.shape_cast %441 : vector<1x64xf32> to vector<1x1x64xf32>
    tpu.vector_store %arg24[%c0_103, %c1, %c0_104], %444 {strides = array<i32>} : memref<2x2x64xf32, #tpu.memory_space<vmem>>, vector<1x1x64xf32>,
    %445 = vector.extract_strided_slice %380 {offsets = [16, 0], sizes = [16, 128], strides = [1, 1]} : vector<32x128xf32> to vector<16x128xf32>
    %446 = vector.extract_strided_slice %372 {offsets = [1, 0], sizes = [1, 128], strides = [1, 1]} : vector<2x128xf32> to vector<1x128xf32>
    %447 = vector.broadcast %446 : vector<1x128xf32> to vector<16x128xf32>
    %448 = arith.mulf %445, %447 : vector<16x128xf32>
    %cst_105 = arith.constant dense<0.000000e+00> : vector<16x64xf32>
    %449 = tpu.matmul %448, %381, %cst_105 {dimension_numbers = #tpu.dot_dimension_numbers<[1], [0], [0], [1], [0, 0, 1, 1], [], []>} : vector<16x128xf32>, vector<128x64xf32>, vector<16x64xf32> -> vector<16x64xf32>
    %cst_106 = arith.constant 0.000000e+00 : f32
    %450 = vector.broadcast %cst_106 : f32 to vector<16x64xf32>
    %451 = arith.maximumf %449, %450 : vector<16x64xf32>
    %452 = math.sqrt %451 : vector<16x64xf32>
    %cst_107 = arith.constant 0.000000e+00 : f32
    %453 = vector.broadcast %cst_107 : f32 to vector<16x64xf32>
    %454 = arith.subf %453, %449 : vector<16x64xf32>
    %cst_108 = arith.constant 0.000000e+00 : f32
    %455 = vector.broadcast %cst_108 : f32 to vector<16x64xf32>
    %456 = arith.maximumf %454, %455 : vector<16x64xf32>
    %457 = math.sqrt %456 : vector<16x64xf32>
    %458 = arith.subf %452, %457 : vector<16x64xf32>
    %459 = arith.mulf %458, %458 : vector<16x64xf32>
    %cst_109 = arith.constant dense<0.000000e+00> : vector<16xf32>
    %460 = vector.multi_reduction <add>, %459, %cst_109 [1] : vector<16x64xf32> to vector<16xf32>
    %461 = vector.shape_cast %460 : vector<16xf32> to vector<16x1xf32>
    %cst_110 = arith.constant dense<0.000000e+00> : vector<1xf32>
    %462 = vector.multi_reduction <add>, %461, %cst_110 [0] : vector<16x1xf32> to vector<1xf32>
    %463 = vector.shape_cast %462 : vector<1xf32> to vector<1x1xf32>
    %cst_111 = arith.constant 1.000000e-24 : f32
    %464 = vector.broadcast %cst_111 : f32 to vector<1x1xf32>
    %465 = arith.maximumf %463, %464 : vector<1x1xf32>
    %466 = math.rsqrt %465 : vector<1x1xf32>
    %467 = vector.broadcast %466 : vector<1x1xf32> to vector<16x64xf32>
    %468 = arith.mulf %458, %467 : vector<16x64xf32>
    %cst_112 = arith.constant dense<0.000000e+00> : vector<16x512xf32>
    %469 = tpu.matmul %468, %382, %cst_112 {dimension_numbers = #tpu.dot_dimension_numbers<[1], [0], [0], [1], [0, 0, 1, 1], [], []>} : vector<16x64xf32>, vector<64x512xf32>, vector<16x512xf32> -> vector<16x512xf32>
    %470 = vector.broadcast %383 : vector<1x512xf32> to vector<16x512xf32>
    %471 = arith.addf %469, %470 : vector<16x512xf32>
    %cst_113 = arith.constant 0.000000e+00 : f32
    %472 = vector.broadcast %cst_113 : f32 to vector<16x512xf32>
    %473 = arith.maximumf %471, %472 : vector<16x512xf32>
    %cst_114 = arith.constant dense<0.000000e+00> : vector<16x2xf32>
    %474 = tpu.matmul %473, %384, %cst_114 {dimension_numbers = #tpu.dot_dimension_numbers<[1], [0], [0], [1], [0, 0, 1, 1], [], []>} : vector<16x512xf32>, vector<512x2xf32>, vector<16x2xf32> -> vector<16x2xf32>
    %475 = vector.broadcast %385 : vector<1x2xf32> to vector<16x2xf32>
    %476 = arith.addf %474, %475 : vector<16x2xf32>
    %cst_115 = arith.constant dense<0xFF800000> : vector<2xf32>
    %477 = vector.multi_reduction <maximumf>, %476, %cst_115 [0] : vector<16x2xf32> to vector<2xf32>
    %478 = vector.shape_cast %477 : vector<2xf32> to vector<1x2xf32>
    %479 = vector.broadcast %478 : vector<1x2xf32> to vector<16x2xf32>
    %480 = arith.subf %476, %479 : vector<16x2xf32>
    %481 = math.exp %480 : vector<16x2xf32>
    %cst_116 = arith.constant dense<0.000000e+00> : vector<2xf32>
    %482 = vector.multi_reduction <add>, %481, %cst_116 [0] : vector<16x2xf32> to vector<2xf32>
    %483 = vector.shape_cast %482 : vector<2xf32> to vector<1x2xf32>
    %484 = tpu.reciprocal %483 {approx = true} : vector<1x2xf32> -> vector<1x2xf32>
    %485 = vector.broadcast %484 : vector<1x2xf32> to vector<16x2xf32>
    %486 = arith.mulf %481, %485 : vector<16x2xf32>
    %487 = vector.extract_strided_slice %375 {offsets = [16, 0], sizes = [16, 64], strides = [1, 1]} : vector<32x64xf32> to vector<16x64xf32>
    %488 = vector.extract_strided_slice %486 {offsets = [0, 0], sizes = [16, 1], strides = [1, 1]} : vector<16x2xf32> to vector<16x1xf32>
    %489 = vector.broadcast %488 : vector<16x1xf32> to vector<16x64xf32>
    %490 = arith.mulf %489, %487 : vector<16x64xf32>
    %cst_117 = arith.constant dense<0.000000e+00> : vector<64xf32>
    %491 = vector.multi_reduction <add>, %490, %cst_117 [0] : vector<16x64xf32> to vector<64xf32>
    %492 = vector.shape_cast %491 : vector<64xf32> to vector<1x64xf32>
    %c1_118 = arith.constant 1 : index
    %c0_119 = arith.constant 0 : index
    %c0_120 = arith.constant 0 : index
    %493 = vector.load %arg24[%c1_118, %c0_119, %c0_120] : memref<2x2x64xf32, #tpu.memory_space<vmem>>, vector<1x1x64xf32>
    %494 = vector.shape_cast %493 : vector<1x1x64xf32> to vector<1x64xf32>
    %495 = vector.shape_cast %492 : vector<1x64xf32> to vector<1x1x64xf32>
    tpu.vector_store %arg24[%c1_118, %c0_119, %c0_120], %495 {strides = array<i32>} : memref<2x2x64xf32, #tpu.memory_space<vmem>>, vector<1x1x64xf32>,
    %496 = vector.extract_strided_slice %486 {offsets = [0, 1], sizes = [16, 1], strides = [1, 1]} : vector<16x2xf32> to vector<16x1xf32>
    %497 = vector.broadcast %496 : vector<16x1xf32> to vector<16x64xf32>
    %498 = arith.mulf %497, %487 : vector<16x64xf32>
    %cst_121 = arith.constant dense<0.000000e+00> : vector<64xf32>
    %499 = vector.multi_reduction <add>, %498, %cst_121 [0] : vector<16x64xf32> to vector<64xf32>
    %500 = vector.shape_cast %499 : vector<64xf32> to vector<1x64xf32>
    %c1_122 = arith.constant 1 : index
    %c1_123 = arith.constant 1 : index
    %c0_124 = arith.constant 0 : index
    %501 = vector.load %arg24[%c1_122, %c1_123, %c0_124] : memref<2x2x64xf32, #tpu.memory_space<vmem>>, vector<1x1x64xf32>
    %502 = vector.shape_cast %501 : vector<1x1x64xf32> to vector<1x64xf32>
    %503 = vector.shape_cast %500 : vector<1x64xf32> to vector<1x1x64xf32>
    tpu.vector_store %arg24[%c1_122, %c1_123, %c0_124], %503 {strides = array<i32>} : memref<2x2x64xf32, #tpu.memory_space<vmem>>, vector<1x1x64xf32>,
    %c0_125 = arith.constant 0 : index
    %c0_126 = arith.constant 0 : index
    %c0_127 = arith.constant 0 : index
    %504 = vector.load %arg24[%c0_125, %c0_126, %c0_127] : memref<2x2x64xf32, #tpu.memory_space<vmem>>, vector<2x2x64xf32>
    %c0_128 = arith.constant 0 : index
    %c0_129 = arith.constant 0 : index
    %505 = vector.load %arg18[%c0_128, %c0_129] : memref<128x256xf32, #tpu.memory_space<vmem>>, vector<128x256xf32>
    %506 = vector.extract_strided_slice %504 {offsets = [0, 0, 0], sizes = [2, 1, 64], strides = [1, 1, 1]} : vector<2x2x64xf32> to vector<2x1x64xf32>
    %507 = vector.shape_cast %506 : vector<2x1x64xf32> to vector<2x64xf32>
    %508 = vector.extract_strided_slice %505 {offsets = [0, 0], sizes = [64, 256], strides = [1, 1]} : vector<128x256xf32> to vector<64x256xf32>
    %cst_130 = arith.constant dense<0.000000e+00> : vector<2x256xf32>
    %509 = tpu.matmul %507, %508, %cst_130 {dimension_numbers = #tpu.dot_dimension_numbers<[1], [0], [0], [1], [0, 0, 1, 1], [], []>} : vector<2x64xf32>, vector<64x256xf32>, vector<2x256xf32> -> vector<2x256xf32>
    %510 = vector.extract_strided_slice %504 {offsets = [0, 1, 0], sizes = [2, 1, 64], strides = [1, 1, 1]} : vector<2x2x64xf32> to vector<2x1x64xf32>
    %511 = vector.shape_cast %510 : vector<2x1x64xf32> to vector<2x64xf32>
    %512 = vector.extract_strided_slice %505 {offsets = [64, 0], sizes = [64, 256], strides = [1, 1]} : vector<128x256xf32> to vector<64x256xf32>
    %cst_131 = arith.constant dense<0.000000e+00> : vector<2x256xf32>
    %513 = tpu.matmul %511, %512, %cst_131 {dimension_numbers = #tpu.dot_dimension_numbers<[1], [0], [0], [1], [0, 0, 1, 1], [], []>} : vector<2x64xf32>, vector<64x256xf32>, vector<2x256xf32> -> vector<2x256xf32>
    %514 = arith.addf %509, %513 : vector<2x256xf32>
    %c0_132 = arith.constant 0 : index
    %c0_133 = arith.constant 0 : index
    %515 = vector.load %arg19[%c0_132, %c0_133] : memref<1x256xf32, #tpu.memory_space<vmem>>, vector<1x256xf32>
    %516 = vector.broadcast %515 : vector<1x256xf32> to vector<2x256xf32>
    %517 = arith.addf %514, %516 : vector<2x256xf32>
    %518 = vector.extract_strided_slice %517 {offsets = [0, 0], sizes = [2, 128], strides = [1, 1]} : vector<2x256xf32> to vector<2x128xf32>
    %519 = vector.extract_strided_slice %517 {offsets = [0, 128], sizes = [2, 128], strides = [1, 1]} : vector<2x256xf32> to vector<2x128xf32>
    %520 = arith.mulf %373, %518 : vector<2x128xf32>
    %521 = arith.mulf %374, %519 : vector<2x128xf32>
    %522 = arith.mulf %521, %520 : vector<2x128xf32>
    %cst_134 = arith.constant dense<0.000000e+00> : vector<2x64xf32>
    %523 = tpu.matmul %520, %381, %cst_134 {dimension_numbers = #tpu.dot_dimension_numbers<[1], [0], [0], [1], [0, 0, 1, 1], [], []>} : vector<2x128xf32>, vector<128x64xf32>, vector<2x64xf32> -> vector<2x64xf32>
    %cst_135 = arith.constant dense<0.000000e+00> : vector<2x64xf32>
    %524 = tpu.matmul %522, %381, %cst_135 {dimension_numbers = #tpu.dot_dimension_numbers<[1], [0], [0], [1], [0, 0, 1, 1], [], []>} : vector<2x128xf32>, vector<128x64xf32>, vector<2x64xf32> -> vector<2x64xf32>
    %cst_136 = arith.constant 0.000000e+00 : f32
    %525 = vector.broadcast %cst_136 : f32 to vector<2x64xf32>
    %526 = arith.maximumf %523, %525 : vector<2x64xf32>
    %527 = math.sqrt %526 : vector<2x64xf32>
    %cst_137 = arith.constant 0.000000e+00 : f32
    %528 = vector.broadcast %cst_137 : f32 to vector<2x64xf32>
    %529 = arith.subf %528, %523 : vector<2x64xf32>
    %cst_138 = arith.constant 0.000000e+00 : f32
    %530 = vector.broadcast %cst_138 : f32 to vector<2x64xf32>
    %531 = arith.maximumf %529, %530 : vector<2x64xf32>
    %532 = math.sqrt %531 : vector<2x64xf32>
    %533 = arith.subf %527, %532 : vector<2x64xf32>
    %534 = arith.mulf %533, %533 : vector<2x64xf32>
    %cst_139 = arith.constant dense<0.000000e+00> : vector<2xf32>
    %535 = vector.multi_reduction <add>, %534, %cst_139 [1] : vector<2x64xf32> to vector<2xf32>
    %536 = vector.shape_cast %535 : vector<2xf32> to vector<2x1xf32>
    %cst_140 = arith.constant 1.000000e-24 : f32
    %537 = vector.broadcast %cst_140 : f32 to vector<2x1xf32>
    %538 = arith.maximumf %536, %537 : vector<2x1xf32>
    %539 = math.rsqrt %538 : vector<2x1xf32>
    %540 = vector.broadcast %539 : vector<2x1xf32> to vector<2x64xf32>
    %541 = arith.mulf %533, %540 : vector<2x64xf32>
    %cst_141 = arith.constant 0.000000e+00 : f32
    %542 = vector.broadcast %cst_141 : f32 to vector<2x64xf32>
    %543 = arith.maximumf %524, %542 : vector<2x64xf32>
    %544 = math.sqrt %543 : vector<2x64xf32>
    %cst_142 = arith.constant 0.000000e+00 : f32
    %545 = vector.broadcast %cst_142 : f32 to vector<2x64xf32>
    %546 = arith.subf %545, %524 : vector<2x64xf32>
    %cst_143 = arith.constant 0.000000e+00 : f32
    %547 = vector.broadcast %cst_143 : f32 to vector<2x64xf32>
    %548 = arith.maximumf %546, %547 : vector<2x64xf32>
    %549 = math.sqrt %548 : vector<2x64xf32>
    %550 = arith.subf %544, %549 : vector<2x64xf32>
    %551 = arith.mulf %550, %550 : vector<2x64xf32>
    %cst_144 = arith.constant dense<0.000000e+00> : vector<2xf32>
    %552 = vector.multi_reduction <add>, %551, %cst_144 [1] : vector<2x64xf32> to vector<2xf32>
    %553 = vector.shape_cast %552 : vector<2xf32> to vector<2x1xf32>
    %cst_145 = arith.constant 1.000000e-24 : f32
    %554 = vector.broadcast %cst_145 : f32 to vector<2x1xf32>
    %555 = arith.maximumf %553, %554 : vector<2x1xf32>
    %556 = math.rsqrt %555 : vector<2x1xf32>
    %557 = vector.broadcast %556 : vector<2x1xf32> to vector<2x64xf32>
    %558 = arith.mulf %550, %557 : vector<2x64xf32>
    %c0_146 = arith.constant 0 : index
    %c0_147 = arith.constant 0 : index
    %559 = vector.load %arg20[%c0_146, %c0_147] : memref<128x32xf32, #tpu.memory_space<vmem>>, vector<128x32xf32>
    %560 = vector.extract_strided_slice %559 {offsets = [0, 0], sizes = [64, 32], strides = [1, 1]} : vector<128x32xf32> to vector<64x32xf32>
    %cst_148 = arith.constant dense<0.000000e+00> : vector<2x32xf32>
    %561 = tpu.matmul %541, %560, %cst_148 {dimension_numbers = #tpu.dot_dimension_numbers<[1], [0], [0], [1], [0, 0, 1, 1], [], []>} : vector<2x64xf32>, vector<64x32xf32>, vector<2x32xf32> -> vector<2x32xf32>
    %562 = vector.extract_strided_slice %559 {offsets = [64, 0], sizes = [64, 32], strides = [1, 1]} : vector<128x32xf32> to vector<64x32xf32>
    %cst_149 = arith.constant dense<0.000000e+00> : vector<2x32xf32>
    %563 = tpu.matmul %558, %562, %cst_149 {dimension_numbers = #tpu.dot_dimension_numbers<[1], [0], [0], [1], [0, 0, 1, 1], [], []>} : vector<2x64xf32>, vector<64x32xf32>, vector<2x32xf32> -> vector<2x32xf32>
    %564 = arith.addf %561, %563 : vector<2x32xf32>
    %c0_150 = arith.constant 0 : index
    %c0_151 = arith.constant 0 : index
    %565 = vector.load %arg21[%c0_150, %c0_151] : memref<1x32xf32, #tpu.memory_space<vmem>>, vector<1x32xf32>
    %566 = vector.broadcast %565 : vector<1x32xf32> to vector<2x32xf32>
    %567 = arith.addf %564, %566 : vector<2x32xf32>
    %568 = arith.negf %567 : vector<2x32xf32>
    %569 = math.exp %568 : vector<2x32xf32>
    %cst_152 = arith.constant 1.000000e+00 : f32
    %570 = vector.broadcast %cst_152 : f32 to vector<2x32xf32>
    %571 = arith.addf %570, %569 : vector<2x32xf32>
    %572 = arith.divf %570, %571 : vector<2x32xf32>
    %cst_153 = arith.constant dense<0xFF800000> : vector<2xf32>
    %573 = vector.multi_reduction <maximumf>, %572, %cst_153 [1] : vector<2x32xf32> to vector<2xf32>
    %574 = vector.shape_cast %573 : vector<2xf32> to vector<2x1xf32>
    %575 = vector.broadcast %574 : vector<2x1xf32> to vector<2x32xf32>
    %576 = arith.subf %572, %575 : vector<2x32xf32>
    %577 = math.exp %576 : vector<2x32xf32>
    %cst_154 = arith.constant dense<0.000000e+00> : vector<2xf32>
    %578 = vector.multi_reduction <add>, %577, %cst_154 [1] : vector<2x32xf32> to vector<2xf32>
    %579 = vector.shape_cast %578 : vector<2xf32> to vector<2x1xf32>
    %580 = math.log %579 : vector<2x1xf32>
    %581 = arith.addf %574, %580 : vector<2x1xf32>
    %582 = vector.broadcast %581 : vector<2x1xf32> to vector<2x32xf32>
    %583 = arith.subf %572, %582 : vector<2x32xf32>
    %c0_155 = arith.constant 0 : index
    %c0_156 = arith.constant 0 : index
    %584 = vector.load %arg22[%c0_155, %c0_156] : memref<2x32xf32, #tpu.memory_space<vmem>>, vector<2x32xf32>
    tpu.vector_store %arg22[%c0_155, %c0_156], %583 {strides = array<i32>} : memref<2x32xf32, #tpu.memory_space<vmem>>, vector<2x32xf32>,
    return
  }
}

</mosaic_0001>

<bundles_post_ra>
// kernel: _lambda_.1
= control target key start
LH: loop header
LB: loop body
LE: loop exit
PB: predicated region body
PF: predicated region fallthrough
CT: control target
= control target key end

     0   :  { %s6991_s0 = inlined_call_operand.vmem [shape: f32[16,200], index: 0, kind: input, shape index: {}]   ;;  %s6992_s1 = inlined_call_operand.vmem [shape: f32[32,64], index: 1, kind: input, shape index: {}]   ;;  %s6993_s2 = inlined_call_operand.vmem [shape: f32[128,64], index: 2, kind: input, shape index: {}]   ;;  %s6994_s3 = inlined_call_operand.vmem [shape: f32[200,128], index: 3, kind: input, shape index: {}]   ;;  %s6995_s4 = inlined_call_operand.vmem [shape: f32[32,128], index: 4, kind: input, shape index: {}]   ;;  %s6996_s5 = inlined_call_operand.vmem [shape: f32[1,128], index: 5, kind: input, shape index: {}]   ;;  %s6997_s6 = inlined_call_operand.vmem [shape: f32[32,512], index: 6, kind: input, shape index: {}]   ;;  %s6998_s7 = inlined_call_operand.vmem [shape: f32[1,512], index: 7, kind: input, shape index: {}]   ;;  %s6999_s8 = inlined_call_operand.vmem [shape: f32[512,2], index: 8, kind: input, shape index: {}]   ;;  %s7000_s9 = inlined_call_operand.vmem [shape: f32[1,2], index: 9, kind: input, shape index: {}]   ;;  %s7001_s10 = inlined_call_operand.vmem [shape: f32[64,384], index: 10, kind: input, shape index: {}]   ;;  %s7002_s11 = inlined_call_operand.vmem [shape: f32[1,384], index: 11, kind: input, shape index: {}]   ;;  %s7003_s12 = inlined_call_operand.vmem [shape: f32[64,128], index: 12, kind: input, shape index: {}]   ;;  %s7004_s13 = inlined_call_operand.vmem [shape: f32[1,128], index: 13, kind: input, shape index: {}]   ;;  %s7005_s14 = inlined_call_operand.vmem [shape: f32[64,512], index: 14, kind: input, shape index: {}]   ;;  %s7006_s15 = inlined_call_operand.vmem [shape: f32[1,512], index: 15, kind: input, shape index: {}]   ;;  %s7007_s16 = inlined_call_operand.vmem [shape: f32[512,2], index: 16, kind: input, shape index: {}]   ;;  %s7008_s17 = inlined_call_operand.vmem [shape: f32[1,2], index: 17, kind: input, shape index: {}]   ;;  %s7009_s18 = inlined_call_operand.vmem [shape: f32[128,256], index: 18, kind: input, shape index: {}]   ;;  %s7010_s19 = inlined_call_operand.vmem [shape: f32[1,256], index: 19, kind: input, shape index: {}]   ;;  %s7011_s20 = inlined_call_operand.vmem [shape: f32[128,32], index: 20, kind: input, shape index: {}]   ;;  %s7012_s21 = inlined_call_operand.vmem [shape: f32[1,32], index: 21, kind: input, shape index: {}]   ;;  %s7013_s22 = inlined_call_operand.hbm [shape: f32[2,32], index: 22, kind: output, shape index: {}]  }
   0x1   :  { %7095 = sst [smem:[#allocation78_spill]] %s6991_s0 }
   0x2   :  { %7096 = sst [smem:[#allocation79_spill]] %s6992_s1 }
   0x3   :  { %7097 = sst [smem:[#allocation80_spill]] %s6993_s2 }
   0x4   :  { %7098 = sst [smem:[#allocation81_spill]] %s6994_s3 }
   0x5   :  { %7099 = sst [smem:[#allocation82_spill]] %s6995_s4 }
   0x6   :  { %7100 = sst [smem:[#allocation83_spill]] %s6996_s5 }
   0x7   :  { %7101 = sst [smem:[#allocation84_spill]] %s6997_s6 }
   0x8   :  { %s7102_s29 = sld [smem:[#allocation81_spill]]  ;;  %v7024_v1 = vmov 0.0   ;;  %vm4903_vm0 = vmmov 0   ;;  %vm108_vm1 = vcmask 588800  }
   0x9   :  { %115 = vmatprep.subr.mxu0 %v7024_v1  ;;  %4408 = vmatprep.subr.mxu1 %v7024_v1  ;;  %s7103_s2 = sld [smem:[#allocation78_spill]] }
   0xa   :  { %4416 = vmatprep.mubr.msk.f32.mxu1 %vm4903_vm0, %v7024_v1  ;;  %s7104_s4 = sld [smem:[#allocation82_spill]] }
   0xe   :  { %v91_v0 = vld [vmem:[%s7102_s29 + $0x78] sm:$0xff]  ;;  %v90_v2 = vld [vmem:[%s7102_s29 + $0x70] sm:$0xff]  ;;  %v89_v3 = vld [vmem:[%s7102_s29 + $0x68] sm:$0xff] }
   0xf   :  { %116 = vmatpush1.msra.mxu0 %v91_v0  ;;  %v88_v4 = vld [vmem:[%s7102_s29 + $0x60] sm:$0xff]  ;;  %v87_v5 = vld [vmem:[%s7102_s29 + $0x58] sm:$0xff]  ;;  %v73_v6 = vld [vmem:[%s7103_s2 + $0x8] sm:$0xff] }
  0x10   :  { %117 = vmatprep.subr.mxu0 %v7024_v1  ;;  %v86_v7 = vld [vmem:[%s7102_s29 + $0x50] sm:$0xff]  ;;  %3973 = vmatprep.mubr.msk.f32.mxu0 %vm108_vm1, %v73_v6  ;;  %v5057_v8 = vld [vmem:[%s7104_s4 + $0x18] sm:$0xff]  ;;  %v85_v9 = vld [vmem:[%s7102_s29 + $0x48] sm:$0xff] }
  0x11   :  { %118 = vmatpush1.msra.mxu0 %v90_v2  ;;  %4409 = vmatpush3.msra.mxu1 %v5057_v8  ;;  %v5067_v10 = vld [vmem:[%s7104_s4 + $0x10] sm:$0xff] }
  0x12   :  { %119 = vmatprep.subr.mxu0 %v7024_v1  ;;  %4410 = vmatprep.subr.mxu1 %v7024_v1 }
  0x13   :  { %120 = vmatpush1.msra.mxu0 %v89_v3 }
  0x14   :  { %121 = vmatprep.subr.mxu0 %v7024_v1 }
  0x15   :  { %122 = vmatpush1.msra.mxu0 %v88_v4 }
  0x16   :  { %123 = vmatprep.subr.mxu0 %v7024_v1 }
  0x17   :  { %124 = vmatpush1.msra.mxu0 %v87_v5 }
  0x18   :  { %125 = vmatprep.subr.mxu0 %v7024_v1 }
  0x19   :  { %27 = vsyncpa [#allocation5], 0  ;;  %126 = vmatpush1.msra.mxu0 %v86_v7  ;;  %4411 = vmatpush3.msra.mxu1 %v5067_v10  ;;  %v84_v11 = vld [vmem:[%s7102_s29 + $0x40] sm:$0xff]  ;;  %v5078_v12 = vld [vmem:[%s7104_s4 + $0x8] sm:$0xff]  ;;  %s7105_s30 = sld [smem:[#allocation83_spill]]  ;;  %s4904_s0 = smov 64  }
  0x1a   :  { %127 = vmatprep.subr.mxu0 %v7024_v1  ;;  %4412 = vmatprep.subr.mxu1 %v7024_v1  ;;  %v83_v13 = vld [vmem:[%s7102_s29 + $0x38] sm:$0xff]  ;;  %v5089_v14 = vld [vmem:[%s7104_s4] sm:$0xff]  ;;  %v82_v15 = vld [vmem:[%s7102_s29 + $0x30] sm:$0xff]  ;;  %s4905_s23 = smov 32   ;;  %vm297_vm2 = vcmask 254976   ;;  %vm194_vm3 = vcmask 261120  }
  0x1b   :  { %128 = vmatpush1.msra.mxu0 %v85_v9  ;;  %4413 = vmatpush3.msra.mxu1 %v5078_v12  ;;  %v81_v16 = vld [vmem:[%s7102_s29 + $0x28] sm:$0xff]  ;;  %v80_v17 = vld [vmem:[%s7102_s29 + $0x20] sm:$0xff]  ;;  %v79_v18 = vld [vmem:[%s7102_s29 + $0x18] sm:$0xff]  ;;  %vm406_vm4 = vcmask 257026   ;;  %vm630_vm5 = vcmask 261126   ;;  %s7106_s4 = sld [smem:[#allocation84_spill]] }
  0x1c   :  { %129 = vmatprep.subr.mxu0 %v7024_v1  ;;  %4414 = vmatprep.subr.mxu1 %v7024_v1  ;;  %v78_v19 = vld [vmem:[%s7102_s29 + $0x10] sm:$0xff]  ;;  %v77_v20 = vld [vmem:[%s7102_s29 + $0x8] sm:$0xff]  ;;  %v76_v21 = vld [vmem:[%s7102_s29] sm:$0xff]  ;;  %vm518_vm6 = vcmask 259076   ;;  %vm2085_vm7 = vcmask 523264  }
  0x1d   :  { %130 = vmatpush1.msra.mxu0 %v84_v11  ;;  %4415 = vmatpush3.msra.mxu1 %v5089_v14  ;;  %v100_v22 = vld [vmem:[%s7102_s29 + $0xc0] sm:$0xff]  ;;  %v99_v23 = vld [vmem:[%s7102_s29 + $0xb8] sm:$0xff]  ;;  %v98_v24 = vld [vmem:[%s7102_s29 + $0xb0] sm:$0xff] }
  0x1e   :  { %131 = vmatprep.subr.mxu0 %v7024_v1  ;;  %4419 = vmatprep.subr.mxu1 %v7024_v1  ;;  %v97_v25 = vld [vmem:[%s7102_s29 + $0xa8] sm:$0xff]  ;;  %v96_v26 = vld [vmem:[%s7102_s29 + $0xa0] sm:$0xff]  ;;  %v95_v27 = vld [vmem:[%s7102_s29 + $0x98] sm:$0xff] }
  0x1f   :  { %132 = vmatpush1.msra.mxu0 %v83_v13  ;;  %v94_v28 = vld [vmem:[%s7102_s29 + $0x90] sm:$0xff]  ;;  %v93_v29 = vld [vmem:[%s7102_s29 + $0x88] sm:$0xff]  ;;  %v92_v30 = vld [vmem:[%s7102_s29 + $0x80] sm:$0xff] }
  0x20   :  { %133 = vmatprep.subr.mxu0 %v7024_v1  ;;  %v72_v31 = vld [vmem:[%s7103_s2] sm:$0xff]  ;;  %v75_v32 = vld [vmem:[%s7103_s2 + $0x18] sm:$0xff]  ;;  %v74_v33 = vld [vmem:[%s7103_s2 + $0x10] sm:$0xff] }
  0x21   :  { %134 = vmatpush1.msra.mxu0 %v82_v15  ;;  %v3972_v36 = vld [vmem:[%s7105_s30] ss:$0 sm:$0xff] }
  0x22   :  { %135 = vmatprep.subr.mxu0 %v7024_v1 }
  0x23   :  { %136 = vmatpush1.msra.mxu0 %v81_v16 }
  0x24   :  { %137 = vmatprep.subr.mxu0 %v7024_v1 }
  0x25   :  { %138 = vmatpush1.msra.mxu0 %v80_v17 }
  0x26   :  { %139 = vmatprep.subr.mxu0 %v7024_v1 }
  0x27   :  { %140 = vmatpush1.msra.mxu0 %v79_v18 }
  0x28   :  { %141 = vmatprep.subr.mxu0 %v7024_v1 }
  0x29   :  { %142 = vmatpush1.msra.mxu0 %v78_v19 }
  0x2a   :  { %143 = vmatprep.subr.mxu0 %v7024_v1 }
  0x2b   :  { %144 = vmatpush1.msra.mxu0 %v77_v20 }
  0x2c   :  { %145 = vmatprep.subr.mxu0 %v7024_v1 }
  0x2d   :  { %146 = vmatpush1.msra.mxu0 %v76_v21 }
  0x2e   :  { %161 = vmatprep.subr.mxu0 %v7024_v1 }
  0x2f   :  { %162 = vmatpush2.msra.mxu0 %v100_v22 }
  0x30   :  { %163 = vmatprep.subr.mxu0 %v7024_v1 }
  0x31   :  { %164 = vmatpush2.msra.mxu0 %v99_v23 }
  0x32   :  { %165 = vmatprep.subr.mxu0 %v7024_v1 }
  0x33   :  { %166 = vmatpush2.msra.mxu0 %v98_v24 }
  0x34   :  { %167 = vmatprep.subr.mxu0 %v7024_v1 }
  0x35   :  { %168 = vmatpush2.msra.mxu0 %v97_v25 }
  0x36   :  { %169 = vmatprep.subr.mxu0 %v7024_v1 }
  0x37   :  { %170 = vmatpush2.msra.mxu0 %v96_v26 }
  0x38   :  { %171 = vmatprep.subr.mxu0 %v7024_v1 }
  0x39   :  { %172 = vmatpush2.msra.mxu0 %v95_v27 }
  0x3a   :  { %173 = vmatprep.subr.mxu0 %v7024_v1 }
  0x3b   :  { %174 = vmatpush2.msra.mxu0 %v94_v28 }
  0x3c   :  { %175 = vmatprep.subr.mxu0 %v7024_v1 }
  0x3d   :  { %176 = vmatpush2.msra.mxu0 %v93_v29 }
  0x3e   :  { %177 = vmatprep.subr.mxu0 %v7024_v1 }
  0x3f   :  { %178 = vmatpush2.msra.mxu0 %v92_v30 }
  0x40   :  { %180 = vmatmul.mubr.f32.vlgmr.msra.gmra.mxu0 %v72_v31  ;;  %4397 = vmatprep.subr.mxu0 %v7024_v1 }
  0x41   :  { %4398 = vmatpush3.msra.mxu0 %v5057_v8  ;;  %3974 = vmatprep.mubr.msk.f32.mxu0 %vm108_vm1, %v75_v32  ;;  %vm2778_vm1 = vcmask 15360  }
  0x42   :  { %4399 = vmatprep.subr.mxu0 %v7024_v1 }
  0x43   :  { %4400 = vmatpush3.msra.mxu0 %v5067_v10 }
  0x44   :  { %185 = vmatmul.mubr.f32.gmra.mxu0 %v74_v33  ;;  %4401 = vmatprep.subr.mxu0 %v7024_v1 }
  0x45   :  { %4402 = vmatpush3.msra.mxu0 %v5078_v12  ;;  %4405 = vmatprep.mubr.msk.f32.mxu0 %vm4903_vm0, %v7024_v1 }
  0x46   :  { %4403 = vmatprep.subr.mxu0 %v7024_v1 }
  0x47   :  { %4404 = vmatpush3.msra.mxu0 %v5089_v14 }
  0x48   :  { %4406 = vmatmul.mubr.f32.vlgmr.msra.gmra.mxu0 %v7024_v1  ;;  %4474 = vmatprep.subr.mxu0 %v7024_v1 }
  0x49   :  { %4475 = vmatpush3.msra.mxu0 %v5057_v8  ;;  %4482 = vmatprep.mubr.msk.f32.mxu0 %vm4903_vm0, %v7024_v1 }
  0x4a   :  { %4476 = vmatprep.subr.mxu0 %v7024_v1 }
  0x4b   :  { %4477 = vmatpush3.msra.mxu0 %v5067_v10 }
  0x4c   :  { %4478 = vmatprep.subr.mxu0 %v7024_v1 }
  0x4d   :  { %4479 = vmatpush3.msra.mxu0 %v5078_v12 }
  0x4e   :  { %4480 = vmatprep.subr.mxu0 %v7024_v1 }
  0x4f   :  { %4481 = vmatpush3.msra.mxu0 %v5089_v14 }
 0x100   :  { %v181_v34 = vpop.f32.mrf.mxu0 }
 0x101   :  { %v5195_v40 = vadd.f32 %v3972_v36, %v181_v34 }
 0x102   :  { %v183_v35 = vpop.f32.mrf.mxu0 }
 0x104   :  { %v186_v37 = vpop.f32.mrf.mxu0 }
 0x105   :  { %v5193_v38 = vadd.f32 %v3972_v36, %v186_v37 }
 0x106   :  { %v188_v39 = vpop.f32.mrf.mxu0 }
 0x108   :  { %v264_v41 = vpop.f32.mrf.mxu0 }
 0x109   :  { %v268_v42 = vadd.f32 %v264_v41, %v5195_v40 }
 0x10a   :  { %v4407_v43 = vpop.f32.mrf.mxu0 }
 0x10b   :  { %4726 = vtanh.f32 %v268_v42  ;;  %v3975_v45 = vmul.f32 -1.442695, %v268_v42 }
 0x10d   :  { %4728 = vpow2.f32 %v3975_v45 }
 0x118   :  { %v4727_v44 = vpop.eup %4726 }
 0x119   :  { %278 = vrot.lane.b32.xlu0 %v4727_v44, %s4904_s0 }
 0x11a   :  { %v4729_v46 = vpop.eup %4728 }
 0x11b   :  { %v272_v47 = vadd.f32 1.0, %v4729_v46 }
 0x11d   :  { %4730 = vrcp.f32 %v272_v47 }
 0x12a   :  { %v4731_v48 = vpop.eup %4730 }
 0x12b   :  { %v276_v51 = vmul.f32 0.0, %v4731_v48 }
 0x18b   :  { %v279_v49 = vpop.permute.xlu0 %278 }
 0x18c   :  { %v281_v50 = vmul.f32 %v4731_v48, %v279_v49 }
 0x18e   :  { %283 = vrot.lane.b32.xlu0 %v281_v50, %s4905_s23 }
 0x200   :  { %v284_v52 = vpop.permute.xlu0 %283 }
 0x201   :  { %v286_v53 = vadd.f32 %v284_v52, %v276_v51 }
 0x203   :  { %4732 = vtanh.f32 %v286_v53  ;;  %v383_v6 = vrot.slane %v286_v53, 6 }
 0x210   :  { %v4733_v54 = vpop.eup %4732 }
 0x211   :  { %289 = vrot.lane.b32.xlu1 %v4733_v54, %s4904_s0 }
 0x283   :  { %v290_v55 = vpop.permute.xlu1 %289 }
 0x284   :  { %v5201_v56 = vmul.f32 %v4731_v48, %v290_v55 }
 0x286   :  { %294 = vrot.lane.b32.xlu1 %v5201_v56, %s4905_s23 }
 0x2f8   :  { %v295_v57 = vpop.permute.xlu1 %294 }
 0x2f9   :  { %298 = vst.msk [vmem:[#allocation2] sm:$0x3] %vm297_vm2, %v295_v57  ;;  %4417 = vmatmul.mubr.msk.f32.vlgmr.msra.gmra.mxu1 %vm194_vm3, %v295_v57 }
 0x2fa   :  { %4420 = vmatpush3.msra.mxu1 %v5057_v8  ;;  %4427 = vmatprep.mubr.msk.f32.mxu1 %vm4903_vm0, %v7024_v1 }
 0x2fb   :  { %4421 = vmatprep.subr.mxu1 %v7024_v1 }
 0x2fc   :  { %4422 = vmatpush3.msra.mxu1 %v5067_v10 }
 0x2fd   :  { %4423 = vmatprep.subr.mxu1 %v7024_v1 }
 0x2fe   :  { %4424 = vmatpush3.msra.mxu1 %v5078_v12 }
 0x2ff   :  { %4425 = vmatprep.subr.mxu1 %v7024_v1 }
 0x300   :  { %4426 = vmatpush3.msra.mxu1 %v5089_v14 }
 0x301   :  { %4430 = vmatprep.subr.mxu1 %v7024_v1 }
 0x3b9   :  { %v367_v58 = vpop.f32.mrf.mxu1 }
 0x3ba   :  { %v372_v59 = vrot.slane %v367_v58, 6 }
 0x3bb   :  { %v4418_v60 = vpop.f32.mrf.mxu1 }
 0x3bc   :  { %v374_v61 = vadd.f32 %v372_v59, %v5195_v40 }
 0x3be   :  { %4734 = vtanh.f32 %v374_v61  ;;  %v3977_v63 = vmul.f32 -1.442695, %v374_v61 }
 0x3c0   :  { %4736 = vpow2.f32 %v3977_v63 }
 0x3cb   :  { %v4735_v62 = vpop.eup %4734 }
 0x3cc   :  { %387 = vrot.lane.b32.xlu0 %v4735_v62, %s4904_s0 }
 0x3cd   :  { %v4737_v0 = vpop.eup %4736 }
 0x3ce   :  { %v378_v2 = vadd.f32 1.0, %v4737_v0 }
 0x3d0   :  { %4738 = vrcp.f32 %v378_v2 }
 0x3dd   :  { %v4739_v3 = vpop.eup %4738 }
 0x3de   :  { %v385_v7 = vmul.f32 %v4739_v3, %v383_v6 }
 0x43e   :  { %v388_v4 = vpop.permute.xlu0 %387 }
 0x43f   :  { %v390_v5 = vmul.f32 %v4739_v3, %v388_v4 }
 0x441   :  { %392 = vrot.lane.b32.xlu1 %v390_v5, %s4905_s23 }
 0x4b3   :  { %v393_v9 = vpop.permute.xlu1 %392 }
 0x4b4   :  { %v395_v11 = vadd.f32 %v393_v9, %v385_v7 }
 0x4b6   :  { %4740 = vtanh.f32 %v395_v11  ;;  %v495_v30 = vrot.slane %v395_v11, 6 }
 0x4c3   :  { %v4741_v13 = vpop.eup %4740 }
 0x4c4   :  { %398 = vrot.lane.b32.xlu0 %v4741_v13, %s4904_s0 }
 0x536   :  { %v399_v15 = vpop.permute.xlu0 %398 }
 0x537   :  { %v5221_v16 = vmul.f32 %v4739_v3, %v399_v15 }
 0x539   :  { %v408_v17 = vrot.slane %v5221_v16, 2 }
 0x53b   :  { %409 = vrot.lane.b32.xlu1 %v408_v17, %s4905_s23 }
 0x5ad   :  { %v410_v18 = vpop.permute.xlu1 %409 }
 0x5ae   :  { %4428 = vmatmul.mubr.msk.f32.vlgmr.msra.gmra.mxu1 %vm194_vm3, %v410_v18 }
 0x5af   :  { %4431 = vmatpush3.msra.mxu1 %v5057_v8  ;;  %4438 = vmatprep.mubr.msk.f32.mxu1 %vm4903_vm0, %v7024_v1 }
 0x5b0   :  { %4432 = vmatprep.subr.mxu1 %v7024_v1 }
 0x5b1   :  { %4433 = vmatpush3.msra.mxu1 %v5067_v10 }
 0x5b2   :  { %4434 = vmatprep.subr.mxu1 %v7024_v1 }
 0x5b3   :  { %4435 = vmatpush3.msra.mxu1 %v5078_v12 }
 0x5b4   :  { %4436 = vmatprep.subr.mxu1 %v7024_v1 }
 0x5b5   :  { %4437 = vmatpush3.msra.mxu1 %v5089_v14 }
 0x5b6   :  { %4441 = vmatprep.subr.mxu1 %v7024_v1 }
 0x66e   :  { %v479_v19 = vpop.f32.mrf.mxu1 }
 0x66f   :  { %v484_v20 = vrot.slane %v479_v19, 4 }
 0x670   :  { %v4429_v21 = vpop.f32.mrf.mxu1 }
 0x671   :  { %v486_v22 = vadd.f32 %v484_v20, %v5195_v40 }
 0x673   :  { %4742 = vtanh.f32 %v486_v22  ;;  %v3979_v24 = vmul.f32 -1.442695, %v486_v22 }
 0x675   :  { %4744 = vpow2.f32 %v3979_v24 }
 0x680   :  { %v4743_v23 = vpop.eup %4742 }
 0x681   :  { %499 = vrot.lane.b32.xlu0 %v4743_v23, %s4904_s0 }
 0x682   :  { %v4745_v25 = vpop.eup %4744 }
 0x683   :  { %v490_v26 = vadd.f32 1.0, %v4745_v25 }
 0x685   :  { %4746 = vrcp.f32 %v490_v26 }
 0x692   :  { %v4747_v27 = vpop.eup %4746 }
 0x693   :  { %v497_v31 = vmul.f32 %v4747_v27, %v495_v30 }
 0x6f3   :  { %v500_v28 = vpop.permute.xlu0 %499 }
 0x6f4   :  { %v502_v29 = vmul.f32 %v4747_v27, %v500_v28 }
 0x6f6   :  { %504 = vrot.lane.b32.xlu1 %v502_v29, %s4905_s23 }
 0x768   :  { %v505_v32 = vpop.permute.xlu1 %504 }
 0x769   :  { %v507_v33 = vadd.f32 %v505_v32, %v497_v31 }
 0x76b   :  { %4748 = vtanh.f32 %v507_v33  ;;  %v607_v52 = vrot.slane %v507_v33, 6 }
 0x778   :  { %v4749_v34 = vpop.eup %4748 }
 0x779   :  { %510 = vrot.lane.b32.xlu0 %v4749_v34, %s4904_s0 }
 0x7eb   :  { %v511_v35 = vpop.permute.xlu0 %510 }
 0x7ec   :  { %v5240_v36 = vmul.f32 %v4747_v27, %v511_v35 }
 0x7ee   :  { %v520_v37 = vrot.slane %v5240_v36, 4 }
 0x7f0   :  { %521 = vrot.lane.b32.xlu1 %v520_v37, %s4905_s23 }
 0x862   :  { %v522_v39 = vpop.permute.xlu1 %521 }
 0x863   :  { %4439 = vmatmul.mubr.msk.f32.vlgmr.msra.gmra.mxu1 %vm194_vm3, %v522_v39 }
 0x864   :  { %4442 = vmatpush3.msra.mxu1 %v5057_v8  ;;  %4449 = vmatprep.mubr.msk.f32.mxu1 %vm4903_vm0, %v7024_v1 }
 0x865   :  { %4443 = vmatprep.subr.mxu1 %v7024_v1 }
 0x866   :  { %4444 = vmatpush3.msra.mxu1 %v5067_v10 }
 0x867   :  { %4445 = vmatprep.subr.mxu1 %v7024_v1 }
 0x868   :  { %4446 = vmatpush3.msra.mxu1 %v5078_v12 }
 0x869   :  { %4447 = vmatprep.subr.mxu1 %v7024_v1 }
 0x86a   :  { %4448 = vmatpush3.msra.mxu1 %v5089_v14 }
 0x86b   :  { %4452 = vmatprep.subr.mxu1 %v7024_v1 }
 0x923   :  { %v591_v41 = vpop.f32.mrf.mxu1 }
 0x924   :  { %v596_v42 = vrot.slane %v591_v41, 2 }
 0x925   :  { %v4440_v43 = vpop.f32.mrf.mxu1 }
 0x926   :  { %v598_v44 = vadd.f32 %v596_v42, %v5195_v40 }
 0x928   :  { %4750 = vtanh.f32 %v598_v44  ;;  %v3981_v46 = vmul.f32 -1.442695, %v598_v44 }
 0x92a   :  { %4752 = vpow2.f32 %v3981_v46 }
 0x935   :  { %v4751_v45 = vpop.eup %4750 }
 0x936   :  { %611 = vrot.lane.b32.xlu0 %v4751_v45, %s4904_s0 }
 0x937   :  { %v4753_v47 = vpop.eup %4752 }
 0x938   :  { %v602_v48 = vadd.f32 1.0, %v4753_v47 }
 0x93a   :  { %4754 = vrcp.f32 %v602_v48 }
 0x947   :  { %v4755_v49 = vpop.eup %4754 }
 0x948   :  { %v609_v53 = vmul.f32 %v4755_v49, %v607_v52 }
 0x9a8   :  { %v612_v50 = vpop.permute.xlu0 %611 }
 0x9a9   :  { %v614_v51 = vmul.f32 %v4755_v49, %v612_v50 }
 0x9ab   :  { %616 = vrot.lane.b32.xlu1 %v614_v51, %s4905_s23 }
 0xa1d   :  { %v617_v54 = vpop.permute.xlu1 %616 }
 0xa1e   :  { %v619_v55 = vadd.f32 %v617_v54, %v609_v53 }
 0xa20   :  { %4756 = vtanh.f32 %v619_v55  ;;  %v716_v9 = vrot.slane %v619_v55, 6 }
 0xa2d   :  { %v4757_v40 = vpop.eup %4756 }
 0xa2e   :  { %622 = vrot.lane.b32.xlu0 %v4757_v40, %s4904_s0 }
 0xaa0   :  { %v623_v57 = vpop.permute.xlu0 %622 }
 0xaa1   :  { %v5259_v58 = vmul.f32 %v4755_v49, %v623_v57 }
 0xaa3   :  { %v632_v59 = vrot.slane %v5259_v58, 6 }
 0xaa5   :  { %633 = vrot.lane.b32.xlu1 %v632_v59, %s4905_s23 }
 0xb17   :  { %v634_v60 = vpop.permute.xlu1 %633 }
 0xb18   :  { %4450 = vmatmul.mubr.msk.f32.vlgmr.msra.gmra.mxu1 %vm194_vm3, %v634_v60 }
 0xb19   :  { %4453 = vmatpush3.msra.mxu1 %v5057_v8  ;;  %4460 = vmatprep.mubr.msk.f32.mxu1 %vm4903_vm0, %v7024_v1 }
 0xb1a   :  { %4454 = vmatprep.subr.mxu1 %v7024_v1 }
 0xb1b   :  { %4455 = vmatpush3.msra.mxu1 %v5067_v10 }
 0xb1c   :  { %4456 = vmatprep.subr.mxu1 %v7024_v1 }
 0xb1d   :  { %4457 = vmatpush3.msra.mxu1 %v5078_v12 }
 0xb1e   :  { %4458 = vmatprep.subr.mxu1 %v7024_v1 }
 0xb1f   :  { %4459 = vmatpush3.msra.mxu1 %v5089_v14 }
 0xb20   :  { %4463 = vmatprep.subr.mxu1 %v7024_v1 }
 0xbd8   :  { %v703_v61 = vpop.f32.mrf.mxu1 }
 0xbd9   :  { %v707_v62 = vadd.f32 %v703_v61, %v5193_v38 }
 0xbda   :  { %v4451_v63 = vpop.f32.mrf.mxu1 }
 0xbdb   :  { %4758 = vtanh.f32 %v707_v62  ;;  %v3983_v2 = vmul.f32 -1.442695, %v707_v62 }
 0xbdd   :  { %4760 = vpow2.f32 %v3983_v2 }
 0xbe8   :  { %v4759_v0 = vpop.eup %4758 }
 0xbe9   :  { %720 = vrot.lane.b32.xlu0 %v4759_v0, %s4904_s0 }
 0xbea   :  { %v4761_v3 = vpop.eup %4760 }
 0xbeb   :  { %v711_v4 = vadd.f32 1.0, %v4761_v3 }
 0xbed   :  { %4762 = vrcp.f32 %v711_v4 }
 0xbfa   :  { %v4763_v5 = vpop.eup %4762 }
 0xbfb   :  { %v718_v11 = vmul.f32 %v4763_v5, %v716_v9 }
 0xc5b   :  { %v721_v6 = vpop.permute.xlu0 %720 }
 0xc5c   :  { %v723_v7 = vmul.f32 %v4763_v5, %v721_v6 }
 0xc5e   :  { %725 = vrot.lane.b32.xlu1 %v723_v7, %s4905_s23 }
 0xcd0   :  { %v726_v13 = vpop.permute.xlu1 %725 }
 0xcd1   :  { %v728_v15 = vadd.f32 %v726_v13, %v718_v11 }
 0xcd3   :  { %4764 = vtanh.f32 %v728_v15 }
 0xce0   :  { %v4765_v17 = vpop.eup %4764 }
 0xce1   :  { %731 = vrot.lane.b32.xlu0 %v4765_v17, %s4904_s0 }
 0xd53   :  { %v732_v18 = vpop.permute.xlu0 %731 }
 0xd54   :  { %v5278_v19 = vmul.f32 %v4763_v5, %v732_v18  ;;  %v1085_v18 = vld [vmem:[%s7106_s4 + $0x68] sm:$0xff] }
 0xd56   :  { %736 = vrot.lane.b32.xlu1 %v5278_v19, %s4905_s23 }
 0xdc8   :  { %v737_v20 = vpop.permute.xlu1 %736 }
 0xdc9   :  { %739 = vst.msk [vmem:[#allocation2 + $0x8] sm:$0x3] %vm297_vm2, %v737_v20  ;;  %4461 = vmatmul.mubr.msk.f32.vlgmr.msra.gmra.mxu1 %vm194_vm3, %v737_v20  ;;  %v1087_v20 = vld [vmem:[%s7106_s4 + $0x78] sm:$0xff] }
 0xdca   :  { %4464 = vmatpush3.msra.mxu1 %v5057_v8  ;;  %4471 = vmatprep.mubr.msk.f32.mxu1 %vm4903_vm0, %v7024_v1 }
 0xdcb   :  { %4465 = vmatprep.subr.mxu1 %v7024_v1  ;;  %1217 = vmatprep.subr.mxu0 %v1087_v20  ;;  %v1333_v20 = vld [vmem:[%s6999_s8 + $0x1b8] sm:$0xff] }
 0xdcc   :  { %4466 = vmatpush3.msra.mxu1 %v5067_v10 }
 0xdcd   :  { %4467 = vmatprep.subr.mxu1 %v7024_v1 }
 0xdce   :  { %4468 = vmatpush3.msra.mxu1 %v5078_v12 }
 0xdcf   :  { %4469 = vmatprep.subr.mxu1 %v7024_v1 }
 0xdd0   :  { %4470 = vmatpush3.msra.mxu1 %v5089_v14  ;;  %v824_v14 = vrot.slane %v728_v15, 6 }
 0xdd1   :  { %1140 = vmatprep.subr.mxu1 %v1085_v18  ;;  %v1301_v18 = vld [vmem:[%s6999_s8 + $0xb8] sm:$0xff] }
 0xe89   :  { %v808_v21 = vpop.f32.mrf.mxu1 }
 0xe8a   :  { %v813_v22 = vrot.slane %v808_v21, 6 }
 0xe8b   :  { %v4462_v23 = vpop.f32.mrf.mxu1 }
 0xe8c   :  { %v815_v8 = vadd.f32 %v813_v22, %v5193_v38  ;;  %v1084_v22 = vld [vmem:[%s7106_s4 + $0x60] sm:$0xff]  ;;  %v1086_v23 = vld [vmem:[%s7106_s4 + $0x70] sm:$0xff] }
 0xe8e   :  { %4766 = vtanh.f32 %v815_v8  ;;  %v3985_v25 = vmul.f32 -1.442695, %v815_v8  ;;  %v1081_v8 = vld [vmem:[%s7106_s4 + $0x48] sm:$0xff] }
 0xe90   :  { %4768 = vpow2.f32 %v3985_v25  ;;  %v1080_v25 = vld [vmem:[%s7106_s4 + $0x40] sm:$0xff] }
 0xe9b   :  { %v4767_v24 = vpop.eup %4766 }
 0xe9c   :  { %828 = vrot.lane.b32.xlu0 %v4767_v24, %s4904_s0  ;;  %v1083_v24 = vld [vmem:[%s7106_s4 + $0x58] sm:$0xff] }
 0xe9d   :  { %v4769_v10 = vpop.eup %4768 }
 0xe9e   :  { %v819_v26 = vadd.f32 1.0, %v4769_v10  ;;  %v1082_v10 = vld [vmem:[%s7106_s4 + $0x50] sm:$0xff] }
 0xea0   :  { %4770 = vrcp.f32 %v819_v26  ;;  %v1077_v26 = vld [vmem:[%s7106_s4 + $0x28] sm:$0xff] }
 0xead   :  { %v4771_v27 = vpop.eup %4770 }
 0xeae   :  { %v826_v29 = vmul.f32 %v4771_v27, %v824_v14  ;;  %v1078_v14 = vld [vmem:[%s7106_s4 + $0x30] sm:$0xff] }
 0xf0e   :  { %v829_v12 = vpop.permute.xlu0 %828 }
 0xf0f   :  { %v831_v28 = vmul.f32 %v4771_v27, %v829_v12 }
 0xf11   :  { %833 = vrot.lane.b32.xlu1 %v831_v28, %s4905_s23  ;;  %v1076_v28 = vld [vmem:[%s7106_s4 + $0x20] sm:$0xff] }
 0xf83   :  { %v834_v30 = vpop.permute.xlu1 %833 }
 0xf84   :  { %v836_v31 = vadd.f32 %v834_v30, %v826_v29  ;;  %v1073_v29 = vld [vmem:[%s7106_s4 + $0x8] sm:$0xff]  ;;  %v1075_v30 = vld [vmem:[%s7106_s4 + $0x18] sm:$0xff] }
 0xf86   :  { %4772 = vtanh.f32 %v836_v31  ;;  %v935_v51 = vrot.slane %v836_v31, 6  ;;  %v1072_v31 = vld [vmem:[%s7106_s4] sm:$0xff] }
 0xf93   :  { %v4773_v32 = vpop.eup %4772 }
 0xf94   :  { %839 = vrot.lane.b32.xlu0 %v4773_v32, %s4904_s0  ;;  %v1074_v32 = vld [vmem:[%s7106_s4 + $0x10] sm:$0xff] }
0x1006   :  { %v840_v33 = vpop.permute.xlu0 %839 }
0x1007   :  { %v5297_v34 = vmul.f32 %v4771_v27, %v840_v33  ;;  %v1079_v27 = vld [vmem:[%s7106_s4 + $0x38] sm:$0xff]  ;;  %s7110_s4 = sld [smem:[#allocation80_spill]] }
0x1009   :  { %v848_v35 = vrot.slane %v5297_v34, 2 }
0x100b   :  { %849 = vrot.lane.b32.xlu1 %v848_v35, %s4905_s23  ;;  %v1309_v35 = vld [vmem:[%s6999_s8 + $0xf8] sm:$0xff] }
0x107d   :  { %v850_v37 = vpop.permute.xlu1 %849 }
0x107e   :  { %4472 = vmatmul.mubr.msk.f32.vlgmr.msra.gmra.mxu1 %vm194_vm3, %v850_v37  ;;  %v1341_v37 = vld [vmem:[%s6999_s8 + $0x1f8] sm:$0xff] }
0x107f   :  { %1180 = vmatprep.mubr.f32.mxu1 %v7024_v1  ;;  %1141 = vmatpush1.msra.mxu1 %v1084_v22  ;;  %v1317_v22 = vld [vmem:[%s6999_s8 + $0x138] sm:$0xff] }
0x1080   :  { %1142 = vmatprep.subr.mxu1 %v1081_v8  ;;  %v1332_v8 = vld [vmem:[%s6999_s8 + $0x1b0] sm:$0xff] }
0x1081   :  { %1143 = vmatpush1.msra.mxu1 %v1080_v25  ;;  %v1316_v25 = vld [vmem:[%s6999_s8 + $0x130] sm:$0xff] }
0x1082   :  { %1144 = vmatprep.subr.mxu1 %v1077_v26  ;;  %v1331_v26 = vld [vmem:[%s6999_s8 + $0x1a8] sm:$0xff] }
0x1083   :  { %1145 = vmatpush1.msra.mxu1 %v1076_v28  ;;  %v1298_v28 = vld [vmem:[%s6999_s8 + $0xa0] sm:$0xff] }
0x1084   :  { %1146 = vmatprep.subr.mxu1 %v1073_v29  ;;  %v1282_v29 = vld [vmem:[%s6999_s8 + $0x20] sm:$0xff] }
0x1085   :  { %1147 = vmatpush1.msra.mxu1 %v1072_v31  ;;  %v1297_v31 = vld [vmem:[%s6999_s8 + $0x98] sm:$0xff] }
0x1086   :  { %4059 = vmatprep.subr.mxu1 %v1309_v35  ;;  %v1313_v35 = vld [vmem:[%s6999_s8 + $0x118] sm:$0xff] }
0x113e   :  { %v919_v39 = vpop.f32.mrf.mxu1 }
0x113f   :  { %v924_v41 = vrot.slane %v919_v39, 4 }
0x1140   :  { %v4473_v42 = vpop.f32.mrf.mxu1 }
0x1141   :  { %v926_v43 = vadd.f32 %v924_v41, %v5193_v38 }
0x1143   :  { %4774 = vtanh.f32 %v926_v43  ;;  %v3987_v45 = vmul.f32 -1.442695, %v926_v43 }
0x1145   :  { %4776 = vpow2.f32 %v3987_v45  ;;  %v1293_v45 = vld [vmem:[%s6999_s8 + $0x78] sm:$0xff] }
0x1150   :  { %v4775_v44 = vpop.eup %4774 }
0x1151   :  { %939 = vrot.lane.b32.xlu0 %v4775_v44, %s4904_s0 }
0x1152   :  { %v4777_v46 = vpop.eup %4776 }
0x1153   :  { %v930_v47 = vadd.f32 1.0, %v4777_v46  ;;  %v1325_v46 = vld [vmem:[%s6999_s8 + $0x178] sm:$0xff] }
0x1155   :  { %4778 = vrcp.f32 %v930_v47  ;;  %v1308_v47 = vld [vmem:[%s6999_s8 + $0xf0] sm:$0xff] }
0x1162   :  { %v4779_v48 = vpop.eup %4778 }
0x1163   :  { %v937_v52 = vmul.f32 %v4779_v48, %v935_v51  ;;  %v1307_v51 = vld [vmem:[%s6999_s8 + $0xe8] sm:$0xff] }
0x11c3   :  { %v940_v49 = vpop.permute.xlu0 %939 }
0x11c4   :  { %v942_v50 = vmul.f32 %v4779_v48, %v940_v49  ;;  %v1292_v49 = vld [vmem:[%s6999_s8 + $0x70] sm:$0xff] }
0x11c6   :  { %944 = vrot.lane.b32.xlu1 %v942_v50, %s4905_s23  ;;  %v1324_v50 = vld [vmem:[%s6999_s8 + $0x170] sm:$0xff] }
0x1238   :  { %v945_v53 = vpop.permute.xlu1 %944 }
0x1239   :  { %v947_v54 = vadd.f32 %v945_v53, %v937_v52  ;;  %v1339_v52 = vld [vmem:[%s6999_s8 + $0x1e8] sm:$0xff] }
0x123a   :  { %v1291_v53 = vld [vmem:[%s6999_s8 + $0x68] sm:$0xff] }
0x123b   :  { %4780 = vtanh.f32 %v947_v54 }
0x1248   :  { %v4781_v55 = vpop.eup %4780 }
0x1249   :  { %950 = vrot.lane.b32.xlu0 %v4781_v55, %s4904_s0  ;;  %v1306_v55 = vld [vmem:[%s6999_s8 + $0xe0] sm:$0xff] }
0x12bb   :  { %v951_v40 = vpop.permute.xlu0 %950 }
0x12bc   :  { %v5307_v57 = vmul.f32 %v4779_v48, %v951_v40  ;;  %v1340_v48 = vld [vmem:[%s6999_s8 + $0x1f0] sm:$0xff]  ;;  %v1338_v40 = vld [vmem:[%s6999_s8 + $0x1e0] sm:$0xff] }
0x12be   :  { %v959_v59 = vrot.slane %v5307_v57, 4 }
0x12c0   :  { %960 = vrot.lane.b32.xlu1 %v959_v59, %s4905_s23  ;;  %v1290_v59 = vld [vmem:[%s6999_s8 + $0x60] sm:$0xff] }
0x1332   :  { %v961_v60 = vpop.permute.xlu1 %960 }
0x1333   :  { %4483 = vmatmul.mubr.msk.f32.vlgmr.msra.gmra.mxu0 %vm194_vm3, %v961_v60  ;;  %v1322_v60 = vld [vmem:[%s6999_s8 + $0x160] sm:$0xff] }
0x1334   :  { %1257 = vmatprep.mubr.f32.mxu0 %v7024_v1  ;;  %1218 = vmatpush1.msra.mxu0 %v1086_v23  ;;  %v1300_v23 = vld [vmem:[%s6999_s8 + $0xb0] sm:$0xff] }
0x1335   :  { %1219 = vmatprep.subr.mxu0 %v1083_v24  ;;  %v1284_v24 = vld [vmem:[%s6999_s8 + $0x30] sm:$0xff] }
0x1336   :  { %1220 = vmatpush1.msra.mxu0 %v1082_v10  ;;  %v1299_v10 = vld [vmem:[%s6999_s8 + $0xa8] sm:$0xff] }
0x1337   :  { %1221 = vmatprep.subr.mxu0 %v1079_v27  ;;  %v1283_v27 = vld [vmem:[%s6999_s8 + $0x28] sm:$0xff] }
0x1338   :  { %1222 = vmatpush1.msra.mxu0 %v1078_v14  ;;  %v1330_v14 = vld [vmem:[%s6999_s8 + $0x1a0] sm:$0xff] }
0x1339   :  { %1223 = vmatprep.subr.mxu0 %v1075_v30  ;;  %v1314_v30 = vld [vmem:[%s6999_s8 + $0x120] sm:$0xff] }
0x133a   :  { %1224 = vmatpush1.msra.mxu0 %v1074_v32  ;;  %v1329_v32 = vld [vmem:[%s6999_s8 + $0x198] sm:$0xff] }
0x133b   :  { %4097 = vmatprep.subr.mxu0 %v1341_v37  ;;  %v1296_v37 = vld [vmem:[%s6999_s8 + $0x90] sm:$0xff] }
0x13f3   :  { %v1030_v61 = vpop.f32.mrf.mxu0 }
0x13f4   :  { %v1035_v62 = vrot.slane %v1030_v61, 2  ;;  %v1305_v61 = vld [vmem:[%s6999_s8 + $0xd8] sm:$0xff] }
0x13f5   :  { %v4484_v63 = vpop.f32.mrf.mxu0 }
0x13f6   :  { %v1037_v0 = vadd.f32 %v1035_v62, %v5193_v38  ;;  %v1046_v38 = vrot.slane %v947_v54, 6  ;;  %v1323_v54 = vld [vmem:[%s6999_s8 + $0x168] sm:$0xff]  ;;  %v1337_v62 = vld [vmem:[%s6999_s8 + $0x1d8] sm:$0xff] }
0x13f7   :  { %v1289_v63 = vld [vmem:[%s6999_s8 + $0x58] sm:$0xff] }
0x13f8   :  { %4782 = vtanh.f32 %v1037_v0  ;;  %v3989_v3 = vmul.f32 -1.442695, %v1037_v0  ;;  %v1321_v0 = vld [vmem:[%s6999_s8 + $0x158] sm:$0xff] }
0x13fa   :  { %4784 = vpow2.f32 %v3989_v3  ;;  %v1336_v3 = vld [vmem:[%s6999_s8 + $0x1d0] sm:$0xff] }
0x1405   :  { %v4783_v2 = vpop.eup %4782 }
0x1406   :  { %1050 = vrot.lane.b32.xlu0 %v4783_v2, %s4904_s0  ;;  %v1304_v2 = vld [vmem:[%s6999_s8 + $0xd0] sm:$0xff] }
0x1407   :  { %v4785_v4 = vpop.eup %4784 }
0x1408   :  { %v1041_v5 = vadd.f32 1.0, %v4785_v4  ;;  %v1288_v4 = vld [vmem:[%s6999_s8 + $0x50] sm:$0xff] }
0x140a   :  { %4786 = vrcp.f32 %v1041_v5  ;;  %v1320_v5 = vld [vmem:[%s6999_s8 + $0x150] sm:$0xff] }
0x1417   :  { %v4787_v6 = vpop.eup %4786 }
0x1418   :  { %v1048_v11 = vmul.f32 %v4787_v6, %v1046_v38  ;;  %v1319_v38 = vld [vmem:[%s6999_s8 + $0x148] sm:$0xff] }
0x1478   :  { %v1051_v7 = vpop.permute.xlu0 %1050 }
0x1479   :  { %v1053_v9 = vmul.f32 %v4787_v6, %v1051_v7  ;;  %v1335_v7 = vld [vmem:[%s6999_s8 + $0x1c8] sm:$0xff] }
0x147b   :  { %1055 = vrot.lane.b32.xlu1 %v1053_v9, %s4905_s23  ;;  %v1287_v9 = vld [vmem:[%s6999_s8 + $0x48] sm:$0xff] }
0x147f   :  { %403 = vrot.lane.b32.xlu1 %v5221_v16, %s4905_s23 }
0x1483   :  { %627 = vrot.lane.b32.xlu1 %v5259_v58, %s4905_s23 }
0x1487   :  { %955 = vrot.lane.b32.xlu1 %v5307_v57, %s4905_s23 }
0x14ed   :  { %v1056_v13 = vpop.permute.xlu1 %1055 }
0x14ee   :  { %v1058_v15 = vadd.f32 %v1056_v13, %v1048_v11  ;;  %v1302_v11 = vld [vmem:[%s6999_s8 + $0xc0] sm:$0xff] }
0x14ef   :  { %v1334_v13 = vld [vmem:[%s6999_s8 + $0x1c0] sm:$0xff] }
0x14f0   :  { %4788 = vtanh.f32 %v1058_v15  ;;  %v1286_v15 = vld [vmem:[%s6999_s8 + $0x40] sm:$0xff] }
0x14f1   :  { %v404_v17 = vpop.permute.xlu1 %403 }
0x14f2   :  { %407 = vst.msk [vmem:[#allocation2] sm:$0xc] %vm406_vm4, %v404_v17  ;;  %v1318_v17 = vld [vmem:[%s6999_s8 + $0x140] sm:$0xff] }
0x14f5   :  { %v628_v21 = vpop.permute.xlu1 %627 }
0x14f6   :  { %631 = vst.msk [vmem:[#allocation2] sm:$0xc0] %vm630_vm5, %v628_v21  ;;  %v1285_v21 = vld [vmem:[%s6999_s8 + $0x38] sm:$0xff] }
0x14f9   :  { %v956_v12 = vpop.permute.xlu1 %955 }
0x14fa   :  { %958 = vst.msk [vmem:[#allocation2 + $0x8] sm:$0x30] %vm518_vm6, %v956_v12  ;;  %v1315_v12 = vld [vmem:[%s6999_s8 + $0x128] sm:$0xff] }
0x14fd   :  { %v4789_v33 = vpop.eup %4788 }
0x14fe   :  { %1061 = vrot.lane.b32.xlu0 %v4789_v33, %s4904_s0  ;;  %v1281_v33 = vld [vmem:[%s6999_s8 + $0x18] sm:$0xff] }
0x1502   :  { %515 = vrot.lane.b32.xlu0 %v5240_v36, %s4905_s23 }
0x1506   :  { %844 = vrot.lane.b32.xlu0 %v5297_v34, %s4905_s23 }
0x1570   :  { %v1062_v39 = vpop.permute.xlu0 %1061 }
0x1571   :  { %v5384_v41 = vmul.f32 %v4787_v6, %v1062_v39  ;;  %v1303_v6 = vld [vmem:[%s6999_s8 + $0xc8] sm:$0xff]  ;;  %v1328_v39 = vld [vmem:[%s6999_s8 + $0x190] sm:$0xff] }
0x1573   :  { %1066 = vrot.lane.b32.xlu0 %v5384_v41, %s4905_s23 }
0x1574   :  { %v516_v42 = vpop.permute.xlu0 %515 }
0x1575   :  { %519 = vst.msk [vmem:[#allocation2] sm:$0x30] %vm518_vm6, %v516_v42  ;;  %v1280_v42 = vld [vmem:[%s6999_s8 + $0x10] sm:$0xff] }
0x1578   :  { %v845_v43 = vpop.permute.xlu0 %844 }
0x1579   :  { %847 = vst.msk [vmem:[#allocation2 + $0x8] sm:$0xc] %vm406_vm4, %v845_v43  ;;  %v1312_v43 = vld [vmem:[%s6999_s8 + $0x110] sm:$0xff] }
0x157c   :  { %v1070_v44 = vld [vmem:[#allocation2] sm:$0xff] }
0x157d   :  { %3990 = vmatmul.mubr.msk.f32.vlgmr.msra.gmra.mxu1 %vm194_vm3, %v1070_v44  ;;  %3992 = vmatmul.mubr.msk.f32.vlgmr.msra.gmra.mxu0 %vm194_vm3, %v1070_v44  ;;  %v1295_v44 = vld [vmem:[%s6999_s8 + $0x88] sm:$0xff] }
0x157e   :  { %1186 = vmatprep.mubr.f32.mxu1 %v7024_v1  ;;  %1263 = vmatprep.mubr.f32.mxu0 %v7024_v1 }
0x157f   :  { %4060 = vmatpush3.msra.mxu1 %v1293_v45  ;;  %4098 = vmatpush3.msra.mxu0 %v1325_v46  ;;  %v1327_v45 = vld [vmem:[%s6999_s8 + $0x188] sm:$0xff] }
0x1580   :  { %4061 = vmatprep.subr.mxu1 %v1308_v47  ;;  %4099 = vmatprep.subr.mxu0 %v1340_v48  ;;  %v1279_v46 = vld [vmem:[%s6999_s8 + $0x8] sm:$0xff]  ;;  %v1294_v48 = vld [vmem:[%s6999_s8 + $0x80] sm:$0xff] }
0x1581   :  { %4062 = vmatpush3.msra.mxu1 %v1292_v49  ;;  %4100 = vmatpush3.msra.mxu0 %v1324_v50  ;;  %v1311_v47 = vld [vmem:[%s6999_s8 + $0x108] sm:$0xff]  ;;  %v1326_v49 = vld [vmem:[%s6999_s8 + $0x180] sm:$0xff] }
0x1582   :  { %4063 = vmatprep.subr.mxu1 %v1307_v51  ;;  %4101 = vmatprep.subr.mxu0 %v1339_v52  ;;  %v1278_v50 = vld [vmem:[%s6999_s8] sm:$0xff] }
0x1583   :  { %4064 = vmatpush3.msra.mxu1 %v1291_v53  ;;  %4102 = vmatpush3.msra.mxu0 %v1323_v54  ;;  %v1310_v51 = vld [vmem:[%s6999_s8 + $0x100] sm:$0xff]  ;;  %v1090_v54 = vlaneseq }
0x1584   :  { %4065 = vmatprep.subr.mxu1 %v1306_v55  ;;  %4103 = vmatprep.subr.mxu0 %v1338_v40 }
0x1585   :  { %4066 = vmatpush3.msra.mxu1 %v1290_v59  ;;  %4104 = vmatpush3.msra.mxu0 %v1322_v60  ;;  %v5584_v55 = vshrl.u32 %v1090_v54, 7  ;;  %v1088_v60 = vld [vmem:[%s6998_s7] sm:$0xf] }
0x1586   :  { %4067 = vmatprep.subr.mxu1 %v1305_v61  ;;  %4105 = vmatprep.subr.mxu0 %v1337_v62 }
0x1587   :  { %4068 = vmatpush3.msra.mxu1 %v1289_v63  ;;  %4106 = vmatpush3.msra.mxu0 %v1321_v0  ;;  %v5587_v40 = vsub.s32 0, %v5584_v55  ;;  %v5590_v59 = vsub.s32 2, %v5584_v55  ;;  %v5596_v61 = vsub.s32 1, %v5584_v55  ;;  %v7023_v62 = vsub.s32 3, %v5584_v55 }
0x1588   :  { %4069 = vmatprep.subr.mxu1 %v1304_v2  ;;  %4107 = vmatprep.subr.mxu0 %v1336_v3 }
0x1589   :  { %4070 = vmatpush3.msra.mxu1 %v1288_v4  ;;  %4108 = vmatpush3.msra.mxu0 %v1320_v5  ;;  %7107 = vst [vmem:[#allocation7_spill] sm:$0xff] %v5587_v40  ;;  %7108 = vst [vmem:[#allocation8_spill] sm:$0xff] %v5596_v61  ;;  %v1093_v63 = vrot.slane %v1088_v60, %v5587_v40  ;;  %v1101_v0 = vrot.slane %v1088_v60, %v5590_v59 }
0x158a   :  { %4071 = vmatprep.subr.mxu1 %v1303_v6  ;;  %4109 = vmatprep.subr.mxu0 %v1335_v7  ;;  %v1097_v2 = vrot.slane %v1088_v60, %v5596_v61  ;;  %v1105_v3 = vrot.slane %v1088_v60, %v7023_v62  ;;  %v6121_v62 = vld [vmem:[%s7007_s16 + $0x30] sm:$0xff] }
0x158b   :  { %4072 = vmatpush3.msra.mxu1 %v1287_v9  ;;  %4110 = vmatpush3.msra.mxu0 %v1319_v38  ;;  %7124 = vst [vmem:[#allocation22_spill] sm:$0xff] %v6121_v62 }
0x158c   :  { %4073 = vmatprep.subr.mxu1 %v1302_v11  ;;  %4111 = vmatprep.subr.mxu0 %v1334_v13 }
0x158d   :  { %4074 = vmatpush3.msra.mxu1 %v1286_v15  ;;  %4112 = vmatpush3.msra.mxu0 %v1318_v17 }
0x158e   :  { %4075 = vmatprep.subr.mxu1 %v1301_v18  ;;  %4113 = vmatprep.subr.mxu0 %v1333_v20 }
0x158f   :  { %4076 = vmatpush3.msra.mxu1 %v1285_v21  ;;  %4114 = vmatpush3.msra.mxu0 %v1317_v22 }
0x1590   :  { %4077 = vmatprep.subr.mxu1 %v1300_v23  ;;  %4115 = vmatprep.subr.mxu0 %v1332_v8 }
0x1591   :  { %4078 = vmatpush3.msra.mxu1 %v1284_v24  ;;  %4116 = vmatpush3.msra.mxu0 %v1316_v25 }
0x1592   :  { %4079 = vmatprep.subr.mxu1 %v1299_v10  ;;  %4117 = vmatprep.subr.mxu0 %v1331_v26 }
0x1593   :  { %4080 = vmatpush3.msra.mxu1 %v1283_v27  ;;  %4118 = vmatpush3.msra.mxu0 %v1315_v12 }
0x1594   :  { %4081 = vmatprep.subr.mxu1 %v1298_v28  ;;  %4119 = vmatprep.subr.mxu0 %v1330_v14 }
0x1595   :  { %4082 = vmatpush3.msra.mxu1 %v1282_v29  ;;  %4120 = vmatpush3.msra.mxu0 %v1314_v30  ;;  %v7021_v29 = vmov 1  }
0x1596   :  { %4083 = vmatprep.subr.mxu1 %v1297_v31  ;;  %4121 = vmatprep.subr.mxu0 %v1329_v32 }
0x1597   :  { %4084 = vmatpush3.msra.mxu1 %v1281_v33  ;;  %4122 = vmatpush3.msra.mxu0 %v1313_v35  ;;  %v3994_v35 = vld [vmem:[%s7000_s9] ss:$0 sm:$0xff] }
0x1598   :  { %4085 = vmatprep.subr.mxu1 %v1296_v37  ;;  %4123 = vmatprep.subr.mxu0 %v1328_v39 }
0x1599   :  { %4086 = vmatpush3.msra.mxu1 %v1280_v42  ;;  %4124 = vmatpush3.msra.mxu0 %v1312_v43 }
0x159a   :  { %4087 = vmatprep.subr.mxu1 %v1295_v44  ;;  %4125 = vmatprep.subr.mxu0 %v1327_v45 }
0x159b   :  { %4088 = vmatpush3.msra.mxu1 %v1279_v46  ;;  %4126 = vmatpush3.msra.mxu0 %v1311_v47 }
0x159c   :  { %4089 = vmatprep.subr.mxu1 %v1294_v48  ;;  %4127 = vmatprep.subr.mxu0 %v1326_v49 }
0x159d   :  { %4090 = vmatpush3.msra.mxu1 %v1278_v50  ;;  %4128 = vmatpush3.msra.mxu0 %v1310_v51 }
0x159e   :  { %4485 = vmatprep.subr.mxu0 %v7024_v1  ;;  %4715 = vset.pattern.permute.xlu1 %v7021_v29 }
0x159f   :  { %4714 = vset.pattern.permute.xlu0 %v7021_v29 }
0x15e5   :  { %v1067_v52 = vpop.permute.xlu0 %1066 }
0x15e6   :  { %1069 = vst.msk [vmem:[#allocation2 + $0x8] sm:$0xc0] %vm630_vm5, %v1067_v52 }
0x15ed   :  { %v1071_v53 = vld [vmem:[#allocation2 + $0x8] sm:$0xff] }
0x15ee   :  { %3991 = vmatmul.mubr.msk.f32.gmra.mxu1 %vm194_vm3, %v1071_v53  ;;  %3993 = vmatmul.mubr.msk.f32.gmra.mxu0 %vm194_vm3, %v1071_v53 }
0x163d   :  { %v1182_v4 = vpop.f32.mrf.mxu1  ;;  %v1259_v5 = vpop.f32.mrf.mxu0 }
0x163e   :  { %v1183_v6 = vadd.f32 %v1182_v4, %v1093_v63  ;;  %v1260_v7 = vadd.f32 %v1259_v5, %v1101_v0 }
0x163f   :  { %v1184_v9 = vpop.f32.mrf.mxu1  ;;  %v1261_v38 = vpop.f32.mrf.mxu0 }
0x1640   :  { %v1185_v11 = vadd.f32 %v1184_v9, %v1097_v2  ;;  %v1262_v13 = vadd.f32 %v1261_v38, %v1105_v3  ;;  %v1270_v18 = vmax.f32 %v1183_v6, 0.0  ;;  %v1272_v20 = vmax.f32 %v1260_v7, 0.0 }
0x1642   :  { %v1271_v15 = vmax.f32 %v1185_v11, 0.0  ;;  %v1273_v17 = vmax.f32 %v1262_v13, 0.0 }
0x1644   :  { %1413 = vmatprep.mubr.f32.mxu1 %v1271_v15  ;;  %1488 = vmatprep.mubr.f32.mxu0 %v1273_v17 }
0x1645   :  { %1414 = vmatmul.mubr.f32.vlgmr.msra.gmra.mxu1 %v1270_v18  ;;  %1489 = vmatmul.mubr.f32.vlgmr.msra.gmra.mxu0 %v1272_v20 }
0x16ae   :  { %v1188_v21 = vpop.f32.mrf.mxu1  ;;  %v1265_v22 = vpop.f32.mrf.mxu0 }
0x16af   :  { %v1189_v23 = vadd.f32 %v1188_v21, %v1093_v63  ;;  %v1266_v8 = vadd.f32 %v1265_v22, %v1101_v0 }
0x16b0   :  { %v1190_v24 = vpop.f32.mrf.mxu1  ;;  %v1267_v25 = vpop.f32.mrf.mxu0 }
0x16b1   :  { %v1191_v10 = vadd.f32 %v1190_v24, %v1097_v2  ;;  %v1268_v26 = vadd.f32 %v1267_v25, %v1105_v3  ;;  %v1274_v28 = vmax.f32 %v1189_v23, 0.0  ;;  %v1276_v14 = vmax.f32 %v1266_v8, 0.0 }
0x16b3   :  { %v1275_v27 = vmax.f32 %v1191_v10, 0.0  ;;  %v1277_v12 = vmax.f32 %v1268_v26, 0.0 }
0x16b5   :  { %1418 = vmatprep.mubr.f32.mxu1 %v1275_v27  ;;  %1493 = vmatprep.mubr.f32.mxu0 %v1277_v12 }
0x16b6   :  { %1419 = vmatmul.mubr.f32.gmra.mxu1 %v1274_v28  ;;  %1494 = vmatmul.mubr.f32.gmra.mxu0 %v1276_v14 }
0x16b7   :  { %1823 = vmatprep.mubr.f32.mxu1 %v7024_v1  ;;  %4493 = vmatprep.mubr.msk.f32.mxu0 %vm4903_vm0, %v7024_v1 }
0x1705   :  { %v4091_v30 = vpop.f32.mrf.mxu1  ;;  %v4129_v32 = vpop.f32.mrf.mxu0 }
0x1707   :  { %v4092_v31 = vpop.f32.mrf.mxu1  ;;  %v4130_v37 = vpop.f32.mrf.mxu0 }
0x1708   :  { %v4093_v33 = vadd.f32 %v4092_v31, %v4091_v30  ;;  %v4131_v42 = vadd.f32 %v4130_v37, %v4129_v32 }
0x170a   :  { %v1416_v39 = vadd.f32 %v4093_v33, %v3994_v35 }
0x170c   :  { %v1491_v43 = vadd.f32 %v4131_v42, %v1416_v39 }
0x170e   :  { %v1500_v44 = vrot.slane %v1491_v43, 2  ;;  %v1503_v48 = vrot.slane %v1491_v43, 4  ;;  %v1506_v53 = vrot.slane %v1491_v43, 6 }
0x1710   :  { %v1502_v45 = vmax.f32 %v1491_v43, %v1500_v44 }
0x1712   :  { %v1505_v51 = vmax.f32 %v1502_v45, %v1503_v48 }
0x1714   :  { %v1508_v0 = vmax.f32 %v1505_v51, %v1506_v53 }
0x1776   :  { %v4094_v46 = vpop.f32.mrf.mxu1  ;;  %v4132_v47 = vpop.f32.mrf.mxu0 }
0x1778   :  { %v4095_v49 = vpop.f32.mrf.mxu1  ;;  %v4133_v50 = vpop.f32.mrf.mxu0 }
0x1779   :  { %v4096_v52 = vadd.f32 %v4095_v49, %v4094_v46  ;;  %v4134_v60 = vadd.f32 %v4133_v50, %v4132_v47 }
0x177b   :  { %v1421_v54 = vadd.f32 %v4096_v52, %v3994_v35 }
0x177d   :  { %v1496_v63 = vadd.f32 %v4134_v60, %v1421_v54 }
0x177f   :  { %v1509_v2 = vmax.f32 %v1508_v0, %v1496_v63  ;;  %v1511_v3 = vrot.slane %v1496_v63, 2  ;;  %v1514_v4 = vrot.slane %v1496_v63, 4  ;;  %v1517_v7 = vrot.slane %v1496_v63, 6 }
0x1781   :  { %v1513_v5 = vmax.f32 %v1509_v2, %v1511_v3 }
0x1783   :  { %v1516_v6 = vmax.f32 %v1513_v5, %v1514_v4 }
0x1785   :  { %v1519_v9 = vmax.f32 %v1516_v6, %v1517_v7  ;;  %v7020_v6 = vmov 0  }
0x1787   :  { %v1520_v38 = vsub.f32 %v1491_v43, %v1519_v9  ;;  %v1524_v11 = vrot.slane %v1519_v9, 6  ;;  %v1529_v13 = vrot.slane %v1519_v9, 4  ;;  %v1534_v15 = vrot.slane %v1519_v9, 2 }
0x1788   :  { %v1539_v25 = vsub.f32 %v1496_v63, %v1519_v9 }
0x1789   :  { %v1521_v17 = vmul.f32 1.442695, %v1520_v38  ;;  %v1526_v18 = vsub.f32 %v1491_v43, %v1524_v11  ;;  %v1531_v20 = vsub.f32 %v1491_v43, %v1529_v13  ;;  %v1536_v21 = vsub.f32 %v1491_v43, %v1534_v15 }
0x178a   :  { %v1542_v24 = vsub.f32 %v1496_v63, %v1524_v11  ;;  %v1545_v10 = vsub.f32 %v1496_v63, %v1529_v13  ;;  %v1548_v27 = vsub.f32 %v1496_v63, %v1534_v15  ;;  %v1540_v12 = vmul.f32 1.442695, %v1539_v25  ;;  %v1607_v25 = vld [vmem:[%s7001_s10 + $0x78] sm:$0xff] }
0x178b   :  { %v1527_v22 = vmul.f32 1.442695, %v1526_v18  ;;  %v1532_v23 = vmul.f32 1.442695, %v1531_v20  ;;  %v1537_v8 = vmul.f32 1.442695, %v1536_v21  ;;  %4790 = vpow2.f32 %v1521_v17 }
0x178c   :  { %v1543_v26 = vmul.f32 1.442695, %v1542_v24  ;;  %v1546_v28 = vmul.f32 1.442695, %v1545_v10  ;;  %v1549_v14 = vmul.f32 1.442695, %v1548_v27 }
0x178d   :  { %4792 = vpow2.f32 %v1527_v22  ;;  %v1614_v17 = vld [vmem:[%s7001_s10 + $0xb0] sm:$0xff]  ;;  %v1613_v18 = vld [vmem:[%s7001_s10 + $0xa8] sm:$0xff]  ;;  %v1615_v20 = vld [vmem:[%s7001_s10 + $0xb8] sm:$0xff] }
0x178e   :  { %4794 = vpow2.f32 %v1532_v23  ;;  %1783 = vmatprep.subr.mxu1 %v1614_v17  ;;  %4486 = vmatpush3.msra.mxu0 %v1615_v20  ;;  %v1611_v21 = vld [vmem:[%s7001_s10 + $0x98] sm:$0xff]  ;;  %v1610_v22 = vld [vmem:[%s7001_s10 + $0x90] sm:$0xff]  ;;  %v1612_v23 = vld [vmem:[%s7001_s10 + $0xa0] sm:$0xff] }
0x178f   :  { %4796 = vpow2.f32 %v1537_v8  ;;  %1784 = vmatpush1.msra.mxu1 %v1613_v18  ;;  %4487 = vmatprep.subr.mxu0 %v7024_v1  ;;  %v1608_v8 = vld [vmem:[%s7001_s10 + $0x80] sm:$0xff]  ;;  %v1609_v24 = vld [vmem:[%s7001_s10 + $0x88] sm:$0xff] }
0x1790   :  { %4798 = vpow2.f32 %v1543_v26  ;;  %1785 = vmatprep.subr.mxu1 %v1611_v21  ;;  %4488 = vmatpush3.msra.mxu0 %v1612_v23  ;;  %v1605_v10 = vld [vmem:[%s7001_s10 + $0x68] sm:$0xff]  ;;  %v1606_v26 = vld [vmem:[%s7001_s10 + $0x70] sm:$0xff]  ;;  %v1604_v27 = vld [vmem:[%s7001_s10 + $0x60] sm:$0xff] }
0x1791   :  { %4800 = vpow2.f32 %v1540_v12  ;;  %1786 = vmatpush1.msra.mxu1 %v1610_v22  ;;  %4489 = vmatprep.subr.mxu0 %v7024_v1 }
0x1792   :  { %4802 = vpow2.f32 %v1546_v28  ;;  %1787 = vmatprep.subr.mxu1 %v1608_v8  ;;  %4490 = vmatpush3.msra.mxu0 %v1609_v24 }
0x1793   :  { %4804 = vpow2.f32 %v1549_v14  ;;  %1788 = vmatpush1.msra.mxu1 %v1607_v25  ;;  %4491 = vmatprep.subr.mxu0 %v7024_v1 }
0x1794   :  { %1789 = vmatprep.subr.mxu1 %v1605_v10  ;;  %4492 = vmatpush3.msra.mxu0 %v1606_v26 }
0x1795   :  { %1790 = vmatpush1.msra.mxu1 %v1604_v27  ;;  %4496 = vmatprep.subr.mxu0 %v7024_v1 }
0x1798   :  { %v4791_v30 = vpop.eup %4790 }
0x179a   :  { %v4793_v31 = vpop.eup %4792 }
0x179b   :  { %v4795_v32 = vpop.eup %4794  ;;  %v1552_v33 = vrot.slane %v4793_v31, 2 }
0x179c   :  { %v4797_v35 = vpop.eup %4796  ;;  %v1556_v39 = vrot.slane %v4795_v32, 4 }
0x179d   :  { %v1554_v37 = vadd.f32 %v4791_v30, %v1552_v33  ;;  %v1560_v43 = vrot.slane %v4797_v35, 6  ;;  %v4799_v44 = vpop.eup %4798 }
0x179e   :  { %v4801_v45 = vpop.eup %4800  ;;  %v1565_v49 = vrot.slane %v4799_v44, 2 }
0x179f   :  { %v1558_v42 = vadd.f32 %v1556_v39, %v1554_v37  ;;  %v4803_v47 = vpop.eup %4802 }
0x17a0   :  { %v4805_v50 = vpop.eup %4804  ;;  %v1569_v52 = vrot.slane %v4803_v47, 4 }
0x17a1   :  { %v1562_v46 = vadd.f32 %v1560_v43, %v1558_v42  ;;  %v1573_v54 = vrot.slane %v4805_v50, 6 }
0x17a3   :  { %v1563_v48 = vadd.f32 %v4801_v45, %v1562_v46 }
0x17a5   :  { %v1567_v51 = vadd.f32 %v1565_v49, %v1563_v48 }
0x17a7   :  { %v1571_v53 = vadd.f32 %v1569_v52, %v1567_v51 }
0x17a9   :  { %v1575_v60 = vadd.f32 %v1573_v54, %v1571_v53 }
0x17ab   :  { %4806 = vrcp.f32 %v1575_v60  ;;  %v1602_v60 = vld [vmem:[%s7001_s10 + $0x50] sm:$0xff] }
0x17ac   :  { %1929 = vmatprep.subr.mxu1 %v1602_v60  ;;  %v2071_v60 = vld [vmem:[%s7003_s12 + $0x8] sm:$0xff] }
0x17b8   :  { %v4807_v63 = vpop.eup %4806 }
0x17b9   :  { %v1588_v0 = vmul.f32 %v4807_v63, %v4801_v45  ;;  %v1577_v2 = vmul.f32 %v4807_v63, %v4791_v30  ;;  %v1579_v3 = vrot.slane %v4807_v63, 6  ;;  %v1582_v5 = vrot.slane %v4807_v63, 4 }
0x17ba   :  { %v1585_v9 = vrot.slane %v4807_v63, 2 }
0x17bb   :  { %1722 = vperm.xlu1 %4715, %v1588_v0   ;;  %1690 = vperm.xlu0 %4714, %v1577_v2   ;;  %v1581_v4 = vmul.f32 %v4793_v31, %v1579_v3  ;;  %v1584_v7 = vmul.f32 %v4795_v32, %v1582_v5  ;;  %v1590_v11 = vmul.f32 %v4803_v47, %v1582_v5 }
0x17bc   :  { %v1587_v38 = vmul.f32 %v4797_v35, %v1585_v9  ;;  %v1589_v13 = vmul.f32 %v4799_v44, %v1579_v3  ;;  %v1591_v15 = vmul.f32 %v4805_v50, %v1585_v9 }
0x17bf   :  { %1695 = vperm.xlu1 %4715, %v1581_v4   ;;  %4716 = vset.pattern.permute.xlu0 %v7020_v6 }
0x17c0   :  { %1618 = vperm.xlu0 %4716, %v1577_v2  }
0x17c3   :  { %1704 = vperm.xlu1 %4715, %v1584_v7  }
0x17c4   :  { %1624 = vperm.xlu0 %4716, %v1581_v4  }
0x17c7   :  { %1713 = vperm.xlu1 %4715, %v1587_v38  }
0x17c8   :  { %4718 = vset.pattern.permute.xlu0 %v7021_v29 }
0x17c9   :  { %1737 = vperm.xlu0 %4718, %v1590_v11  }
0x17cb   :  { %1728 = vperm.xlu1 %4715, %v1589_v13  }
0x17cd   :  { %4719 = vset.pattern.permute.xlu0 %v7020_v6 }
0x17ce   :  { %1654 = vperm.xlu0 %4719, %v1588_v0  }
0x17cf   :  { %4717 = vset.pattern.permute.xlu1 %v7020_v6 }
0x17d0   :  { %1634 = vperm.xlu1 %4717, %v1584_v7  }
0x17d2   :  { %1681 = vperm.xlu0 %4719, %v1591_v15  }
0x17d4   :  { %1644 = vperm.xlu1 %4717, %v1587_v38  }
0x17d8   :  { %4720 = vset.pattern.permute.xlu1 %v7021_v29  ;;  %v6115_v29 = vld [vmem:[%s7007_s16 + $0xb0] sm:$0xff] }
0x17d9   :  { %1746 = vperm.xlu1 %4720, %v1591_v15   ;;  %7123 = vst [vmem:[#allocation21_spill] sm:$0xff] %v6115_v29 }
0x17dd   :  { %4721 = vset.pattern.permute.xlu1 %v7020_v6  ;;  %v6109_v6 = vld [vmem:[%s7007_s16 + $0x38] sm:$0xff] }
0x17de   :  { %1661 = vperm.xlu1 %4721, %v1589_v13   ;;  %7122 = vst [vmem:[#allocation20_spill] sm:$0xff] %v6109_v6 }
0x17e2   :  { %1671 = vperm.xlu1 %4721, %v1590_v11  }
0x1836   :  { %v1723_v12 = vpop.permute.xlu1 %1722  ;;  %v1691_v14 = vpop.permute.xlu0 %1690 }
0x1837   :  { %v1693_v42 = vmul.f32 %v1691_v14, %v5201_v56  ;;  %v1725_v52 = vmul.f32 %v1723_v12, %v5278_v19 }
0x183a   :  { %v1696_v28 = vpop.permute.xlu1 %1695 }
0x183b   :  { %v1698_v31 = vmul.f32 %v1696_v28, %v5221_v16  ;;  %v1619_v33 = vpop.permute.xlu0 %1618 }
0x183c   :  { %v1621_v38 = vmul.f32 %v1619_v33, %v5201_v56 }
0x183d   :  { %v1700_v37 = vrot.slane %v1698_v31, 2 }
0x183e   :  { %v1705_v30 = vpop.permute.xlu1 %1704 }
0x183f   :  { %v1707_v32 = vmul.f32 %v1705_v30, %v5240_v36  ;;  %v1702_v45 = vadd.f32 %v1700_v37, %v1693_v42  ;;  %v1625_v47 = vpop.permute.xlu0 %1624  ;;  %v1600_v37 = vld [vmem:[%s7001_s10 + $0x40] sm:$0xff]  ;;  %v1595_v42 = vld [vmem:[%s7001_s10 + $0x18] sm:$0xff] }
0x1840   :  { %v1627_v53 = vmul.f32 %v1625_v47, %v5221_v16  ;;  %v2077_v47 = vld [vmem:[%s7003_s12 + $0x38] sm:$0xff] }
0x1841   :  { %v1709_v43 = vrot.slane %v1707_v32, 4 }
0x1842   :  { %v1714_v35 = vpop.permute.xlu1 %1713  ;;  %v1629_v5 = vrot.slane %v1627_v53, 2  ;;  %v2073_v53 = vld [vmem:[%s7003_s12 + $0x18] sm:$0xff] }
0x1843   :  { %v1716_v39 = vmul.f32 %v1714_v35, %v5259_v58  ;;  %v1711_v48 = vadd.f32 %v1709_v43, %v1702_v45  ;;  %v1597_v43 = vld [vmem:[%s7001_s10 + $0x28] sm:$0xff]  ;;  %v1592_v45 = vld [vmem:[%s7001_s10] sm:$0xff] }
0x1844   :  { %v1738_v54 = vpop.permute.xlu0 %1737  ;;  %v1631_v18 = vadd.f32 %v1629_v5, %v1621_v38  ;;  %v5771_v5 = vld [vmem:[%s7110_s4 + $0x70] sm:$0xff]  ;;  %v5792_v38 = vld [vmem:[%s7110_s4 + $0x58] sm:$0xff] }
0x1845   :  { %v1718_v46 = vrot.slane %v1716_v39, 6  ;;  %v1740_v4 = vmul.f32 %v1738_v54, %v5307_v57  ;;  %v1596_v39 = vld [vmem:[%s7001_s10 + $0x20] sm:$0xff]  ;;  %v2072_v54 = vld [vmem:[%s7003_s12 + $0x10] sm:$0xff] }
0x1846   :  { %v1729_v44 = vpop.permute.xlu1 %1728 }
0x1847   :  { %v1720_v49 = vadd.f32 %v1718_v46, %v1711_v48  ;;  %v1731_v50 = vmul.f32 %v1729_v44, %v5297_v34  ;;  %v1742_v13 = vrot.slane %v1740_v4, 4  ;;  %v1593_v44 = vld [vmem:[%s7001_s10 + $0x8] sm:$0xff]  ;;  %v1594_v46 = vld [vmem:[%s7001_s10 + $0x10] sm:$0xff]  ;;  %v5766_v4 = vld [vmem:[%s7110_s4 + $0x78] sm:$0xff] }
0x1849   :  { %v1726_v63 = vadd.f32 %v1725_v52, %v1720_v49  ;;  %v1733_v0 = vrot.slane %v1731_v50, 2  ;;  %v1655_v15 = vpop.permute.xlu0 %1654  ;;  %v2076_v50 = vld [vmem:[%s7003_s12 + $0x30] sm:$0xff]  ;;  %v2074_v52 = vld [vmem:[%s7003_s12 + $0x20] sm:$0xff] }
0x184a   :  { %v1657_v56 = vmul.f32 %v1655_v15, %v5278_v19  ;;  %v1603_v19 = vld [vmem:[%s7001_s10 + $0x58] sm:$0xff] }
0x184b   :  { %v1635_v51 = vpop.permute.xlu1 %1634  ;;  %v1735_v9 = vadd.f32 %v1733_v0, %v1726_v63  ;;  %v2070_v63 = vld [vmem:[%s7003_s12] sm:$0xff]  ;;  %v5820_v15 = vld [vmem:[%s7110_s4 + $0x38] sm:$0xff] }
0x184c   :  { %v1637_v3 = vmul.f32 %v1635_v51, %v5240_v36  ;;  %v2075_v51 = vld [vmem:[%s7003_s12 + $0x28] sm:$0xff] }
0x184d   :  { %v1744_v21 = vadd.f32 %v1742_v13, %v1735_v9  ;;  %v5785_v9 = vld [vmem:[%s7110_s4 + $0x60] sm:$0xff] }
0x184e   :  { %v1639_v16 = vrot.slane %v1637_v3, 4  ;;  %v5813_v13 = vld [vmem:[%s7110_s4 + $0x40] sm:$0xff] }
0x184f   :  { %v1645_v2 = vpop.permute.xlu1 %1644 }
0x1850   :  { %v1647_v7 = vmul.f32 %v1645_v2, %v5259_v58  ;;  %v1641_v23 = vadd.f32 %v1639_v16, %v1631_v18  ;;  %v1682_v58 = vpop.permute.xlu0 %1681  ;;  %v5801_v16 = vld [vmem:[%s7110_s4 + $0x50] sm:$0xff]  ;;  %v5834_v18 = vld [vmem:[%s7110_s4 + $0x28] sm:$0xff] }
0x1851   :  { %v1684_v27 = vmul.f32 %v1682_v58, %v5384_v41  ;;  %v2046_v58 = vld [vmem:[%s7002_s11] sm:$0x7] }
0x1852   :  { %v1649_v20 = vrot.slane %v1647_v7, 6  ;;  %v5778_v7 = vld [vmem:[%s7110_s4 + $0x68] sm:$0xff] }
0x1853   :  { %v1686_v31 = vrot.slane %v1684_v27, 6 }
0x1854   :  { %v1747_v11 = vpop.permute.xlu1 %1746  ;;  %v1651_v24 = vadd.f32 %v1649_v20, %v1641_v23  ;;  %v5841_v20 = vld [vmem:[%s7110_s4 + $0x20] sm:$0xff]  ;;  %v5864_v23 = vld [vmem:[%s7110_s4 + $0x8] sm:$0xff] }
0x1855   :  { %v1749_v17 = vmul.f32 %v1747_v11, %v5384_v41  ;;  %v1598_v41 = vld [vmem:[%s7001_s10 + $0x30] sm:$0xff]  ;;  %v5808_v11 = vld [vmem:[%s7110_s4 + $0x48] sm:$0xff] }
0x1856   :  { %v1658_v12 = vadd.f32 %v1657_v56, %v1651_v24 }
0x1857   :  { %v1751_v22 = vrot.slane %v1749_v17, 6  ;;  %v5827_v17 = vld [vmem:[%s7110_s4 + $0x30] sm:$0xff] }
0x1859   :  { %v1753_v36 = vadd.f32 %v1751_v22, %v1744_v21  ;;  %v1662_v8 = vpop.permute.xlu1 %1661  ;;  %v5850_v21 = vld [vmem:[%s7110_s4 + $0x18] sm:$0xff]  ;;  %v5857_v22 = vld [vmem:[%s7110_s4 + $0x10] sm:$0xff] }
0x185a   :  { %v1664_v25 = vmul.f32 %v1662_v8, %v5297_v34  ;;  %v1601_v34 = vld [vmem:[%s7001_s10 + $0x48] sm:$0xff] }
0x185b   :  { %1755 = vrot.lane.b32.xlu1 %v1753_v36, %s4905_s23  ;;  %v5871_v36 = vld [vmem:[%s7110_s4] sm:$0xff] }
0x185c   :  { %v1666_v10 = vrot.slane %v1664_v25, 2 }
0x185d   :  { %v1672_v26 = vpop.permute.xlu1 %1671 }
0x185e   :  { %v1674_v28 = vmul.f32 %v1672_v26, %v5307_v57  ;;  %v1668_v14 = vadd.f32 %v1666_v10, %v1658_v12  ;;  %v1599_v57 = vld [vmem:[%s7001_s10 + $0x38] sm:$0xff]  ;;  %v2059_v10 = vrot.slane %v2046_v58, %v5590_v59 }
0x1860   :  { %v1676_v30 = vrot.slane %v1674_v28, 4  ;;  %v2055_v28 = vrot.slane %v2046_v58, %v5596_v61 }
0x1862   :  { %v1678_v32 = vadd.f32 %v1676_v30, %v1668_v14 }
0x1864   :  { %v1688_v33 = vadd.f32 %v1686_v31, %v1678_v32 }
0x1866   :  { %1901 = vrot.lane.b32.xlu0 %v1688_v33, %s4905_s23  ;;  %s7109_s23 = sld [smem:[#allocation79_spill]] }
0x186c   :  { %v2066_v48 = vld [vmem:[%s7109_s23] sm:$0xff]  ;;  %v2067_v0 = vld [vmem:[%s7109_s23 + $0x8] sm:$0xff]  ;;  %v2068_v2 = vld [vmem:[%s7109_s23 + $0x10] sm:$0xff] }
0x186d   :  { %v2069_v3 = vld [vmem:[%s7109_s23 + $0x18] sm:$0xff] }
0x18cd   :  { %v1756_v35 = vpop.permute.xlu1 %1755 }
0x18ce   :  { %3995 = vmatmul.mubr.msk.f32.vlgmr.msra.gmra.mxu1 %vm194_vm3, %v1756_v35  ;;  %4494 = vmatmul.mubr.msk.f32.vlgmr.msra.gmra.mxu0 %vm194_vm3, %v1756_v35 }
0x18cf   :  { %1930 = vmatpush1.msra.mxu1 %v1601_v34  ;;  %4497 = vmatpush3.msra.mxu0 %v1603_v19  ;;  %v2051_v19 = vrot.slane %v2046_v58, %v5587_v40 }
0x18d0   :  { %1931 = vmatprep.subr.mxu1 %v1599_v57  ;;  %4498 = vmatprep.subr.mxu0 %v7024_v1  ;;  %v3999_v57 = vld [vmem:[%s7004_s13] ss:$0 sm:$0xff] }
0x18d1   :  { %1932 = vmatpush1.msra.mxu1 %v1598_v41  ;;  %4499 = vmatpush3.msra.mxu0 %v1600_v37 }
0x18d2   :  { %1933 = vmatprep.subr.mxu1 %v1596_v39  ;;  %4500 = vmatprep.subr.mxu0 %v7024_v1 }
0x18d3   :  { %1934 = vmatpush1.msra.mxu1 %v1595_v42  ;;  %4501 = vmatpush3.msra.mxu0 %v1597_v43 }
0x18d4   :  { %1935 = vmatprep.subr.mxu1 %v1593_v44  ;;  %4502 = vmatprep.subr.mxu0 %v7024_v1 }
0x18d5   :  { %1936 = vmatpush1.msra.mxu1 %v1592_v45  ;;  %1969 = vmatprep.mubr.f32.mxu1 %v7024_v1 }
0x18d6   :  { %4503 = vmatpush3.msra.mxu0 %v1594_v46  ;;  %4504 = vmatprep.mubr.msk.f32.mxu0 %vm4903_vm0, %v7024_v1 }
0x18d7   :  { %4507 = vmatprep.subr.mxu1 %v2077_v47  ;;  %4529 = vmatprep.subr.mxu0 %v5766_v4 }
0x18d8   :  { %v1902_v49 = vpop.permute.xlu0 %1901 }
0x18d9   :  { %3997 = vmatmul.mubr.msk.f32.vlgmr.msra.gmra.mxu1 %vm194_vm3, %v1902_v49  ;;  %4505 = vmatmul.mubr.msk.f32.vlgmr.msra.gmra.mxu0 %vm194_vm3, %v1902_v49 }
0x18da   :  { %4508 = vmatpush3.msra.mxu1 %v2077_v47  ;;  %4523 = vmatprep.mubr.msk.f32.mxu1 %vm2085_vm7, %v2066_v48 }
0x18db   :  { %4509 = vmatprep.subr.mxu1 %v2076_v50  ;;  %4530 = vmatpush3.msra.mxu0 %v5766_v4 }
0x18dc   :  { %4510 = vmatpush3.msra.mxu1 %v2076_v50  ;;  %4531 = vmatprep.subr.mxu0 %v5771_v5 }
0x18dd   :  { %4511 = vmatprep.subr.mxu1 %v2075_v51  ;;  %4532 = vmatpush3.msra.mxu0 %v5771_v5 }
0x18de   :  { %4512 = vmatpush3.msra.mxu1 %v2075_v51  ;;  %4533 = vmatprep.subr.mxu0 %v5778_v7 }
0x18df   :  { %4513 = vmatprep.subr.mxu1 %v2074_v52  ;;  %4534 = vmatpush3.msra.mxu0 %v5778_v7 }
0x18e0   :  { %4514 = vmatpush3.msra.mxu1 %v2074_v52  ;;  %4535 = vmatprep.subr.mxu0 %v5785_v9 }
0x18e1   :  { %4515 = vmatprep.subr.mxu1 %v2073_v53  ;;  %4536 = vmatpush3.msra.mxu0 %v5785_v9 }
0x18e2   :  { %4516 = vmatpush3.msra.mxu1 %v2073_v53  ;;  %4537 = vmatprep.subr.mxu0 %v5792_v38 }
0x18e3   :  { %4517 = vmatprep.subr.mxu1 %v2072_v54  ;;  %4538 = vmatpush3.msra.mxu0 %v5792_v38 }
0x18e4   :  { %4518 = vmatpush3.msra.mxu1 %v2072_v54  ;;  %4539 = vmatprep.subr.mxu0 %v5801_v16 }
0x18e5   :  { %4519 = vmatprep.subr.mxu1 %v2071_v60  ;;  %4540 = vmatpush3.msra.mxu0 %v5801_v16 }
0x18e6   :  { %4520 = vmatpush3.msra.mxu1 %v2071_v60  ;;  %4541 = vmatprep.subr.mxu0 %v5808_v11 }
0x18e7   :  { %4521 = vmatprep.subr.mxu1 %v2070_v63  ;;  %4542 = vmatpush3.msra.mxu0 %v5808_v11 }
0x18e8   :  { %4522 = vmatpush3.msra.mxu1 %v2070_v63  ;;  %4543 = vmatprep.subr.mxu0 %v5813_v13 }
0x18e9   :  { %4524 = vmatmul.mubr.msk.f32.vlgmr.msra.gmra.mxu1 %vm2085_vm7, %v2067_v0  ;;  %4544 = vmatpush3.msra.mxu0 %v5813_v13 }
0x18ea   :  { %4526 = vmatprep.mubr.msk.f32.mxu1 %vm2085_vm7, %v2068_v2  ;;  %4545 = vmatprep.subr.mxu0 %v5820_v15 }
0x18eb   :  { %4546 = vmatpush3.msra.mxu0 %v5820_v15 }
0x18ec   :  { %4547 = vmatprep.subr.mxu0 %v5827_v17 }
0x18ed   :  { %4527 = vmatmul.mubr.msk.f32.gmra.mxu1 %vm2085_vm7, %v2069_v3  ;;  %4548 = vmatpush3.msra.mxu0 %v5827_v17 }
0x18ee   :  { %2524 = vmatprep.mubr.f32.mxu1 %v7024_v1  ;;  %4549 = vmatprep.subr.mxu0 %v5834_v18  ;;  %v6127_v1 = vld [vmem:[%s7007_s16 + $0xa8] sm:$0xff] }
0x18ef   :  { %4550 = vmatpush3.msra.mxu0 %v5834_v18  ;;  %7125 = vst [vmem:[#allocation23_spill] sm:$0xff] %v6127_v1 }
0x18f0   :  { %4551 = vmatprep.subr.mxu0 %v5841_v20 }
0x18f1   :  { %4552 = vmatpush3.msra.mxu0 %v5841_v20 }
0x18f2   :  { %4553 = vmatprep.subr.mxu0 %v5850_v21 }
0x18f3   :  { %4554 = vmatpush3.msra.mxu0 %v5850_v21 }
0x18f4   :  { %4555 = vmatprep.subr.mxu0 %v5857_v22 }
0x18f5   :  { %4556 = vmatpush3.msra.mxu0 %v5857_v22 }
0x18f6   :  { %4557 = vmatprep.subr.mxu0 %v5864_v23 }
0x18f7   :  { %4558 = vmatpush3.msra.mxu0 %v5864_v23 }
0x18f8   :  { %4559 = vmatprep.subr.mxu0 %v5871_v36 }
0x18f9   :  { %4560 = vmatpush3.msra.mxu0 %v5871_v36 }
0x198e   :  { %v1896_v8 = vpop.f32.mrf.mxu0  ;;  %v1825_v25 = vpop.f32.mrf.mxu1 }
0x1990   :  { %v4495_v24 = vpop.f32.mrf.mxu0  ;;  %v1827_v56 = vpop.f32.mrf.mxu1 }
0x1999   :  { %v1971_v26 = vpop.f32.mrf.mxu1  ;;  %v2042_v27 = vpop.f32.mrf.mxu0 }
0x199a   :  { %v2043_v12 = vadd.f32 %v2042_v27, %v1896_v8  ;;  %v1972_v34 = vadd.f32 %v1971_v26, %v1825_v25 }
0x199b   :  { %v1973_v14 = vpop.f32.mrf.mxu1  ;;  %v4506_v30 = vpop.f32.mrf.mxu0 }
0x199c   :  { %v5880_v31 = vadd.f32 %v2059_v10, %v2043_v12  ;;  %v1974_v32 = vadd.f32 %v1973_v14, %v1827_v56  ;;  %v2063_v35 = vadd.f32 %v2051_v19, %v1972_v34 }
0x199e   :  { %7111 = vst [vmem:[#allocation9_spill] sm:$0xff] %v5880_v31  ;;  %v5882_v33 = vadd.f32 %v2055_v28, %v1974_v32  ;;  %v2300_v42 = vrot.slane %v2063_v35, %v5587_v40  ;;  %v2852_v47 = vrot.slane %v2063_v35, %v5596_v61  ;;  %v6133_v31 = vld [vmem:[%s7007_s16 + $0x28] sm:$0xff] }
0x199f   :  { %7126 = vst [vmem:[#allocation24_spill] sm:$0xff] %v6133_v31 }
0x19a0   :  { %7112 = vst [vmem:[#allocation10_spill] sm:$0xff] %v5882_v33  ;;  %v6139_v33 = vld [vmem:[%s7007_s16 + $0xa0] sm:$0xff] }
0x19a9   :  { %v4525_v41 = vpop.f32.mrf.mxu1 }
0x19aa   :  { %v2170_v37 = vadd.f32 %v4525_v41, %v3999_v57 }
0x19ab   :  { %v2164_v39 = vpop.f32.mrf.mxu1 }
0x19ac   :  { %v2165_v43 = vadd.f32 %v3999_v57, %v2164_v39  ;;  %v2302_v48 = vmul.f32 %v2300_v42, %v2170_v37 }
0x19ad   :  { %v4528_v44 = vpop.f32.mrf.mxu1 }
0x19ae   :  { %v2301_v45 = vmul.f32 %v2300_v42, %v2165_v43  ;;  %v2180_v46 = vadd.f32 %v4528_v44, %v3999_v57 }
0x19af   :  { %v2174_v49 = vpop.f32.mrf.mxu1 }
0x19b0   :  { %v5890_v50 = vmul.f32 %v2852_v47, %v2180_v46  ;;  %v2175_v51 = vadd.f32 %v3999_v57, %v2174_v49  ;;  %4561 = vmatprep.mubr.f32.mxu0 %v2301_v45  ;;  %v5907_v49 = vld [vmem:[%s7005_s14 + $0xe8] sm:$0xff] }
0x19b1   :  { %4562 = vmatmul.mubr.f32.vlgmr.msra.gmra.mxu0 %v2302_v48  ;;  %2476 = vmatprep.subr.mxu1 %v5907_v49 }
0x19b2   :  { %v5892_v52 = vmul.f32 %v2852_v47, %v2175_v51  ;;  %v5912_v51 = vld [vmem:[%s7005_s14 + $0xe0] sm:$0xff] }
0x19b3   :  { %2477 = vmatpush1.msra.mxu1 %v5912_v51 }
0x1a71   :  { %v4563_v53 = vpop.f32.mrf.mxu0 }
0x1a72   :  { %v2379_v54 = vmax.f32 %v4563_v53, 0.0  ;;  %v2395_v60 = vsub.f32 0.0, %v4563_v53  ;;  %v5917_v53 = vld [vmem:[%s7005_s14 + $0xc8] sm:$0xff] }
0x1a73   :  { %v2369_v63 = vpop.f32.mrf.mxu0  ;;  %2478 = vmatprep.subr.mxu1 %v5917_v53 }
0x1a74   :  { %4808 = vrsqrt.f32 %v2379_v54  ;;  %v2397_v0 = vmax.f32 %v2395_v60, 0.0  ;;  %v2378_v2 = vmax.f32 %v2369_v63, 0.0  ;;  %v2394_v3 = vsub.f32 0.0, %v2369_v63  ;;  %v5929_v60 = vld [vmem:[%s7005_s14 + $0xa8] sm:$0xff]  ;;  %v5935_v63 = vld [vmem:[%s7005_s14 + $0xa0] sm:$0xff] }
0x1a75   :  { %vm2389_vm8 = vcmp.eq.f32.partialorder %v2379_v54, inf  ;;  %vm2391_vm9 = vcmp.eq.f32.partialorder %v2379_v54, 0.0  ;;  %v2392_v26 = vand.u32 2147483648, %v2379_v54 }
0x1a76   :  { %4810 = vrsqrt.f32 %v2397_v0  ;;  %v2396_v8 = vmax.f32 %v2394_v3, 0.0  ;;  %vm2407_vm10 = vcmp.eq.f32.partialorder %v2397_v0, inf  ;;  %vm2409_vm11 = vcmp.eq.f32.partialorder %v2397_v0, 0.0  ;;  %v5953_v3 = vld [vmem:[%s7005_s14 + $0x68] sm:$0xff] }
0x1a77   :  { %4812 = vrsqrt.f32 %v2378_v2  ;;  %v2410_v28 = vand.u32 2147483648, %v2397_v0  ;;  %vm2382_vm12 = vcmp.eq.f32.partialorder %v2378_v2, inf  ;;  %v2385_v32 = vand.u32 2147483648, %v2378_v2 }
0x1a78   :  { %4814 = vrsqrt.f32 %v2396_v8  ;;  %vm2400_vm13 = vcmp.eq.f32.partialorder %v2396_v8, inf  ;;  %v2403_v41 = vand.u32 2147483648, %v2396_v8  ;;  %vm2384_vm14 = vcmp.eq.f32.partialorder %v2378_v2, 0.0 }
0x1a79   :  { %vm2402_vm15 = vcmp.eq.f32.partialorder %v2396_v8, 0.0 }
0x1a81   :  { %v4809_v24 = vpop.eup %4808 }
0x1a82   :  { %v2388_v25 = vmul.f32 %v4809_v24, %v2379_v54  ;;  %v5965_v24 = vld [vmem:[%s7005_s14 + $0x48] sm:$0xff] }
0x1a83   :  { %v4811_v58 = vpop.eup %4810 }
0x1a84   :  { %v4813_v56 = vpop.eup %4812  ;;  %v2390_v10 = vsel %vm2389_vm8, %v2379_v54, %v2388_v25  ;;  %v2406_v27 = vmul.f32 %v4811_v58, %v2397_v0  ;;  %v5923_v54 = vld [vmem:[%s7005_s14 + $0xc0] sm:$0xff]  ;;  %v5977_v58 = vld [vmem:[%s7005_s14 + $0x28] sm:$0xff] }
0x1a85   :  { %v4815_v12 = vpop.eup %4814  ;;  %v2381_v14 = vmul.f32 %v4813_v56, %v2378_v2  ;;  %v2393_v19 = vsel %vm2391_vm9, %v2392_v26, %v2390_v10  ;;  %2479 = vmatpush1.msra.mxu1 %v5923_v54  ;;  %v5971_v25 = vld [vmem:[%s7005_s14 + $0x40] sm:$0xff]  ;;  %v5989_v10 = vld [vmem:[%s7005_s14 + $0x8] sm:$0xff] }
0x1a86   :  { %v2408_v30 = vsel %vm2407_vm10, %v2397_v0, %v2406_v27  ;;  %v2399_v34 = vmul.f32 %v4815_v12, %v2396_v8  ;;  %v5941_v0 = vld [vmem:[%s7005_s14 + $0x88] sm:$0xff]  ;;  %2480 = vmatprep.subr.mxu1 %v5929_v60  ;;  %v5983_v56 = vld [vmem:[%s7005_s14 + $0x20] sm:$0xff]  ;;  %v6001_v27 = vld [vmem:[%s7005_s14 + $0xf8] sm:$0xff] }
0x1a87   :  { %v2411_v35 = vsel %vm2409_vm11, %v2410_v28, %v2408_v30  ;;  %v2383_v57 = vsel %vm2382_vm12, %v2378_v2, %v2381_v14  ;;  %v5947_v2 = vld [vmem:[%s7005_s14 + $0x80] sm:$0xff]  ;;  %2481 = vmatpush1.msra.mxu1 %v5935_v63  ;;  %v6009_v12 = vld [vmem:[%s7007_s16 + $0xf8] sm:$0xff]  ;;  %v6019_v14 = vld [vmem:[%s7007_s16 + $0xf0] sm:$0xff]  ;;  %vm2827_vm12 = vcmask 516096  }
0x1a88   :  { %v5894_v37 = vsub.f32 %v2393_v19, %v2411_v35  ;;  %v2401_v39 = vsel %vm2400_vm13, %v2396_v8, %v2399_v34  ;;  %v2386_v42 = vsel %vm2384_vm14, %v2385_v32, %v2383_v57  ;;  %2482 = vmatprep.subr.mxu1 %v5941_v0  ;;  %v5959_v8 = vld [vmem:[%s7005_s14 + $0x60] sm:$0xff]  ;;  %v6014_v28 = vld [vmem:[%s7007_s16 + $0x78] sm:$0xff]  ;;  %4175 = vmatprep.subr.mxu0 %v6009_v12  ;;  %v6025_v30 = vld [vmem:[%s7007_s16 + $0x70] sm:$0xff]  ;;  %vm3410_vm13 = vcmask 1041409  }
0x1a89   :  { %v2404_v43 = vsel %vm2402_vm15, %v2403_v41, %v2401_v39  ;;  %2483 = vmatpush1.msra.mxu1 %v5947_v2  ;;  %v5995_v26 = vld [vmem:[%s7005_s14] sm:$0xff]  ;;  %4176 = vmatpush3.msra.mxu0 %v6014_v28  ;;  %v6031_v32 = vld [vmem:[%s7007_s16 + $0xe8] sm:$0xff]  ;;  %v6055_v57 = vld [vmem:[%s7007_s16 + $0xd8] sm:$0xff] }
0x1a8a   :  { %v2415_v44 = vmul.f32 %v5894_v37, %v5894_v37  ;;  %v5898_v45 = vsub.f32 %v2386_v42, %v2404_v43  ;;  %2484 = vmatprep.subr.mxu1 %v5953_v3  ;;  %4177 = vmatprep.subr.mxu0 %v6019_v14  ;;  %v6037_v34 = vld [vmem:[%s7007_s16 + $0x68] sm:$0xff]  ;;  %v6043_v19 = vld [vmem:[%s7007_s16 + $0xe0] sm:$0xff]  ;;  %7113 = vst [vmem:[#allocation11_spill] sm:$0xff] %v6055_v57  ;;  %v6061_v41 = vld [vmem:[%s7007_s16 + $0x58] sm:$0xff] }
0x1a8b   :  { %2485 = vmatpush1.msra.mxu1 %v5959_v8  ;;  %4178 = vmatpush3.msra.mxu0 %v6025_v30  ;;  %v6049_v35 = vld [vmem:[%s7007_s16 + $0x60] sm:$0xff]  ;;  %7114 = vst [vmem:[#allocation12_spill] sm:$0xff] %v6061_v41  ;;  %v6067_v39 = vld [vmem:[%s7007_s16 + $0xd0] sm:$0xff]  ;;  %v6079_v43 = vld [vmem:[%s7007_s16 + $0xc8] sm:$0xff] }
0x1a8c   :  { %v2419_v46 = vsel %vm2085_vm7, %v2415_v44, 0.0  ;;  %v2414_v47 = vmul.f32 %v5898_v45, %v5898_v45  ;;  %2486 = vmatprep.subr.mxu1 %v5965_v24  ;;  %4179 = vmatprep.subr.mxu0 %v6031_v32  ;;  %7115 = vst [vmem:[#allocation13_spill] sm:$0xff] %v6067_v39  ;;  %v6073_v42 = vld [vmem:[%s7007_s16 + $0x50] sm:$0xff]  ;;  %7117 = vst [vmem:[#allocation15_spill] sm:$0xff] %v6079_v43  ;;  %v6085_v44 = vld [vmem:[%s7007_s16 + $0x48] sm:$0xff] }
0x1a8d   :  { %2420 = vadd.xlane.f32.xlu0 %v2419_v46  ;;  %2487 = vmatpush1.msra.mxu1 %v5971_v25  ;;  %7116 = vst [vmem:[#allocation14_spill] sm:$0xff] %v6073_v42  ;;  %7118 = vst [vmem:[#allocation16_spill] sm:$0xff] %v6085_v44  ;;  %v6091_v46 = vld [vmem:[%s7007_s16 + $0xc0] sm:$0xff] }
0x1a8e   :  { %v2416_v48 = vsel %vm2085_vm7, %v2414_v47, 0.0  ;;  %2488 = vmatprep.subr.mxu1 %v5977_v58  ;;  %4180 = vmatpush3.msra.mxu0 %v6037_v34  ;;  %7119 = vst [vmem:[#allocation17_spill] sm:$0xff] %v6091_v46  ;;  %v6097_v47 = vld [vmem:[%s7007_s16 + $0x40] sm:$0xff] }
0x1a8f   :  { %2417 = vadd.xlane.f32.xlu1 %v2416_v48  ;;  %2489 = vmatpush1.msra.mxu1 %v5983_v56  ;;  %7120 = vst [vmem:[#allocation18_spill] sm:$0xff] %v6097_v47  ;;  %v6103_v48 = vld [vmem:[%s7007_s16 + $0xb8] sm:$0xff] }
0x1a90   :  { %2490 = vmatprep.subr.mxu1 %v5989_v10  ;;  %4181 = vmatprep.subr.mxu0 %v6043_v19  ;;  %7121 = vst [vmem:[#allocation19_spill] sm:$0xff] %v6103_v48 }
0x1a91   :  { %2491 = vmatpush1.msra.mxu1 %v5995_v26  ;;  %4182 = vmatpush3.msra.mxu0 %v6049_v35 }
0x1a92   :  { %2553 = vmatprep.subr.mxu1 %v6001_v27  ;;  %4183 = vmatprep.subr.mxu0 %v6055_v57 }
0x1a93   :  { %4184 = vmatpush3.msra.mxu0 %v6061_v41 }
0x1a94   :  { %4185 = vmatprep.subr.mxu0 %v6067_v39 }
0x1a95   :  { %4186 = vmatpush3.msra.mxu0 %v6073_v42 }
0x1a96   :  { %4187 = vmatprep.subr.mxu0 %v6079_v43 }
0x1a97   :  { %4188 = vmatpush3.msra.mxu0 %v6085_v44 }
0x1a98   :  { %4189 = vmatprep.subr.mxu0 %v6091_v46 }
0x1a99   :  { %4190 = vmatpush3.msra.mxu0 %v6097_v47 }
0x1a9a   :  { %4191 = vmatprep.subr.mxu0 %v6103_v48 }
0x1a9b   :  { %4192 = vmatpush3.msra.mxu0 %v6109_v6  ;;  %v6145_v6 = vld [vmem:[%s7007_s16 + $0x20] sm:$0xff] }
0x1a9c   :  { %4193 = vmatprep.subr.mxu0 %v6115_v29  ;;  %7127 = vst [vmem:[#allocation25_spill] sm:$0xff] %v6145_v6  ;;  %v6151_v29 = vld [vmem:[%s7007_s16 + $0x98] sm:$0xff] }
0x1a9d   :  { %4194 = vmatpush3.msra.mxu0 %v6121_v62 }
0x1a9e   :  { %4195 = vmatprep.subr.mxu0 %v6127_v1 }
0x1a9f   :  { %4196 = vmatpush3.msra.mxu0 %v6133_v31 }
0x1aa0   :  { %4197 = vmatprep.subr.mxu0 %v6139_v33 }
0x1aa1   :  { %4198 = vmatpush3.msra.mxu0 %v6145_v6  ;;  %v6160_v6 = vld [vmem:[%s7005_s14 + $0xf0] sm:$0xff] }
0x1aa2   :  { %4199 = vmatprep.subr.mxu0 %v6151_v29  ;;  %7128 = vst [vmem:[#allocation26_spill] sm:$0xff] %v6160_v6 }
0x1b16   :  { %v2421_v62 = vpop.xlane.xlu0 %2420 }
0x1b18   :  { %v2418_v1 = vpop.xlane.xlu1 %2417 }
0x1b19   :  { %v2422_v48 = vadd.f32 %v2421_v62, %v2418_v1  ;;  %v6165_v1 = vld [vmem:[%s7005_s14 + $0xd8] sm:$0xff]  ;;  %v6171_v62 = vld [vmem:[%s7005_s14 + $0xd0] sm:$0xff] }
0x1b1a   :  { %7129 = vst [vmem:[#allocation27_spill] sm:$0xff] %v6165_v1  ;;  %7130 = vst [vmem:[#allocation28_spill] sm:$0xff] %v6171_v62 }
0x1b1b   :  { %v2423_v47 = vrot.slane %v2422_v48, 4 }
0x1b1d   :  { %v2424_v46 = vadd.f32 %v2423_v47, %v2422_v48  ;;  %v6223_v47 = vld [vmem:[%s7005_s14 + $0x50] sm:$0xff]  ;;  %v6229_v48 = vld [vmem:[%s7005_s14 + $0x38] sm:$0xff] }
0x1b1e   :  { %7139 = vst [vmem:[#allocation36_spill] sm:$0xff] %v6223_v47  ;;  %7140 = vst [vmem:[#allocation37_spill] sm:$0xff] %v6229_v48 }
0x1b1f   :  { %v2425_v44 = vrot.slane %v2424_v46, 2 }
0x1b21   :  { %v2426_v43 = vadd.f32 %v2425_v44, %v2424_v46  ;;  %v6211_v44 = vld [vmem:[%s7005_s14 + $0x70] sm:$0xff]  ;;  %v6217_v46 = vld [vmem:[%s7005_s14 + $0x58] sm:$0xff] }
0x1b22   :  { %7137 = vst [vmem:[#allocation34_spill] sm:$0xff] %v6211_v44  ;;  %7138 = vst [vmem:[#allocation35_spill] sm:$0xff] %v6217_v46 }
0x1b23   :  { %v2427_v42 = vrot.slane %v2426_v43, 1 }
0x1b25   :  { %v2428_v31 = vadd.f32 %v2427_v42, %v2426_v43  ;;  %v6185_v42 = vld [vmem:[%s7005_s14 + $0xb0] sm:$0xff]  ;;  %v6191_v43 = vld [vmem:[%s7005_s14 + $0x98] sm:$0xff] }
0x1b26   :  { %7133 = vst [vmem:[#allocation30_spill] sm:$0xff] %v6185_v42  ;;  %7134 = vst [vmem:[#allocation31_spill] sm:$0xff] %v6191_v43 }
0x1b27   :  { %v2429_v39 = vmax.f32 %v2428_v31, 1e-24  ;;  %v7131_v31 = vmov 0.0  }
0x1b29   :  { %4816 = vrsqrt.f32 %v2429_v39 }
0x1b36   :  { %v4817_v41 = vpop.eup %4816 }
0x1b37   :  { %v2431_v57 = vmul.f32 %v4817_v41, %v5898_v45  ;;  %v6178_v45 = vld [vmem:[%s7005_s14 + $0xb8] sm:$0xff]  ;;  %v2432_v39 = vmul.f32 %v4817_v41, %v5894_v37  ;;  %v6198_v37 = vld [vmem:[%s7005_s14 + $0x90] sm:$0xff] }
0x1b38   :  { %7132 = vst [vmem:[#allocation29_spill] sm:$0xff] %v6178_v45  ;;  %7135 = vst [vmem:[#allocation32_spill] sm:$0xff] %v6198_v37  ;;  %v6204_v41 = vld [vmem:[%s7005_s14 + $0x78] sm:$0xff] }
0x1b39   :  { %4004 = vmatmul.mubr.msk.f32.vlgmr.msra.gmra.mxu1 %vm2085_vm7, %v2431_v57  ;;  %7136 = vst [vmem:[#allocation33_spill] sm:$0xff] %v6204_v41 }
0x1b3a   :  { %2554 = vmatpush1.msra.mxu1 %v6160_v6  ;;  %2530 = vmatprep.mubr.f32.mxu1 %v7131_v31 }
0x1b3b   :  { %2555 = vmatprep.subr.mxu1 %v6165_v1  ;;  %v6431_v1 = vld [vmem:[%s7007_s16 + $0x1a0] sm:$0xff] }
0x1b3c   :  { %2556 = vmatpush1.msra.mxu1 %v6171_v62  ;;  %v6413_v62 = vld [vmem:[%s7007_s16 + $0x130] sm:$0xff]  ;;  %7171 = vst [vmem:[#allocation68_spill] sm:$0xff] %v6431_v1 }
0x1b3d   :  { %2557 = vmatprep.subr.mxu1 %v6178_v45  ;;  %4005 = vmatmul.mubr.msk.f32.gmra.mxu1 %vm2085_vm7, %v2432_v39  ;;  %v6406_v45 = vld [vmem:[%s7007_s16 + $0x1b0] sm:$0xff]  ;;  %7168 = vst [vmem:[#allocation65_spill] sm:$0xff] %v6413_v62 }
0x1b3e   :  { %2558 = vmatpush1.msra.mxu1 %v6185_v42  ;;  %2601 = vmatprep.mubr.f32.mxu1 %v7131_v31  ;;  %v6389_v42 = vld [vmem:[%s7007_s16 + $0x140] sm:$0xff]  ;;  %7167 = vst [vmem:[#allocation64_spill] sm:$0xff] %v6406_v45 }
0x1b3f   :  { %2559 = vmatprep.subr.mxu1 %v6191_v43  ;;  %v6384_v43 = vld [vmem:[%s7007_s16] sm:$0xff]  ;;  %7164 = vst [vmem:[#allocation61_spill] sm:$0xff] %v6389_v42 }
0x1b40   :  { %2560 = vmatpush1.msra.mxu1 %v6198_v37  ;;  %v6235_v37 = vld [vmem:[%s7005_s14 + $0x30] sm:$0xff]  ;;  %7163 = vst [vmem:[#allocation60_spill] sm:$0xff] %v6384_v43 }
0x1b41   :  { %2561 = vmatprep.subr.mxu1 %v6204_v41  ;;  %7141 = vst [vmem:[#allocation38_spill] sm:$0xff] %v6235_v37  ;;  %v6241_v41 = vld [vmem:[%s7005_s14 + $0x18] sm:$0xff] }
0x1b42   :  { %2562 = vmatpush1.msra.mxu1 %v6211_v44  ;;  %7142 = vst [vmem:[#allocation39_spill] sm:$0xff] %v6241_v41  ;;  %v6247_v44 = vld [vmem:[%s7005_s14 + $0x10] sm:$0xff] }
0x1b43   :  { %2563 = vmatprep.subr.mxu1 %v6217_v46  ;;  %7143 = vst [vmem:[#allocation40_spill] sm:$0xff] %v6247_v44  ;;  %v6253_v46 = vld [vmem:[%s7007_s16 + $0x1f8] sm:$0xff] }
0x1b44   :  { %2564 = vmatpush1.msra.mxu1 %v6223_v47  ;;  %7144 = vst [vmem:[#allocation41_spill] sm:$0xff] %v6253_v46  ;;  %v6259_v47 = vld [vmem:[%s7007_s16 + $0x178] sm:$0xff] }
0x1b45   :  { %2565 = vmatprep.subr.mxu1 %v6229_v48  ;;  %7145 = vst [vmem:[#allocation42_spill] sm:$0xff] %v6259_v47  ;;  %v6265_v48 = vld [vmem:[%s7007_s16 + $0x1f0] sm:$0xff] }
0x1b46   :  { %2566 = vmatpush1.msra.mxu1 %v6235_v37  ;;  %7146 = vst [vmem:[#allocation43_spill] sm:$0xff] %v6265_v48  ;;  %v6365_v37 = vld [vmem:[%s7007_s16 + $0x148] sm:$0xff] }
0x1b47   :  { %2567 = vmatprep.subr.mxu1 %v6241_v41  ;;  %v6272_v41 = vld [vmem:[%s7007_s16 + $0x170] sm:$0xff]  ;;  %7160 = vst [vmem:[#allocation57_spill] sm:$0xff] %v6365_v37 }
0x1b48   :  { %2568 = vmatpush1.msra.mxu1 %v6247_v44  ;;  %7147 = vst [vmem:[#allocation44_spill] sm:$0xff] %v6272_v41  ;;  %v6279_v44 = vld [vmem:[%s7007_s16 + $0x1e8] sm:$0xff] }
0x1b49   :  { %4006 = vmatmul.mubr.msk.f32.vlgmr.msra.gmra.mxu1 %vm2085_vm7, %v2431_v57  ;;  %4213 = vmatprep.subr.mxu1 %v6253_v46  ;;  %7148 = vst [vmem:[#allocation45_spill] sm:$0xff] %v6279_v44  ;;  %v6285_v57 = vld [vmem:[%s7007_s16 + $0x168] sm:$0xff]  ;;  %v6291_v46 = vld [vmem:[%s7007_s16 + $0x1e0] sm:$0xff] }
0x1b4a   :  { %2607 = vmatprep.mubr.f32.mxu1 %v7131_v31  ;;  %4214 = vmatpush3.msra.mxu1 %v6259_v47  ;;  %7149 = vst [vmem:[#allocation46_spill] sm:$0xff] %v6285_v57  ;;  %7150 = vst [vmem:[#allocation47_spill] sm:$0xff] %v6291_v46  ;;  %v6360_v47 = vld [vmem:[%s7007_s16 + $0x8] sm:$0xff] }
0x1b4b   :  { %4215 = vmatprep.subr.mxu1 %v6265_v48  ;;  %v6298_v48 = vld [vmem:[%s7007_s16 + $0x160] sm:$0xff]  ;;  %7159 = vst [vmem:[#allocation56_spill] sm:$0xff] %v6360_v47 }
0x1b4c   :  { %4216 = vmatpush3.msra.mxu1 %v6272_v41  ;;  %7151 = vst [vmem:[#allocation48_spill] sm:$0xff] %v6298_v48  ;;  %v6304_v41 = vld [vmem:[%s7007_s16 + $0x1d8] sm:$0xff] }
0x1b4d   :  { %4007 = vmatmul.mubr.msk.f32.gmra.mxu1 %vm2085_vm7, %v2432_v39  ;;  %4217 = vmatprep.subr.mxu1 %v6279_v44  ;;  %7152 = vst [vmem:[#allocation49_spill] sm:$0xff] %v6304_v41  ;;  %v6312_v39 = vld [vmem:[%s7007_s16 + $0x18] sm:$0xff]  ;;  %v6322_v44 = vld [vmem:[%s7007_s16 + $0x90] sm:$0xff] }
0x1b4e   :  { %4218 = vmatpush3.msra.mxu1 %v6285_v57  ;;  %v6317_v57 = vld [vmem:[%s7007_s16 + $0x158] sm:$0xff]  ;;  %4200 = vmatpush3.msra.mxu0 %v6312_v39 }
0x1b4f   :  { %4219 = vmatprep.subr.mxu1 %v6291_v46  ;;  %7153 = vst [vmem:[#allocation50_spill] sm:$0xff] %v6317_v57  ;;  %4201 = vmatprep.subr.mxu0 %v6322_v44  ;;  %v6341_v46 = vld [vmem:[%s7007_s16 + $0x150] sm:$0xff] }
0x1b50   :  { %4220 = vmatpush3.msra.mxu1 %v6298_v48  ;;  %v6336_v48 = vld [vmem:[%s7007_s16 + $0x10] sm:$0xff]  ;;  %7156 = vst [vmem:[#allocation53_spill] sm:$0xff] %v6341_v46 }
0x1b51   :  { %4221 = vmatprep.subr.mxu1 %v6304_v41  ;;  %v6329_v41 = vld [vmem:[%s7007_s16 + $0x1d0] sm:$0xff]  ;;  %7155 = vst [vmem:[#allocation52_spill] sm:$0xff] %v6336_v48  ;;  %4202 = vmatpush3.msra.mxu0 %v6336_v48 }
0x1b52   :  { %4222 = vmatpush3.msra.mxu1 %v6317_v57  ;;  %7154 = vst [vmem:[#allocation51_spill] sm:$0xff] %v6329_v41  ;;  %v6346_v57 = vld [vmem:[%s7007_s16 + $0x88] sm:$0xff] }
0x1b53   :  { %4223 = vmatprep.subr.mxu1 %v6329_v41  ;;  %7157 = vst [vmem:[#allocation54_spill] sm:$0xff] %v6346_v57  ;;  %v6353_v41 = vld [vmem:[%s7007_s16 + $0x1c8] sm:$0xff]  ;;  %4203 = vmatprep.subr.mxu0 %v6346_v57 }
0x1b54   :  { %4224 = vmatpush3.msra.mxu1 %v6341_v46  ;;  %7158 = vst [vmem:[#allocation55_spill] sm:$0xff] %v6353_v41  ;;  %v6370_v46 = vld [vmem:[%s7007_s16 + $0x80] sm:$0xff]  ;;  %4204 = vmatpush3.msra.mxu0 %v6360_v47 }
0x1b55   :  { %4225 = vmatprep.subr.mxu1 %v6353_v41  ;;  %7161 = vst [vmem:[#allocation58_spill] sm:$0xff] %v6370_v46  ;;  %v6377_v41 = vld [vmem:[%s7007_s16 + $0x1c0] sm:$0xff]  ;;  %4205 = vmatprep.subr.mxu0 %v6370_v46 }
0x1b56   :  { %4226 = vmatpush3.msra.mxu1 %v6365_v37  ;;  %7162 = vst [vmem:[#allocation59_spill] sm:$0xff] %v6377_v41  ;;  %v6394_v37 = vld [vmem:[%s7007_s16 + $0x1b8] sm:$0xff]  ;;  %4206 = vmatpush3.msra.mxu0 %v6384_v43 }
0x1b57   :  { %4227 = vmatprep.subr.mxu1 %v6377_v41  ;;  %7165 = vst [vmem:[#allocation62_spill] sm:$0xff] %v6394_v37  ;;  %v6401_v41 = vld [vmem:[%s7007_s16 + $0x138] sm:$0xff]  ;;  %4564 = vmatprep.subr.mxu0 %v5766_v4 }
0x1b58   :  { %4228 = vmatpush3.msra.mxu1 %v6389_v42  ;;  %7166 = vst [vmem:[#allocation63_spill] sm:$0xff] %v6401_v41  ;;  %v6419_v42 = vld [vmem:[%s7007_s16 + $0x1a8] sm:$0xff] }
0x1b59   :  { %4229 = vmatprep.subr.mxu1 %v6394_v37  ;;  %7169 = vst [vmem:[#allocation66_spill] sm:$0xff] %v6419_v42  ;;  %v6425_v37 = vld [vmem:[%s7007_s16 + $0x128] sm:$0xff] }
0x1b5a   :  { %4230 = vmatpush3.msra.mxu1 %v6401_v41  ;;  %7170 = vst [vmem:[#allocation67_spill] sm:$0xff] %v6425_v37  ;;  %v6437_v41 = vld [vmem:[%s7007_s16 + $0x120] sm:$0xff] }
0x1b5b   :  { %4231 = vmatprep.subr.mxu1 %v6406_v45  ;;  %7172 = vst [vmem:[#allocation69_spill] sm:$0xff] %v6437_v41 }
0x1b5c   :  { %4232 = vmatpush3.msra.mxu1 %v6413_v62  ;;  %v6445_v62 = vld [vmem:[%s7007_s16 + $0x198] sm:$0xff] }
0x1b5d   :  { %4233 = vmatprep.subr.mxu1 %v6419_v42  ;;  %7173 = vst [vmem:[#allocation70_spill] sm:$0xff] %v6445_v62  ;;  %v6451_v42 = vld [vmem:[%s7007_s16 + $0x118] sm:$0xff] }
0x1b5e   :  { %4234 = vmatpush3.msra.mxu1 %v6425_v37  ;;  %7174 = vst [vmem:[#allocation71_spill] sm:$0xff] %v6451_v42 }
0x1b5f   :  { %4235 = vmatprep.subr.mxu1 %v6431_v1  ;;  %v6457_v1 = vld [vmem:[%s7007_s16 + $0x190] sm:$0xff] }
0x1b60   :  { %4236 = vmatpush3.msra.mxu1 %v6437_v41  ;;  %7175 = vst [vmem:[#allocation72_spill] sm:$0xff] %v6457_v1  ;;  %v6463_v41 = vld [vmem:[%s7007_s16 + $0x110] sm:$0xff] }
0x1b61   :  { %4237 = vmatprep.subr.mxu1 %v6445_v62  ;;  %7176 = vst [vmem:[#allocation73_spill] sm:$0xff] %v6463_v41  ;;  %v6469_v62 = vld [vmem:[%s7007_s16 + $0x188] sm:$0xff] }
0x1b62   :  { %4238 = vmatpush3.msra.mxu1 %v6451_v42  ;;  %7177 = vst [vmem:[#allocation74_spill] sm:$0xff] %v6469_v62  ;;  %v6475_v42 = vld [vmem:[%s7007_s16 + $0x108] sm:$0xff] }
0x1b63   :  { %4239 = vmatprep.subr.mxu1 %v6457_v1  ;;  %7178 = vst [vmem:[#allocation75_spill] sm:$0xff] %v6475_v42  ;;  %v6481_v1 = vld [vmem:[%s7007_s16 + $0x180] sm:$0xff] }
0x1b64   :  { %4240 = vmatpush3.msra.mxu1 %v6463_v41  ;;  %7179 = vst [vmem:[#allocation76_spill] sm:$0xff] %v6481_v1  ;;  %v6487_v41 = vld [vmem:[%s7007_s16 + $0x100] sm:$0xff] }
0x1b65   :  { %4241 = vmatprep.subr.mxu1 %v6469_v62  ;;  %7180 = vst [vmem:[#allocation77_spill] sm:$0xff] %v6487_v41 }
0x1b66   :  { %4242 = vmatpush3.msra.mxu1 %v6475_v42  ;;  %v2231_v42 = vld [vmem:[%s7006_s15] sm:$0xf] }
0x1b67   :  { %4243 = vmatprep.subr.mxu1 %v6481_v1  ;;  %v6495_v62 = vrot.slane %v2231_v42, %v5587_v40  ;;  %v6498_v37 = vrot.slane %v2231_v42, %v5596_v61 }
0x1b68   :  { %4244 = vmatpush3.msra.mxu1 %v6487_v41 }
0x1b69   :  { %3007 = vmatprep.subr.mxu1 %v5907_v49 }
0x1bf9   :  { %v2526_v1 = vpop.f32.mrf.mxu1 }
0x1bfa   :  { %v2527_v45 = vadd.f32 %v2526_v1, %v6495_v62 }
0x1bfb   :  { %v2528_v6 = vpop.f32.mrf.mxu1 }
0x1bfc   :  { %v2529_v43 = vadd.f32 %v2528_v6, %v6498_v37  ;;  %v2614_v47 = vmax.f32 %v2527_v45, 0.0  ;;  %v6512_v6 = vrot.slane %v2231_v42, %v5590_v59 }
0x1bfd   :  { %v2532_v46 = vpop.f32.mrf.mxu1 }
0x1bfe   :  { %v2615_v41 = vmax.f32 %v2529_v43, 0.0  ;;  %v2533_v49 = vadd.f32 %v2532_v46, %v6495_v62 }
0x1bff   :  { %v2534_v57 = vpop.f32.mrf.mxu1 }
0x1c00   :  { %v2535_v48 = vadd.f32 %v2534_v57, %v6498_v37  ;;  %2692 = vmatprep.mubr.f32.mxu0 %v2615_v41  ;;  %v2618_v61 = vmax.f32 %v2533_v49, 0.0 }
0x1c01   :  { %2693 = vmatmul.mubr.f32.vlgmr.msra.gmra.mxu0 %v2614_v47 }
0x1c02   :  { %v2619_v40 = vmax.f32 %v2535_v48, 0.0  ;;  %4565 = vmatpush3.msra.mxu0 %v5766_v4  ;;  %v7181_v4 = vsub.s32 3, %v5584_v55 }
0x1c03   :  { %4566 = vmatprep.subr.mxu0 %v5771_v5 }
0x1c04   :  { %4567 = vmatpush3.msra.mxu0 %v5771_v5  ;;  %2697 = vmatprep.mubr.f32.mxu0 %v2619_v40  ;;  %v6516_v1 = vrot.slane %v2231_v42, %v7181_v4 }
0x1c05   :  { %4568 = vmatprep.subr.mxu0 %v5778_v7  ;;  %2698 = vmatmul.mubr.f32.gmra.mxu0 %v2618_v61 }
0x1c06   :  { %4569 = vmatpush3.msra.mxu0 %v5778_v7  ;;  %4596 = vmatprep.mubr.f32.mxu0 %v5892_v52 }
0x1c07   :  { %4570 = vmatprep.subr.mxu0 %v5785_v9 }
0x1c08   :  { %4571 = vmatpush3.msra.mxu0 %v5785_v9 }
0x1c09   :  { %v2603_v5 = vpop.f32.mrf.mxu1  ;;  %4572 = vmatprep.subr.mxu0 %v5792_v38 }
0x1c0a   :  { %4573 = vmatpush3.msra.mxu0 %v5792_v38  ;;  %v2604_v40 = vadd.f32 %v2603_v5, %v6512_v6 }
0x1c0b   :  { %v2605_v61 = vpop.f32.mrf.mxu1  ;;  %4574 = vmatprep.subr.mxu0 %v5801_v16 }
0x1c0c   :  { %v2606_v7 = vadd.f32 %v2605_v61, %v6516_v1  ;;  %4575 = vmatpush3.msra.mxu0 %v5801_v16  ;;  %v2616_v9 = vmax.f32 %v2604_v40, 0.0 }
0x1c0d   :  { %v2609_v59 = vpop.f32.mrf.mxu1  ;;  %4576 = vmatprep.subr.mxu0 %v5808_v11 }
0x1c0e   :  { %v2617_v55 = vmax.f32 %v2606_v7, 0.0  ;;  %4577 = vmatpush3.msra.mxu0 %v5808_v11  ;;  %v2610_v52 = vadd.f32 %v2609_v59, %v6512_v6 }
0x1c0f   :  { %v2611_v45 = vpop.f32.mrf.mxu1  ;;  %4578 = vmatprep.subr.mxu0 %v5813_v13 }
0x1c10   :  { %v2612_v38 = vadd.f32 %v2611_v45, %v6516_v1  ;;  %2767 = vmatprep.mubr.f32.mxu1 %v2617_v55  ;;  %4579 = vmatpush3.msra.mxu0 %v5813_v13  ;;  %v2620_v11 = vmax.f32 %v2610_v52, 0.0  ;;  %v7182_v13 = vld [vmem:[#allocation11_spill] sm:$0xff] }
0x1c11   :  { %2768 = vmatmul.mubr.f32.vlgmr.msra.gmra.mxu1 %v2616_v9  ;;  %4580 = vmatprep.subr.mxu0 %v5820_v15 }
0x1c12   :  { %v2621_v16 = vmax.f32 %v2612_v38, 0.0  ;;  %4581 = vmatpush3.msra.mxu0 %v5820_v15  ;;  %3008 = vmatpush1.msra.mxu1 %v5912_v51  ;;  %v7183_v15 = vld [vmem:[#allocation12_spill] sm:$0xff]  ;;  %v7192_v51 = vld [vmem:[#allocation21_spill] sm:$0xff] }
0x1c13   :  { %4582 = vmatprep.subr.mxu0 %v5827_v17  ;;  %3009 = vmatprep.subr.mxu1 %v5917_v53  ;;  %v7193_v53 = vld [vmem:[#allocation22_spill] sm:$0xff] }
0x1c14   :  { %2772 = vmatprep.mubr.f32.mxu1 %v2621_v16  ;;  %4583 = vmatpush3.msra.mxu0 %v5827_v17  ;;  %v7184_v17 = vld [vmem:[#allocation13_spill] sm:$0xff] }
0x1c15   :  { %2773 = vmatmul.mubr.f32.gmra.mxu1 %v2620_v11  ;;  %4584 = vmatprep.subr.mxu0 %v5834_v18 }
0x1c16   :  { %4585 = vmatpush3.msra.mxu0 %v5834_v18  ;;  %3010 = vmatpush1.msra.mxu1 %v5923_v54  ;;  %v7185_v18 = vld [vmem:[#allocation14_spill] sm:$0xff]  ;;  %v7194_v54 = vld [vmem:[#allocation23_spill] sm:$0xff] }
0x1c17   :  { %4586 = vmatprep.subr.mxu0 %v5841_v20  ;;  %3011 = vmatprep.subr.mxu1 %v5929_v60  ;;  %v7195_v60 = vld [vmem:[#allocation24_spill] sm:$0xff] }
0x1c18   :  { %4587 = vmatpush3.msra.mxu0 %v5841_v20  ;;  %3012 = vmatpush1.msra.mxu1 %v5935_v63  ;;  %v7186_v20 = vld [vmem:[#allocation15_spill] sm:$0xff]  ;;  %v7196_v63 = vld [vmem:[#allocation25_spill] sm:$0xff] }
0x1c19   :  { %4588 = vmatprep.subr.mxu0 %v5850_v21  ;;  %3013 = vmatprep.subr.mxu1 %v5941_v0  ;;  %v7197_v0 = vld [vmem:[#allocation52_spill] sm:$0xff] }
0x1c1a   :  { %4589 = vmatpush3.msra.mxu0 %v5850_v21  ;;  %3014 = vmatpush1.msra.mxu1 %v5947_v2  ;;  %v7187_v21 = vld [vmem:[#allocation16_spill] sm:$0xff]  ;;  %v7198_v2 = vld [vmem:[#allocation54_spill] sm:$0xff] }
0x1c1b   :  { %4590 = vmatprep.subr.mxu0 %v5857_v22  ;;  %3015 = vmatprep.subr.mxu1 %v5953_v3  ;;  %v7199_v3 = vld [vmem:[#allocation56_spill] sm:$0xff] }
0x1c1c   :  { %4591 = vmatpush3.msra.mxu0 %v5857_v22  ;;  %3016 = vmatpush1.msra.mxu1 %v5959_v8  ;;  %v7188_v22 = vld [vmem:[#allocation17_spill] sm:$0xff]  ;;  %v7200_v8 = vld [vmem:[#allocation58_spill] sm:$0xff] }
0x1c1d   :  { %4592 = vmatprep.subr.mxu0 %v5864_v23  ;;  %3017 = vmatprep.subr.mxu1 %v5965_v24  ;;  %v7201_v24 = vld [vmem:[#allocation60_spill] sm:$0xff] }
0x1c1e   :  { %4593 = vmatpush3.msra.mxu0 %v5864_v23  ;;  %3018 = vmatpush1.msra.mxu1 %v5971_v25  ;;  %v7189_v23 = vld [vmem:[#allocation18_spill] sm:$0xff] }
0x1c1f   :  { %4594 = vmatprep.subr.mxu0 %v5871_v36  ;;  %3019 = vmatprep.subr.mxu1 %v5977_v58 }
0x1c20   :  { %4595 = vmatpush3.msra.mxu0 %v5871_v36  ;;  %3020 = vmatpush1.msra.mxu1 %v5983_v56  ;;  %v7190_v36 = vld [vmem:[#allocation19_spill] sm:$0xff] }
0x1c21   :  { %4597 = vmatmul.mubr.f32.vlgmr.msra.gmra.mxu0 %v5890_v50  ;;  %3021 = vmatprep.subr.mxu1 %v5989_v10  ;;  %v7191_v50 = vld [vmem:[#allocation20_spill] sm:$0xff] }
0x1c22   :  { %3022 = vmatpush1.msra.mxu1 %v5995_v26  ;;  %3055 = vmatprep.mubr.f32.mxu1 %v7131_v31  ;;  %v6600_v26 = vld [vmem:[%s7008_s17] ss:$0 sm:$0xff] }
0x1c23   :  { %3084 = vmatprep.subr.mxu1 %v6001_v27  ;;  %4269 = vmatprep.subr.mxu0 %v6009_v12 }
0x1c24   :  { %4270 = vmatpush3.msra.mxu0 %v6014_v28 }
0x1c25   :  { %4271 = vmatprep.subr.mxu0 %v6019_v14 }
0x1c26   :  { %4272 = vmatpush3.msra.mxu0 %v6025_v30 }
0x1c27   :  { %4273 = vmatprep.subr.mxu0 %v6031_v32 }
0x1c28   :  { %4274 = vmatpush3.msra.mxu0 %v6037_v34 }
0x1c29   :  { %4275 = vmatprep.subr.mxu0 %v6043_v19 }
0x1c2a   :  { %4276 = vmatpush3.msra.mxu0 %v6049_v35 }
0x1c2b   :  { %4277 = vmatprep.subr.mxu0 %v7182_v13 }
0x1c2c   :  { %4278 = vmatpush3.msra.mxu0 %v7183_v15 }
0x1c2d   :  { %4279 = vmatprep.subr.mxu0 %v7184_v17 }
0x1c2e   :  { %4280 = vmatpush3.msra.mxu0 %v7185_v18 }
0x1c2f   :  { %4281 = vmatprep.subr.mxu0 %v7186_v20 }
0x1c30   :  { %4282 = vmatpush3.msra.mxu0 %v7187_v21 }
0x1c31   :  { %4283 = vmatprep.subr.mxu0 %v7188_v22 }
0x1c32   :  { %4284 = vmatpush3.msra.mxu0 %v7189_v23 }
0x1c33   :  { %4285 = vmatprep.subr.mxu0 %v7190_v36 }
0x1c34   :  { %4286 = vmatpush3.msra.mxu0 %v7191_v50 }
0x1c35   :  { %4287 = vmatprep.subr.mxu0 %v7192_v51 }
0x1c36   :  { %4288 = vmatpush3.msra.mxu0 %v7193_v53 }
0x1c37   :  { %4289 = vmatprep.subr.mxu0 %v7194_v54 }
0x1c38   :  { %4290 = vmatpush3.msra.mxu0 %v7195_v60 }
0x1c39   :  { %4291 = vmatprep.subr.mxu0 %v6139_v33 }
0x1c3a   :  { %4292 = vmatpush3.msra.mxu0 %v7196_v63 }
0x1c3b   :  { %4293 = vmatprep.subr.mxu0 %v6151_v29 }
0x1c3c   :  { %4294 = vmatpush3.msra.mxu0 %v6312_v39 }
0x1c3d   :  { %4295 = vmatprep.subr.mxu0 %v6322_v44 }
0x1c3e   :  { %4296 = vmatpush3.msra.mxu0 %v7197_v0 }
0x1c3f   :  { %4297 = vmatprep.subr.mxu0 %v7198_v2 }
0x1c40   :  { %4298 = vmatpush3.msra.mxu0 %v7199_v3 }
0x1c41   :  { %4299 = vmatprep.subr.mxu0 %v7200_v8 }
0x1c42   :  { %4300 = vmatpush3.msra.mxu0 %v7201_v24 }
0x1cc1   :  { %v4207_v25 = vpop.f32.mrf.mxu0 }
0x1cc3   :  { %v4208_v33 = vpop.f32.mrf.mxu0 }
0x1cc4   :  { %v4209_v29 = vadd.f32 %v4208_v33, %v4207_v25 }
0x1cc5   :  { %v4210_v58 = vpop.f32.mrf.mxu0 }
0x1cc6   :  { %v2695_v30 = vadd.f32 %v4209_v29, %v6600_v26 }
0x1cc7   :  { %v4211_v56 = vpop.f32.mrf.mxu0 }
0x1cc8   :  { %v4212_v12 = vadd.f32 %v4211_v56, %v4210_v58 }
0x1cca   :  { %v2700_v34 = vadd.f32 %v4212_v12, %v6600_v26 }
0x1cd1   :  { %v4245_v10 = vpop.f32.mrf.mxu1 }
0x1cd3   :  { %v4246_v27 = vpop.f32.mrf.mxu1 }
0x1cd4   :  { %v4247_v28 = vadd.f32 %v4246_v27, %v4245_v10 }
0x1cd5   :  { %v4248_v14 = vpop.f32.mrf.mxu1 }
0x1cd6   :  { %v2770_v19 = vadd.f32 %v4247_v28, %v2695_v30 }
0x1cd7   :  { %v4249_v32 = vpop.f32.mrf.mxu1 }
0x1cd8   :  { %v4250_v35 = vadd.f32 %v4249_v32, %v4248_v14  ;;  %v2779_v43 = vsel %vm2778_vm1, %v2770_v19, -inf }
0x1cda   :  { %v2775_v42 = vadd.f32 %v4250_v35, %v2700_v34 }
0x1cdc   :  { %v2780_v41 = vsel %vm2778_vm1, %v2775_v42, -inf }
0x1cdd   :  { %v2781_v44 = vmax.f32 %v2779_v43, %v2780_v41 }
0x1cdf   :  { %v2782_v46 = vrot.slane %v2781_v44, 4 }
0x1ce1   :  { %v2783_v47 = vmax.f32 %v2781_v44, %v2782_v46  ;;  %v4598_v48 = vpop.f32.mrf.mxu0  ;;  %v7202_v46 = vmov 1  }
0x1ce2   :  { %v2931_v57 = vmax.f32 %v4598_v48, 0.0  ;;  %v2947_v39 = vsub.f32 0.0, %v4598_v48 }
0x1ce3   :  { %v2784_v49 = vrot.slane %v2783_v47, 2  ;;  %v2921_v4 = vpop.f32.mrf.mxu0 }
0x1ce4   :  { %4818 = vrsqrt.f32 %v2931_v57  ;;  %v2949_v5 = vmax.f32 %v2947_v39, 0.0  ;;  %v2930_v40 = vmax.f32 %v2921_v4, 0.0  ;;  %v2946_v61 = vsub.f32 0.0, %v2921_v4 }
0x1ce5   :  { %v2785_v7 = vmax.f32 %v2783_v47, %v2784_v49  ;;  %vm2941_vm3 = vcmp.eq.f32.partialorder %v2931_v57, inf  ;;  %vm2943_vm4 = vcmp.eq.f32.partialorder %v2931_v57, 0.0  ;;  %v2944_v20 = vand.u32 2147483648, %v2931_v57 }
0x1ce6   :  { %4820 = vrsqrt.f32 %v2949_v5  ;;  %v2948_v59 = vmax.f32 %v2946_v61, 0.0  ;;  %vm2959_vm5 = vcmp.eq.f32.partialorder %v2949_v5, inf  ;;  %vm2961_vm6 = vcmp.eq.f32.partialorder %v2949_v5, 0.0 }
0x1ce7   :  { %v2786_v55 = vrot.slane %v2785_v7, 1  ;;  %4822 = vrsqrt.f32 %v2930_v40  ;;  %v2962_v23 = vand.u32 2147483648, %v2949_v5  ;;  %vm2934_vm8 = vcmp.eq.f32.partialorder %v2930_v40, inf }
0x1ce8   :  { %4824 = vrsqrt.f32 %v2948_v59  ;;  %v2937_v51 = vand.u32 2147483648, %v2930_v40  ;;  %vm2952_vm9 = vcmp.eq.f32.partialorder %v2948_v59, inf  ;;  %v2955_v0 = vand.u32 2147483648, %v2948_v59 }
0x1ce9   :  { %v2787_v9 = vmax.f32 %v2785_v7, %v2786_v55  ;;  %vm2936_vm10 = vcmp.eq.f32.partialorder %v2930_v40, 0.0  ;;  %vm2954_vm11 = vcmp.eq.f32.partialorder %v2948_v59, 0.0  ;;  %v7203_v47 = vmov 0  }
0x1ceb   :  { %v2788_v52 = vsub.f32 %v2770_v19, %v2787_v9  ;;  %v2789_v45 = vsub.f32 %v2775_v42, %v2787_v9 }
0x1ced   :  { %v2790_v38 = vmul.f32 1.442695, %v2788_v52  ;;  %v2792_v16 = vmul.f32 1.442695, %v2789_v45  ;;  %v4860_v52 = vld [vmem:[%s7109_s23 + $0x8] sm:$0xff] }
0x1cef   :  { %4826 = vpow2.f32 %v2790_v38  ;;  %v4861_v38 = vld [vmem:[%s7109_s23] sm:$0xff] }
0x1cf0   :  { %4828 = vpow2.f32 %v2792_v16 }
0x1cf1   :  { %v4819_v11 = vpop.eup %4818 }
0x1cf2   :  { %v2940_v13 = vmul.f32 %v4819_v11, %v2931_v57 }
0x1cf3   :  { %v4821_v15 = vpop.eup %4820 }
0x1cf4   :  { %v4823_v17 = vpop.eup %4822  ;;  %v2942_v18 = vsel %vm2941_vm3, %v2931_v57, %v2940_v13  ;;  %v2958_v21 = vmul.f32 %v4821_v15, %v2949_v5 }
0x1cf5   :  { %v4825_v22 = vpop.eup %4824  ;;  %v2933_v36 = vmul.f32 %v4823_v17, %v2930_v40  ;;  %v2945_v54 = vsel %vm2943_vm4, %v2944_v20, %v2942_v18  ;;  %vm3736_vm4 = vcmask 517120  }
0x1cf6   :  { %v2960_v50 = vsel %vm2959_vm5, %v2949_v5, %v2958_v21  ;;  %v2951_v53 = vmul.f32 %v4825_v22, %v2948_v59 }
0x1cf7   :  { %v2963_v60 = vsel %vm2961_vm6, %v2962_v23, %v2960_v50  ;;  %v2935_v63 = vsel %vm2934_vm8, %v2930_v40, %v2933_v36 }
0x1cf8   :  { %v6606_v2 = vsub.f32 %v2945_v54, %v2963_v60  ;;  %v2953_v3 = vsel %vm2952_vm9, %v2948_v59, %v2951_v53  ;;  %v2938_v8 = vsel %vm2936_vm10, %v2937_v51, %v2935_v63 }
0x1cf9   :  { %v2956_v24 = vsel %vm2954_vm11, %v2955_v0, %v2953_v3 }
0x1cfa   :  { %v2967_v25 = vmul.f32 %v6606_v2, %v6606_v2  ;;  %v6610_v33 = vsub.f32 %v2938_v8, %v2956_v24 }
0x1cfc   :  { %v4827_v58 = vpop.eup %4826  ;;  %v2971_v56 = vsel %vm2085_vm7, %v2967_v25, 0.0  ;;  %v2966_v10 = vmul.f32 %v6610_v33, %v6610_v33 }
0x1cfd   :  { %v4829_v29 = vpop.eup %4828  ;;  %v2794_v27 = vsel %vm2778_vm1, %v4827_v58, 0.0  ;;  %2972 = vadd.xlane.f32.xlu1 %v2971_v56  ;;  %v7204_v56 = vld [vmem:[#allocation26_spill] sm:$0xff] }
0x1cfe   :  { %v2795_v12 = vsel %vm2778_vm1, %v4829_v29, 0.0  ;;  %v2968_v28 = vsel %vm2085_vm7, %v2966_v10, 0.0 }
0x1cff   :  { %v2796_v14 = vadd.f32 %v2795_v12, %v2794_v27  ;;  %2969 = vadd.xlane.f32.xlu0 %v2968_v28  ;;  %v7206_v12 = vld [vmem:[#allocation28_spill] sm:$0xff] }
0x1d01   :  { %v2797_v30 = vrot.slane %v2796_v14, 4 }
0x1d03   :  { %v2798_v32 = vadd.f32 %v2797_v30, %v2796_v14  ;;  %v7207_v14 = vld [vmem:[#allocation29_spill] sm:$0xff]  ;;  %v7209_v30 = vld [vmem:[#allocation31_spill] sm:$0xff] }
0x1d05   :  { %v2799_v34 = vrot.slane %v2798_v32, 2 }
0x1d07   :  { %v2800_v19 = vadd.f32 %v2799_v34, %v2798_v32  ;;  %v7210_v32 = vld [vmem:[#allocation32_spill] sm:$0xff]  ;;  %v7211_v34 = vld [vmem:[#allocation33_spill] sm:$0xff] }
0x1d09   :  { %v2801_v35 = vrot.slane %v2800_v19, 1 }
0x1d0b   :  { %v2802_v42 = vadd.f32 %v2801_v35, %v2800_v19  ;;  %v7213_v19 = vld [vmem:[#allocation35_spill] sm:$0xff]  ;;  %v7214_v35 = vld [vmem:[#allocation36_spill] sm:$0xff] }
0x1d0d   :  { %4830 = vrcp.f32 %v2802_v42  ;;  %v7215_v42 = vld [vmem:[#allocation37_spill] sm:$0xff] }
0x1d1a   :  { %v4831_v43 = vpop.eup %4830 }
0x1d1b   :  { %v2805_v41 = vmul.f32 %v4831_v43, %v4829_v29  ;;  %v2804_v44 = vmul.f32 %v4831_v43, %v4827_v58  ;;  %v7205_v29 = vld [vmem:[#allocation27_spill] sm:$0xff]  ;;  %v7216_v43 = vld [vmem:[#allocation38_spill] sm:$0xff] }
0x1d1d   :  { %2813 = vperm.xlu1 %4721, %v2805_v41   ;;  %2808 = vperm.xlu0 %4719, %v2804_v44  }
0x1d21   :  { %4722 = vset.pattern.permute.xlu1 %v7202_v46  ;;  %4723 = vset.pattern.permute.xlu0 %v7202_v46 }
0x1d22   :  { %2830 = vperm.xlu1 %4722, %v2804_v44   ;;  %2834 = vperm.xlu0 %4723, %v2805_v41   ;;  %v7217_v41 = vld [vmem:[#allocation39_spill] sm:$0xff]  ;;  %v7218_v44 = vld [vmem:[#allocation40_spill] sm:$0xff] }
0x1d26   :  { %4724 = vset.pattern.permute.xlu1 %v7203_v47  ;;  %v7219_v47 = vld [vmem:[#allocation41_spill] sm:$0xff] }
0x1d86   :  { %v2973_v48 = vpop.xlane.xlu1 %2972 }
0x1d88   :  { %v2970_v57 = vpop.xlane.xlu0 %2969 }
0x1d89   :  { %v2974_v39 = vadd.f32 %v2973_v48, %v2970_v57  ;;  %v7220_v48 = vld [vmem:[#allocation42_spill] sm:$0xff]  ;;  %v7221_v57 = vld [vmem:[#allocation43_spill] sm:$0xff] }
0x1d8b   :  { %v2975_v49 = vrot.slane %v2974_v39, 4 }
0x1d8d   :  { %v2976_v4 = vadd.f32 %v2975_v49, %v2974_v39  ;;  %v7222_v39 = vld [vmem:[#allocation44_spill] sm:$0xff]  ;;  %v7223_v49 = vld [vmem:[#allocation45_spill] sm:$0xff] }
0x1d8f   :  { %v2977_v5 = vrot.slane %v2976_v4, 2 }
0x1d91   :  { %v2978_v40 = vadd.f32 %v2977_v5, %v2976_v4  ;;  %v7224_v4 = vld [vmem:[#allocation46_spill] sm:$0xff]  ;;  %v7225_v5 = vld [vmem:[#allocation47_spill] sm:$0xff] }
0x1d93   :  { %v2979_v61 = vrot.slane %v2978_v40, 1 }
0x1d95   :  { %v2980_v7 = vadd.f32 %v2979_v61, %v2978_v40  ;;  %v7226_v40 = vld [vmem:[#allocation48_spill] sm:$0xff]  ;;  %v7227_v61 = vld [vmem:[#allocation49_spill] sm:$0xff] }
0x1d97   :  { %v2981_v59 = vmax.f32 %v2980_v7, 1e-24  ;;  %v7228_v7 = vld [vmem:[#allocation50_spill] sm:$0xff] }
0x1d98   :  { %v2814_v55 = vpop.permute.xlu1 %2813  ;;  %v2809_v9 = vpop.permute.xlu0 %2808 }
0x1d99   :  { %4832 = vrsqrt.f32 %v2981_v59  ;;  %v2817_v45 = vmul.f32 %v4860_v52, %v2814_v55  ;;  %v2816_v16 = vmul.f32 %v4861_v38, %v2809_v9  ;;  %v7229_v59 = vld [vmem:[#allocation51_spill] sm:$0xff]  ;;  %v7230_v55 = vld [vmem:[#allocation53_spill] sm:$0xff] }
0x1d9a   :  { %v7231_v9 = vld [vmem:[#allocation55_spill] sm:$0xff] }
0x1d9b   :  { %v2819_v11 = vsel %vm2085_vm7, %v2817_v45, 0.0  ;;  %v2818_v13 = vsel %vm2085_vm7, %v2816_v16, 0.0  ;;  %v7233_v45 = vld [vmem:[#allocation59_spill] sm:$0xff]  ;;  %v7235_v16 = vld [vmem:[#allocation62_spill] sm:$0xff] }
0x1d9c   :  { %v2820_v15 = vadd.f32 %v2819_v11, %v2818_v13  ;;  %v7236_v11 = vld [vmem:[#allocation63_spill] sm:$0xff]  ;;  %v7237_v13 = vld [vmem:[#allocation64_spill] sm:$0xff] }
0x1d9d   :  { %v2831_v17 = vpop.permute.xlu1 %2830  ;;  %v2835_v18 = vpop.permute.xlu0 %2834 }
0x1d9e   :  { %v2821_v20 = vrot.slane %v2820_v15, 4  ;;  %v2837_v21 = vmul.f32 %v4861_v38, %v2831_v17  ;;  %v2838_v22 = vmul.f32 %v4860_v52, %v2835_v18  ;;  %v7232_v52 = vld [vmem:[#allocation57_spill] sm:$0xff]  ;;  %v7239_v17 = vld [vmem:[#allocation66_spill] sm:$0xff]  ;;  %v7240_v18 = vld [vmem:[#allocation67_spill] sm:$0xff] }
0x1d9f   :  { %v7234_v38 = vld [vmem:[#allocation61_spill] sm:$0xff] }
0x1da0   :  { %v2822_v23 = vadd.f32 %v2821_v20, %v2820_v15  ;;  %v2839_v36 = vsel %vm2085_vm7, %v2837_v21, 0.0  ;;  %v2840_v50 = vsel %vm2085_vm7, %v2838_v22, 0.0  ;;  %v7238_v15 = vld [vmem:[#allocation65_spill] sm:$0xff]  ;;  %v7241_v20 = vld [vmem:[#allocation68_spill] sm:$0xff]  ;;  %v7243_v22 = vld [vmem:[#allocation70_spill] sm:$0xff] }
0x1da1   :  { %v2841_v51 = vadd.f32 %v2840_v50, %v2839_v36  ;;  %v7242_v21 = vld [vmem:[#allocation69_spill] sm:$0xff]  ;;  %v7245_v36 = vld [vmem:[#allocation72_spill] sm:$0xff] }
0x1da2   :  { %v2823_v53 = vrot.slane %v2822_v23, 2  ;;  %v7246_v50 = vld [vmem:[#allocation73_spill] sm:$0xff] }
0x1da3   :  { %v2842_v54 = vrot.slane %v2841_v51, 4 }
0x1da4   :  { %v2824_v60 = vadd.f32 %v2823_v53, %v2822_v23  ;;  %v7244_v23 = vld [vmem:[#allocation71_spill] sm:$0xff] }
0x1da5   :  { %v2843_v63 = vadd.f32 %v2842_v54, %v2841_v51  ;;  %v7247_v51 = vld [vmem:[#allocation74_spill] sm:$0xff]  ;;  %v7248_v53 = vld [vmem:[#allocation75_spill] sm:$0xff]  ;;  %v7249_v54 = vld [vmem:[#allocation76_spill] sm:$0xff] }
0x1da6   :  { %v4833_v0 = vpop.eup %4832  ;;  %v2825_v3 = vrot.slane %v2824_v60, 1 }
0x1da7   :  { %v2844_v8 = vrot.slane %v2843_v63, 2  ;;  %v2983_v24 = vmul.f32 %v4833_v0, %v6610_v33  ;;  %v2984_v27 = vmul.f32 %v4833_v0, %v6606_v2  ;;  %v7208_v33 = vld [vmem:[#allocation30_spill] sm:$0xff] }
0x1da8   :  { %v2826_v25 = vadd.f32 %v2825_v3, %v2824_v60  ;;  %v7212_v2 = vld [vmem:[#allocation34_spill] sm:$0xff]  ;;  %v7250_v60 = vld [vmem:[#allocation77_spill] sm:$0xff] }
0x1da9   :  { %v2845_v58 = vadd.f32 %v2844_v8, %v2843_v63  ;;  %4009 = vmatmul.mubr.msk.f32.vlgmr.msra.gmra.mxu1 %vm2085_vm7, %v2983_v24 }
0x1daa   :  { %2828 = vst.msk [vmem:[#allocation3] sm:$0x1] %vm2827_vm12, %v2826_v25  ;;  %3085 = vmatpush1.msra.mxu1 %v7204_v56  ;;  %3061 = vmatprep.mubr.f32.mxu1 %v7131_v31 }
0x1dab   :  { %v2846_v10 = vrot.slane %v2845_v58, 1  ;;  %3086 = vmatprep.subr.mxu1 %v7205_v29 }
0x1dac   :  { %3087 = vmatpush1.msra.mxu1 %v7206_v12 }
0x1dad   :  { %v2847_v28 = vadd.f32 %v2846_v10, %v2845_v58  ;;  %3088 = vmatprep.subr.mxu1 %v7207_v14  ;;  %4010 = vmatmul.mubr.msk.f32.gmra.mxu1 %vm2085_vm7, %v2984_v27 }
0x1dae   :  { %3089 = vmatpush1.msra.mxu1 %v7208_v33  ;;  %3132 = vmatprep.mubr.f32.mxu1 %v7131_v31 }
0x1daf   :  { %2848 = vst.msk [vmem:[#allocation3 + $0x1] sm:$0x1] %vm2827_vm12, %v2847_v28  ;;  %3090 = vmatprep.subr.mxu1 %v7209_v30 }
0x1db0   :  { %3091 = vmatpush1.msra.mxu1 %v7210_v32 }
0x1db1   :  { %3092 = vmatprep.subr.mxu1 %v7211_v34 }
0x1db2   :  { %3093 = vmatpush1.msra.mxu1 %v7212_v2 }
0x1db3   :  { %3094 = vmatprep.subr.mxu1 %v7213_v19 }
0x1db4   :  { %3095 = vmatpush1.msra.mxu1 %v7214_v35 }
0x1db5   :  { %3096 = vmatprep.subr.mxu1 %v7215_v42 }
0x1db6   :  { %3097 = vmatpush1.msra.mxu1 %v7216_v43 }
0x1db7   :  { %3098 = vmatprep.subr.mxu1 %v7217_v41 }
0x1db8   :  { %3099 = vmatpush1.msra.mxu1 %v7218_v44 }
0x1db9   :  { %4011 = vmatmul.mubr.msk.f32.vlgmr.msra.gmra.mxu1 %vm2085_vm7, %v2983_v24  ;;  %4307 = vmatprep.subr.mxu1 %v7219_v47 }
0x1dba   :  { %3138 = vmatprep.mubr.f32.mxu1 %v7131_v31  ;;  %4308 = vmatpush3.msra.mxu1 %v7220_v48 }
0x1dbb   :  { %4309 = vmatprep.subr.mxu1 %v7221_v57 }
0x1dbc   :  { %4310 = vmatpush3.msra.mxu1 %v7222_v39 }
0x1dbd   :  { %4012 = vmatmul.mubr.msk.f32.gmra.mxu1 %vm2085_vm7, %v2984_v27  ;;  %4311 = vmatprep.subr.mxu1 %v7223_v49 }
0x1dbe   :  { %4312 = vmatpush3.msra.mxu1 %v7224_v4 }
0x1dbf   :  { %4313 = vmatprep.subr.mxu1 %v7225_v5 }
0x1dc0   :  { %4314 = vmatpush3.msra.mxu1 %v7226_v40 }
0x1dc1   :  { %4315 = vmatprep.subr.mxu1 %v7227_v61 }
0x1dc2   :  { %4316 = vmatpush3.msra.mxu1 %v7228_v7 }
0x1dc3   :  { %4317 = vmatprep.subr.mxu1 %v7229_v59 }
0x1dc4   :  { %4318 = vmatpush3.msra.mxu1 %v7230_v55 }
0x1dc5   :  { %4319 = vmatprep.subr.mxu1 %v7231_v9 }
0x1dc6   :  { %4320 = vmatpush3.msra.mxu1 %v7232_v52 }
0x1dc7   :  { %4321 = vmatprep.subr.mxu1 %v7233_v45 }
0x1dc8   :  { %4322 = vmatpush3.msra.mxu1 %v7234_v38 }
0x1dc9   :  { %4323 = vmatprep.subr.mxu1 %v7235_v16 }
0x1dca   :  { %4324 = vmatpush3.msra.mxu1 %v7236_v11 }
0x1dcb   :  { %4325 = vmatprep.subr.mxu1 %v7237_v13 }
0x1dcc   :  { %4326 = vmatpush3.msra.mxu1 %v7238_v15 }
0x1dcd   :  { %4327 = vmatprep.subr.mxu1 %v7239_v17 }
0x1dce   :  { %4328 = vmatpush3.msra.mxu1 %v7240_v18 }
0x1dcf   :  { %4329 = vmatprep.subr.mxu1 %v7241_v20 }
0x1dd0   :  { %4330 = vmatpush3.msra.mxu1 %v7242_v21 }
0x1dd1   :  { %4331 = vmatprep.subr.mxu1 %v7243_v22 }
0x1dd2   :  { %4332 = vmatpush3.msra.mxu1 %v7244_v23 }
0x1dd3   :  { %4333 = vmatprep.subr.mxu1 %v7245_v36 }
0x1dd4   :  { %4334 = vmatpush3.msra.mxu1 %v7246_v50 }
0x1dd5   :  { %4335 = vmatprep.subr.mxu1 %v7247_v51 }
0x1dd6   :  { %4336 = vmatpush3.msra.mxu1 %v7248_v53 }
0x1dd7   :  { %4337 = vmatprep.subr.mxu1 %v7249_v54 }
0x1dd8   :  { %4338 = vmatpush3.msra.mxu1 %v7250_v60 }
0x1e69   :  { %v3057_v63 = vpop.f32.mrf.mxu1 }
0x1e6a   :  { %v3058_v0 = vadd.f32 %v3057_v63, %v6495_v62 }
0x1e6b   :  { %v3059_v3 = vpop.f32.mrf.mxu1 }
0x1e6c   :  { %v3060_v8 = vadd.f32 %v3059_v3, %v6498_v37  ;;  %v3145_v58 = vmax.f32 %v3058_v0, 0.0 }
0x1e6d   :  { %v3063_v24 = vpop.f32.mrf.mxu1 }
0x1e6e   :  { %v3146_v25 = vmax.f32 %v3060_v8, 0.0  ;;  %v3064_v56 = vadd.f32 %v3063_v24, %v6495_v62 }
0x1e6f   :  { %v3065_v10 = vpop.f32.mrf.mxu1 }
0x1e70   :  { %v3066_v29 = vadd.f32 %v3065_v10, %v6498_v37  ;;  %3217 = vmatprep.mubr.f32.mxu0 %v3146_v25  ;;  %v3149_v12 = vmax.f32 %v3064_v56, 0.0  ;;  %v3406_v25 = vld [vmem:[%s7009_s18 + $0xf8] sm:$0xff]  ;;  %v3404_v56 = vld [vmem:[%s7009_s18 + $0xe8] sm:$0xff] }
0x1e71   :  { %3218 = vmatmul.mubr.f32.vlgmr.msra.gmra.mxu0 %v3145_v58  ;;  %3430 = vmatprep.subr.mxu0 %v3406_v25  ;;  %v3405_v58 = vld [vmem:[%s7009_s18 + $0xf0] sm:$0xff]  ;;  %v3390_v10 = vld [vmem:[%s7009_s18 + $0x78] sm:$0xff] }
0x1e72   :  { %v3150_v27 = vmax.f32 %v3066_v29, 0.0  ;;  %3431 = vmatpush1.msra.mxu0 %v3405_v58  ;;  %3505 = vmatprep.subr.mxu1 %v3390_v10  ;;  %v3389_v29 = vld [vmem:[%s7009_s18 + $0x70] sm:$0xff]  ;;  %v4864_v10 = vld [vmem:[%s7110_s4 + $0x78] sm:$0xff] }
0x1e73   :  { %3432 = vmatprep.subr.mxu0 %v3404_v56 }
0x1e74   :  { %3222 = vmatprep.mubr.f32.mxu0 %v3150_v27  ;;  %v3402_v27 = vld [vmem:[%s7009_s18 + $0xd8] sm:$0xff] }
0x1e75   :  { %3223 = vmatmul.mubr.f32.gmra.mxu0 %v3149_v12  ;;  %v3388_v12 = vld [vmem:[%s7009_s18 + $0x68] sm:$0xff] }
0x1e76   :  { %3478 = vmatprep.mubr.f32.mxu0 %v7131_v31 }
0x1e79   :  { %v3134_v28 = vpop.f32.mrf.mxu1 }
0x1e7a   :  { %v3135_v14 = vadd.f32 %v3134_v28, %v6512_v6  ;;  %v3401_v28 = vld [vmem:[%s7009_s18 + $0xd0] sm:$0xff] }
0x1e7b   :  { %v3136_v33 = vpop.f32.mrf.mxu1 }
0x1e7c   :  { %v3137_v30 = vadd.f32 %v3136_v33, %v6516_v1  ;;  %v3147_v62 = vmax.f32 %v3135_v14, 0.0  ;;  %v3387_v14 = vld [vmem:[%s7009_s18 + $0x60] sm:$0xff]  ;;  %v3400_v33 = vld [vmem:[%s7009_s18 + $0xc8] sm:$0xff] }
0x1e7d   :  { %v3140_v32 = vpop.f32.mrf.mxu1 }
0x1e7e   :  { %v3148_v34 = vmax.f32 %v3137_v30, 0.0  ;;  %v3141_v2 = vadd.f32 %v3140_v32, %v6512_v6  ;;  %v3386_v30 = vld [vmem:[%s7009_s18 + $0x58] sm:$0xff]  ;;  %v3399_v32 = vld [vmem:[%s7009_s18 + $0xc0] sm:$0xff] }
0x1e7f   :  { %v3142_v37 = vpop.f32.mrf.mxu1 }
0x1e80   :  { %v3143_v19 = vadd.f32 %v3142_v37, %v6516_v1  ;;  %3292 = vmatprep.mubr.f32.mxu1 %v3148_v34  ;;  %v3151_v42 = vmax.f32 %v3141_v2, 0.0  ;;  %v3385_v34 = vld [vmem:[%s7009_s18 + $0x50] sm:$0xff]  ;;  %v3384_v2 = vld [vmem:[%s7009_s18 + $0x48] sm:$0xff] }
0x1e81   :  { %3293 = vmatmul.mubr.f32.vlgmr.msra.gmra.mxu1 %v3147_v62  ;;  %v3398_v62 = vld [vmem:[%s7009_s18 + $0xb8] sm:$0xff]  ;;  %v3397_v37 = vld [vmem:[%s7009_s18 + $0xb0] sm:$0xff] }
0x1e82   :  { %v3152_v35 = vmax.f32 %v3143_v19, 0.0  ;;  %3506 = vmatpush1.msra.mxu1 %v3389_v29  ;;  %v3383_v19 = vld [vmem:[%s7009_s18 + $0x40] sm:$0xff]  ;;  %v4866_v29 = vld [vmem:[%s7110_s4 + $0x68] sm:$0xff] }
0x1e83   :  { %3507 = vmatprep.subr.mxu1 %v3388_v12  ;;  %v4868_v12 = vld [vmem:[%s7110_s4 + $0x58] sm:$0xff] }
0x1e84   :  { %3297 = vmatprep.mubr.f32.mxu1 %v3152_v35  ;;  %3508 = vmatpush1.msra.mxu1 %v3387_v14  ;;  %v3396_v35 = vld [vmem:[%s7009_s18 + $0xa8] sm:$0xff] }
0x1e85   :  { %3298 = vmatmul.mubr.f32.gmra.mxu1 %v3151_v42  ;;  %3509 = vmatprep.subr.mxu1 %v3386_v30  ;;  %v3382_v42 = vld [vmem:[%s7009_s18 + $0x38] sm:$0xff]  ;;  %v4870_v14 = vld [vmem:[%s7110_s4 + $0x48] sm:$0xff] }
0x1e86   :  { %3553 = vmatprep.mubr.f32.mxu1 %v7131_v31  ;;  %3510 = vmatpush1.msra.mxu1 %v3385_v34  ;;  %v4872_v30 = vld [vmem:[%s7110_s4 + $0x38] sm:$0xff]  ;;  %v4874_v34 = vld [vmem:[%s7110_s4 + $0x28] sm:$0xff] }
0x1e87   :  { %3511 = vmatprep.subr.mxu1 %v3384_v2  ;;  %v4876_v2 = vld [vmem:[%s7110_s4 + $0x18] sm:$0xff] }
0x1e88   :  { %3512 = vmatpush1.msra.mxu1 %v3383_v19  ;;  %v4878_v19 = vld [vmem:[%s7110_s4 + $0x8] sm:$0xff] }
0x1e89   :  { %3513 = vmatprep.subr.mxu1 %v3382_v42  ;;  %v3560_v42 = vld [vmem:[%s7010_s19] sm:$0x3] }
0x1f31   :  { %v4301_v43 = vpop.f32.mrf.mxu0 }
0x1f33   :  { %v4302_v41 = vpop.f32.mrf.mxu0 }
0x1f34   :  { %v4303_v57 = vadd.f32 %v4302_v41, %v4301_v43  ;;  %v3395_v43 = vld [vmem:[%s7009_s18 + $0xa0] sm:$0xff]  ;;  %v3381_v41 = vld [vmem:[%s7009_s18 + $0x30] sm:$0xff] }
0x1f35   :  { %v4304_v44 = vpop.f32.mrf.mxu0  ;;  %3514 = vmatpush1.msra.mxu1 %v3381_v41  ;;  %v7251_v41 = vld [vmem:[#allocation7_spill] sm:$0xff] }
0x1f36   :  { %v3220_v1 = vadd.f32 %v4303_v57, %v6600_v26  ;;  %v3379_v57 = vld [vmem:[%s7009_s18 + $0x20] sm:$0xff] }
0x1f37   :  { %v4305_v47 = vpop.f32.mrf.mxu0 }
0x1f38   :  { %v4306_v49 = vadd.f32 %v4305_v47, %v4304_v44  ;;  %v3394_v44 = vld [vmem:[%s7009_s18 + $0x98] sm:$0xff]  ;;  %v3380_v47 = vld [vmem:[%s7009_s18 + $0x28] sm:$0xff] }
0x1f39   :  { %3515 = vmatprep.subr.mxu1 %v3380_v47 }
0x1f3a   :  { %v3225_v40 = vadd.f32 %v4306_v49, %v6600_v26  ;;  %v3378_v49 = vld [vmem:[%s7009_s18 + $0x18] sm:$0xff]  ;;  %3516 = vmatpush1.msra.mxu1 %v3379_v57 }
0x1f3b   :  { %3517 = vmatprep.subr.mxu1 %v3378_v49  ;;  %v7252_v57 = vld [vmem:[#allocation8_spill] sm:$0xff] }
0x1f41   :  { %v4339_v48 = vpop.f32.mrf.mxu1 }
0x1f43   :  { %v4340_v39 = vpop.f32.mrf.mxu1 }
0x1f44   :  { %v4341_v6 = vadd.f32 %v4340_v39, %v4339_v48  ;;  %v3393_v48 = vld [vmem:[%s7009_s18 + $0x90] sm:$0xff]  ;;  %v3392_v39 = vld [vmem:[%s7009_s18 + $0x88] sm:$0xff] }
0x1f45   :  { %v4342_v4 = vpop.f32.mrf.mxu1 }
0x1f46   :  { %v3295_v61 = vadd.f32 %v4341_v6, %v3220_v1  ;;  %v3391_v6 = vld [vmem:[%s7009_s18 + $0x80] sm:$0xff]  ;;  %v3376_v1 = vld [vmem:[%s7009_s18 + $0x8] sm:$0xff] }
0x1f47   :  { %v4343_v5 = vpop.f32.mrf.mxu1 }
0x1f48   :  { %v4344_v7 = vadd.f32 %v4343_v5, %v4342_v4  ;;  %v3303_v55 = vsel %vm2778_vm1, %v3295_v61, -inf  ;;  %v3377_v4 = vld [vmem:[%s7009_s18 + $0x10] sm:$0xff]  ;;  %v3375_v5 = vld [vmem:[%s7009_s18] sm:$0xff] }
0x1f49   :  { %3518 = vmatpush1.msra.mxu1 %v3377_v4 }
0x1f4a   :  { %v3300_v59 = vadd.f32 %v4344_v7, %v3225_v40  ;;  %3519 = vmatprep.subr.mxu1 %v3376_v1 }
0x1f4b   :  { %3520 = vmatpush1.msra.mxu1 %v3375_v5  ;;  %v7253_v5 = vld [vmem:[#allocation10_spill] sm:$0xff] }
0x1f4c   :  { %v3304_v9 = vsel %vm2778_vm1, %v3300_v59, -inf  ;;  %4634 = vmatprep.subr.mxu1 %v7131_v31 }
0x1f4d   :  { %v3305_v52 = vmax.f32 %v3303_v55, %v3304_v9  ;;  %v4863_v9 = vld [vmem:[%s7109_s23 + $0x18] sm:$0xff] }
0x1f4f   :  { %v3306_v45 = vrot.slane %v3305_v52, 4 }
0x1f51   :  { %v3307_v38 = vmax.f32 %v3305_v52, %v3306_v45 }
0x1f53   :  { %v3308_v16 = vrot.slane %v3307_v38, 2 }
0x1f55   :  { %v3309_v11 = vmax.f32 %v3307_v38, %v3308_v16 }
0x1f57   :  { %v3310_v13 = vrot.slane %v3309_v11, 1 }
0x1f59   :  { %v3311_v15 = vmax.f32 %v3309_v11, %v3310_v13 }
0x1f5b   :  { %v3312_v17 = vsub.f32 %v3295_v61, %v3311_v15  ;;  %v3313_v18 = vsub.f32 %v3300_v59, %v3311_v15  ;;  %v4862_v61 = vld [vmem:[%s7109_s23 + $0x10] sm:$0xff] }
0x1f5d   :  { %v3314_v20 = vmul.f32 1.442695, %v3312_v17  ;;  %v3316_v21 = vmul.f32 1.442695, %v3313_v18 }
0x1f5f   :  { %4834 = vpow2.f32 %v3314_v20 }
0x1f60   :  { %4836 = vpow2.f32 %v3316_v21 }
0x1f6c   :  { %v4835_v26 = vpop.eup %4834 }
0x1f6d   :  { %v4837_v22 = vpop.eup %4836  ;;  %v3318_v23 = vsel %vm2778_vm1, %v4835_v26, 0.0 }
0x1f6e   :  { %v3319_v36 = vsel %vm2778_vm1, %v4837_v22, 0.0 }
0x1f6f   :  { %v3320_v50 = vadd.f32 %v3319_v36, %v3318_v23 }
0x1f71   :  { %v3321_v51 = vrot.slane %v3320_v50, 4 }
0x1f73   :  { %v3322_v53 = vadd.f32 %v3321_v51, %v3320_v50 }
0x1f75   :  { %v3323_v54 = vrot.slane %v3322_v53, 2 }
0x1f77   :  { %v3324_v60 = vadd.f32 %v3323_v54, %v3322_v53 }
0x1f79   :  { %v3325_v63 = vrot.slane %v3324_v60, 1 }
0x1f7b   :  { %v3326_v0 = vadd.f32 %v3325_v63, %v3324_v60 }
0x1f7d   :  { %4838 = vrcp.f32 %v3326_v0 }
0x1f8a   :  { %v4839_v3 = vpop.eup %4838 }
0x1f8b   :  { %v3328_v8 = vmul.f32 %v4839_v3, %v4835_v26  ;;  %v3329_v24 = vmul.f32 %v4839_v3, %v4837_v22  ;;  %v3373_v3 = vld [vmem:[#allocation3] sm:$0x3] }
0x1f8d   :  { %3332 = vperm.xlu1 %4724, %v3328_v8   ;;  %3354 = vperm.xlu0 %4723, %v3328_v8   ;;  %v3409_v8 = vrot.slane %v3373_v3, 1 }
0x1f91   :  { %3337 = vperm.xlu1 %4724, %v3329_v24  }
0x1f95   :  { %4725 = vset.pattern.permute.xlu1 %v7202_v46  ;;  %v3403_v46 = vld [vmem:[%s7009_s18 + $0xe0] sm:$0xff] }
0x1f96   :  { %3358 = vperm.xlu1 %4725, %v3329_v24   ;;  %3433 = vmatpush1.msra.mxu0 %v3403_v46  ;;  %v4865_v46 = vld [vmem:[%s7110_s4 + $0x70] sm:$0xff] }
0x1f97   :  { %3434 = vmatprep.subr.mxu0 %v3402_v27  ;;  %v4867_v27 = vld [vmem:[%s7110_s4 + $0x60] sm:$0xff] }
0x1f98   :  { %3435 = vmatpush1.msra.mxu0 %v3401_v28  ;;  %v4869_v28 = vld [vmem:[%s7110_s4 + $0x50] sm:$0xff] }
0x1f99   :  { %3436 = vmatprep.subr.mxu0 %v3400_v33  ;;  %v4871_v33 = vld [vmem:[%s7110_s4 + $0x40] sm:$0xff] }
0x1f9a   :  { %3437 = vmatpush1.msra.mxu0 %v3399_v32  ;;  %v4873_v32 = vld [vmem:[%s7110_s4 + $0x30] sm:$0xff] }
0x1f9b   :  { %3438 = vmatprep.subr.mxu0 %v3398_v62  ;;  %v4875_v62 = vld [vmem:[%s7110_s4 + $0x20] sm:$0xff] }
0x1f9c   :  { %3439 = vmatpush1.msra.mxu0 %v3397_v37  ;;  %v4877_v37 = vld [vmem:[%s7110_s4 + $0x10] sm:$0xff] }
0x1f9d   :  { %3440 = vmatprep.subr.mxu0 %v3396_v35  ;;  %v4879_v35 = vld [vmem:[%s7110_s4] sm:$0xff] }
0x1f9e   :  { %3441 = vmatpush1.msra.mxu0 %v3395_v43 }
0x1f9f   :  { %3442 = vmatprep.subr.mxu0 %v3394_v44  ;;  %v3565_v44 = vrot.slane %v3560_v42, %v7251_v41  ;;  %v3769_v41 = vld [vmem:[%s7011_s20 + $0x8] sm:$0xff] }
0x1fa0   :  { %3443 = vmatpush1.msra.mxu0 %v3393_v48 }
0x1fa1   :  { %3444 = vmatprep.subr.mxu0 %v3392_v39  ;;  %v3569_v39 = vrot.slane %v3560_v42, %v7252_v57  ;;  %v3770_v42 = vld [vmem:[%s7011_s20 + $0x10] sm:$0xff]  ;;  %v3776_v57 = vld [vmem:[%s7011_s20 + $0x40] sm:$0xff] }
0x1fa2   :  { %3445 = vmatpush1.msra.mxu0 %v3391_v6 }
0x1fa3   :  { %4599 = vmatprep.subr.mxu0 %v7131_v31 }
0x2008   :  { %v3333_v40 = vpop.permute.xlu1 %3332  ;;  %v3355_v55 = vpop.permute.xlu0 %3354 }
0x2009   :  { %v3340_v7 = vmul.f32 %v4862_v61, %v3333_v40  ;;  %v3361_v16 = vmul.f32 %v4862_v61, %v3355_v55 }
0x200b   :  { %v3342_v45 = vsel %vm2085_vm7, %v3340_v7, 0.0  ;;  %v3363_v18 = vsel %vm2085_vm7, %v3361_v16, 0.0  ;;  %v7254_v7 = vld [vmem:[#allocation9_spill] sm:$0xff] }
0x200c   :  { %v3338_v59 = vpop.permute.xlu1 %3337 }
0x200d   :  { %v3341_v52 = vmul.f32 %v4863_v9, %v3338_v59 }
0x200f   :  { %v3343_v38 = vsel %vm2085_vm7, %v3341_v52, 0.0 }
0x2010   :  { %v3344_v11 = vadd.f32 %v3343_v38, %v3342_v45 }
0x2011   :  { %v3359_v13 = vpop.permute.xlu1 %3358 }
0x2012   :  { %v3345_v15 = vrot.slane %v3344_v11, 4  ;;  %v3362_v17 = vmul.f32 %v4863_v9, %v3359_v13 }
0x2014   :  { %v3346_v20 = vadd.f32 %v3345_v15, %v3344_v11  ;;  %v3364_v21 = vsel %vm2085_vm7, %v3362_v17, 0.0 }
0x2015   :  { %v3365_v26 = vadd.f32 %v3364_v21, %v3363_v18 }
0x2016   :  { %v3347_v22 = vrot.slane %v3346_v20, 2 }
0x2017   :  { %v3366_v23 = vrot.slane %v3365_v26, 4 }
0x2018   :  { %v3348_v36 = vadd.f32 %v3347_v22, %v3346_v20 }
0x2019   :  { %v3367_v50 = vadd.f32 %v3366_v23, %v3365_v26 }
0x201a   :  { %v3349_v51 = vrot.slane %v3348_v36, 1 }
0x201b   :  { %v3368_v53 = vrot.slane %v3367_v50, 2 }
0x201c   :  { %v3350_v54 = vadd.f32 %v3349_v51, %v3348_v36 }
0x201d   :  { %v3369_v60 = vadd.f32 %v3368_v53, %v3367_v50 }
0x201e   :  { %3352 = vst.msk [vmem:[#allocation3 + $0x2] sm:$0x1] %vm2827_vm12, %v3350_v54 }
0x201f   :  { %v3370_v63 = vrot.slane %v3369_v60, 1 }
0x2021   :  { %v3371_v0 = vadd.f32 %v3370_v63, %v3369_v60 }
0x2023   :  { %3372 = vst.msk [vmem:[#allocation3 + $0x3] sm:$0x1] %vm2827_vm12, %v3371_v0 }
0x202a   :  { %v3374_v24 = vld [vmem:[#allocation3 + $0x2] sm:$0x3] }
0x202b   :  { %v3411_v25 = vsel %vm3410_vm13, %v3374_v24, %v3409_v8  ;;  %v3485_v58 = vrot.slane %v3374_v24, 7 }
0x202c   :  { %4013 = vmatmul.mubr.msk.f32.vlgmr.msra.gmra.mxu0 %vm2085_vm7, %v3411_v25 }
0x202d   :  { %v3486_v56 = vsel %vm3410_vm13, %v3485_v58, %v3373_v3  ;;  %4600 = vmatpush3.msra.mxu0 %v4864_v10  ;;  %4631 = vmatprep.mubr.msk.f32.mxu0 %vm4903_vm0, %v7131_v31 }
0x202e   :  { %4014 = vmatmul.mubr.msk.f32.vlgmr.msra.gmra.mxu1 %vm2085_vm7, %v3486_v56  ;;  %4601 = vmatprep.subr.mxu0 %v7131_v31 }
0x202f   :  { %4602 = vmatpush3.msra.mxu0 %v4865_v46  ;;  %4635 = vmatpush3.msra.mxu1 %v4864_v10 }
0x2030   :  { %4603 = vmatprep.subr.mxu0 %v7131_v31  ;;  %4636 = vmatprep.subr.mxu1 %v7131_v31 }
0x2031   :  { %4604 = vmatpush3.msra.mxu0 %v4866_v29  ;;  %4637 = vmatpush3.msra.mxu1 %v4865_v46 }
0x2032   :  { %4605 = vmatprep.subr.mxu0 %v7131_v31  ;;  %4638 = vmatprep.subr.mxu1 %v7131_v31 }
0x2033   :  { %4606 = vmatpush3.msra.mxu0 %v4867_v27  ;;  %4639 = vmatpush3.msra.mxu1 %v4866_v29 }
0x2034   :  { %4607 = vmatprep.subr.mxu0 %v7131_v31  ;;  %4640 = vmatprep.subr.mxu1 %v7131_v31 }
0x2035   :  { %4608 = vmatpush3.msra.mxu0 %v4868_v12  ;;  %4641 = vmatpush3.msra.mxu1 %v4867_v27 }
0x2036   :  { %4609 = vmatprep.subr.mxu0 %v7131_v31  ;;  %4642 = vmatprep.subr.mxu1 %v7131_v31 }
0x2037   :  { %4610 = vmatpush3.msra.mxu0 %v4869_v28  ;;  %4643 = vmatpush3.msra.mxu1 %v4868_v12 }
0x2038   :  { %4611 = vmatprep.subr.mxu0 %v7131_v31  ;;  %4644 = vmatprep.subr.mxu1 %v7131_v31 }
0x2039   :  { %4612 = vmatpush3.msra.mxu0 %v4870_v14  ;;  %4645 = vmatpush3.msra.mxu1 %v4869_v28 }
0x203a   :  { %4613 = vmatprep.subr.mxu0 %v7131_v31  ;;  %4646 = vmatprep.subr.mxu1 %v7131_v31 }
0x203b   :  { %4614 = vmatpush3.msra.mxu0 %v4871_v33  ;;  %4647 = vmatpush3.msra.mxu1 %v4870_v14 }
0x203c   :  { %4615 = vmatprep.subr.mxu0 %v7131_v31  ;;  %4648 = vmatprep.subr.mxu1 %v7131_v31 }
0x203d   :  { %4616 = vmatpush3.msra.mxu0 %v4872_v30  ;;  %4649 = vmatpush3.msra.mxu1 %v4871_v33  ;;  %v3775_v33 = vld [vmem:[%s7011_s20 + $0x38] sm:$0xff] }
0x203e   :  { %4617 = vmatprep.subr.mxu0 %v7131_v31  ;;  %4650 = vmatprep.subr.mxu1 %v7131_v31 }
0x203f   :  { %4618 = vmatpush3.msra.mxu0 %v4873_v32  ;;  %4651 = vmatpush3.msra.mxu1 %v4872_v30  ;;  %v3774_v30 = vld [vmem:[%s7011_s20 + $0x30] sm:$0xff] }
0x2040   :  { %4619 = vmatprep.subr.mxu0 %v7131_v31  ;;  %4652 = vmatprep.subr.mxu1 %v7131_v31 }
0x2041   :  { %4620 = vmatpush3.msra.mxu0 %v4874_v34  ;;  %4653 = vmatpush3.msra.mxu1 %v4873_v32  ;;  %v3783_v32 = vld [vmem:[%s7011_s20 + $0x78] sm:$0xff] }
0x2042   :  { %4621 = vmatprep.subr.mxu0 %v7131_v31  ;;  %4654 = vmatprep.subr.mxu1 %v7131_v31 }
0x2043   :  { %4622 = vmatpush3.msra.mxu0 %v4875_v62  ;;  %4655 = vmatpush3.msra.mxu1 %v4874_v34  ;;  %v3773_v34 = vld [vmem:[%s7011_s20 + $0x28] sm:$0xff] }
0x2044   :  { %4623 = vmatprep.subr.mxu0 %v7131_v31  ;;  %4656 = vmatprep.subr.mxu1 %v7131_v31 }
0x2045   :  { %4624 = vmatpush3.msra.mxu0 %v4876_v2  ;;  %4657 = vmatpush3.msra.mxu1 %v4875_v62  ;;  %v3782_v62 = vld [vmem:[%s7011_s20 + $0x70] sm:$0xff] }
0x2046   :  { %4625 = vmatprep.subr.mxu0 %v7131_v31  ;;  %4658 = vmatprep.subr.mxu1 %v7131_v31 }
0x2047   :  { %4626 = vmatpush3.msra.mxu0 %v4877_v37  ;;  %4659 = vmatpush3.msra.mxu1 %v4876_v2  ;;  %v3772_v2 = vld [vmem:[%s7011_s20 + $0x20] sm:$0xff] }
0x2048   :  { %4627 = vmatprep.subr.mxu0 %v7131_v31  ;;  %4660 = vmatprep.subr.mxu1 %v7131_v31 }
0x2049   :  { %4628 = vmatpush3.msra.mxu0 %v4878_v19  ;;  %4661 = vmatpush3.msra.mxu1 %v4877_v37  ;;  %v3781_v37 = vld [vmem:[%s7011_s20 + $0x68] sm:$0xff] }
0x204a   :  { %4629 = vmatprep.subr.mxu0 %v7131_v31  ;;  %4662 = vmatprep.subr.mxu1 %v7131_v31 }
0x204b   :  { %4630 = vmatpush3.msra.mxu0 %v4879_v35  ;;  %4663 = vmatpush3.msra.mxu1 %v4878_v19  ;;  %v3771_v19 = vld [vmem:[%s7011_s20 + $0x18] sm:$0xff] }
0x204c   :  { %4664 = vmatprep.subr.mxu1 %v7131_v31  ;;  %4666 = vmatprep.mubr.msk.f32.mxu1 %vm4903_vm0, %v7131_v31 }
0x204d   :  { %4665 = vmatpush3.msra.mxu1 %v4879_v35  ;;  %4669 = vmatprep.subr.mxu0 %v7131_v31  ;;  %v3780_v35 = vld [vmem:[%s7011_s20 + $0x60] sm:$0xff] }
0x204e   :  { %4688 = vmatprep.subr.mxu1 %v7131_v31 }
0x20ec   :  { %v3480_v43 = vpop.f32.mrf.mxu0 }
0x20ee   :  { %v3555_v47 = vpop.f32.mrf.mxu1  ;;  %v3482_v49 = vpop.f32.mrf.mxu0 }
0x20ef   :  { %v3556_v48 = vadd.f32 %v3555_v47, %v3480_v43  ;;  %v3779_v43 = vld [vmem:[%s7011_s20 + $0x58] sm:$0xff]  ;;  %v3768_v47 = vld [vmem:[%s7011_s20] sm:$0xff] }
0x20f0   :  { %v3557_v6 = vpop.f32.mrf.mxu1 }
0x20f1   :  { %v3572_v4 = vadd.f32 %v3565_v44, %v3556_v48  ;;  %v3558_v1 = vadd.f32 %v3557_v6, %v3482_v49  ;;  %v3778_v44 = vld [vmem:[%s7011_s20 + $0x50] sm:$0xff]  ;;  %v3777_v48 = vld [vmem:[%s7011_s20 + $0x48] sm:$0xff] }
0x20f3   :  { %v3574_v40 = vmul.f32 %v3572_v4, %v7253_v5  ;;  %v3573_v61 = vadd.f32 %v3569_v39, %v3558_v1 }
0x20f5   :  { %v3575_v59 = vmul.f32 %v3573_v61, %v7254_v7  ;;  %4632 = vmatmul.mubr.f32.vlgmr.msra.gmra.mxu0 %v3574_v40 }
0x20f6   :  { %4685 = vmatprep.mubr.msk.f32.mxu0 %vm4903_vm0, %v7131_v31  ;;  %4670 = vmatpush3.msra.mxu0 %v3783_v32 }
0x20f7   :  { %v3576_v55 = vmul.f32 %v3575_v59, %v3574_v40  ;;  %4671 = vmatprep.subr.mxu0 %v7131_v31 }
0x20f8   :  { %4672 = vmatpush3.msra.mxu0 %v3782_v62 }
0x20f9   :  { %4667 = vmatmul.mubr.f32.vlgmr.msra.gmra.mxu1 %v3576_v55  ;;  %4673 = vmatprep.subr.mxu0 %v7131_v31 }
0x20fa   :  { %4704 = vmatprep.mubr.msk.f32.mxu1 %vm4903_vm0, %v7131_v31  ;;  %4689 = vmatpush3.msra.mxu1 %v3775_v33 }
0x20fb   :  { %4690 = vmatprep.subr.mxu1 %v7131_v31  ;;  %4674 = vmatpush3.msra.mxu0 %v3781_v37 }
0x20fc   :  { %4691 = vmatpush3.msra.mxu1 %v3774_v30  ;;  %4675 = vmatprep.subr.mxu0 %v7131_v31 }
0x20fd   :  { %4692 = vmatprep.subr.mxu1 %v7131_v31  ;;  %4676 = vmatpush3.msra.mxu0 %v3780_v35 }
0x20fe   :  { %4693 = vmatpush3.msra.mxu1 %v3773_v34  ;;  %4677 = vmatprep.subr.mxu0 %v7131_v31 }
0x20ff   :  { %4694 = vmatprep.subr.mxu1 %v7131_v31  ;;  %4678 = vmatpush3.msra.mxu0 %v3779_v43 }
0x2100   :  { %4695 = vmatpush3.msra.mxu1 %v3772_v2  ;;  %4679 = vmatprep.subr.mxu0 %v7131_v31 }
0x2101   :  { %4696 = vmatprep.subr.mxu1 %v7131_v31  ;;  %4680 = vmatpush3.msra.mxu0 %v3778_v44 }
0x2102   :  { %4697 = vmatpush3.msra.mxu1 %v3771_v19  ;;  %4681 = vmatprep.subr.mxu0 %v7131_v31 }
0x2103   :  { %4698 = vmatprep.subr.mxu1 %v7131_v31  ;;  %4682 = vmatpush3.msra.mxu0 %v3777_v48 }
0x2104   :  { %4699 = vmatpush3.msra.mxu1 %v3770_v42  ;;  %4683 = vmatprep.subr.mxu0 %v7131_v31 }
0x2105   :  { %4700 = vmatprep.subr.mxu1 %v7131_v31  ;;  %4684 = vmatpush3.msra.mxu0 %v3776_v57 }
0x2106   :  { %4701 = vmatpush3.msra.mxu1 %v3769_v41 }
0x2107   :  { %4702 = vmatprep.subr.mxu1 %v7131_v31  ;;  %v4017_v31 = vld [vmem:[%s7012_s21] ss:$0 sm:$0xff]  ;;  %s4908_s21 = smov [#allocation4]  }
0x2108   :  { %4703 = vmatpush3.msra.mxu1 %v3768_v47  ;;  %s3964_s11 = sshll.u32 %s4908_s21, 4  ;;  %s3965_s11 = int_to_ptr.vmem [resolvable:$true] %s3964_s11 }
0x2109   :  { %s4880_s10 = scalar_lea.vmem %s3965_s11, 32  ;;  %p4885_p1 = scmp.lt.s32.totalorder %s3965_s11, %s3965_s11 }
0x210a   :  { %p4881_p0 = scmp.ne.s32.totalorder %s3965_s11, %s4880_s10  ;;  %p4886_p2 = scmp.lt.s32.totalorder %s4880_s10, %s4880_s10 }
0x210c   :  { %p4887_p3 = por %p4886_p2, %p4885_p1 }
0x210e   :  { %p4888_p4 = pnand %p4887_p3, %p4881_p0 }
0x21b5   :  { %v3643_v9 = vpop.f32.mrf.mxu0 }
0x21b6   :  { %v3717_v52 = vmax.f32 %v3643_v9, 0.0  ;;  %v3725_v45 = vsub.f32 0.0, %v3643_v9 }
0x21b7   :  { %v4633_v38 = vpop.f32.mrf.mxu0 }
0x21b8   :  { %4840 = vrsqrt.f32 %v3717_v52  ;;  %v3726_v16 = vmax.f32 %v3725_v45, 0.0  ;;  %vm3720_vm14 = vcmp.eq.f32.partialorder %v3717_v52, inf  ;;  %v3723_v50 = vand.u32 2147483648, %v3717_v52 }
0x21b9   :  { %v3713_v11 = vpop.f32.mrf.mxu1  ;;  %vm3722_vm15 = vcmp.eq.f32.partialorder %v3717_v52, 0.0 }
0x21ba   :  { %4842 = vrsqrt.f32 %v3726_v16  ;;  %v3743_v13 = vmax.f32 %v3713_v11, 0.0  ;;  %v3751_v15 = vsub.f32 0.0, %v3713_v11  ;;  %vm3729_vm0 = vcmp.eq.f32.partialorder %v3726_v16, inf }
0x21bb   :  { %v4668_v17 = vpop.f32.mrf.mxu1  ;;  %v3732_v51 = vand.u32 2147483648, %v3726_v16  ;;  %vm3731_vm1 = vcmp.eq.f32.partialorder %v3726_v16, 0.0 }
0x21bc   :  { %4844 = vrsqrt.f32 %v3743_v13  ;;  %v3752_v18 = vmax.f32 %v3751_v15, 0.0  ;;  %vm3746_vm3 = vcmp.eq.f32.partialorder %v3743_v13, inf  ;;  %v3749_v25 = vand.u32 2147483648, %v3743_v13 }
0x21bd   :  { %vm3748_vm6 = vcmp.eq.f32.partialorder %v3743_v13, 0.0 }
0x21be   :  { %4846 = vrsqrt.f32 %v3752_v18  ;;  %vm3755_vm5 = vcmp.eq.f32.partialorder %v3752_v18, inf  ;;  %v3758_v58 = vand.u32 2147483648, %v3752_v18  ;;  %vm3757_vm8 = vcmp.eq.f32.partialorder %v3752_v18, 0.0 }
0x21c5   :  { %v4841_v20 = vpop.eup %4840 }
0x21c6   :  { %v3719_v21 = vmul.f32 %v4841_v20, %v3717_v52 }
0x21c7   :  { %v4843_v26 = vpop.eup %4842 }
0x21c8   :  { %v3721_v22 = vsel %vm3720_vm14, %v3717_v52, %v3719_v21  ;;  %v3728_v23 = vmul.f32 %v4843_v26, %v3726_v16 }
0x21c9   :  { %v4845_v36 = vpop.eup %4844  ;;  %v3724_v63 = vsel %vm3722_vm15, %v3723_v50, %v3721_v22 }
0x21ca   :  { %v3730_v53 = vsel %vm3729_vm0, %v3726_v16, %v3728_v23  ;;  %v3745_v54 = vmul.f32 %v4845_v36, %v3743_v13 }
0x21cb   :  { %v4847_v60 = vpop.eup %4846  ;;  %v3733_v0 = vsel %vm3731_vm1, %v3732_v51, %v3730_v53 }
0x21cc   :  { %v6913_v3 = vsub.f32 %v3724_v63, %v3733_v0  ;;  %v3747_v8 = vsel %vm3746_vm3, %v3743_v13, %v3745_v54  ;;  %v3754_v24 = vmul.f32 %v4847_v60, %v3752_v18 }
0x21cd   :  { %v3750_v46 = vsel %vm3748_vm6, %v3749_v25, %v3747_v8 }
0x21ce   :  { %v3735_v56 = vmul.f32 %v6913_v3, %v6913_v3  ;;  %v3756_v10 = vsel %vm3755_vm5, %v3752_v18, %v3754_v24 }
0x21cf   :  { %v3759_v29 = vsel %vm3757_vm8, %v3758_v58, %v3756_v10 }
0x21d0   :  { %v3737_v27 = vsel %vm3736_vm4, %v3735_v56, 0.0  ;;  %v3760_v12 = vsub.f32 %v3750_v46, %v3759_v29 }
0x21d1   :  { %3738 = vadd.xlane.f32.xlu0 %v3737_v27 }
0x21d2   :  { %v3761_v28 = vmul.f32 %v3760_v12, %v3760_v12 }
0x21d4   :  { %v3762_v14 = vsel %vm3736_vm4, %v3761_v28, 0.0 }
0x21d5   :  { %3763 = vadd.xlane.f32.xlu1 %v3762_v14 }
0x225a   :  { %v3739_v39 = vpop.xlane.xlu0 %3738 }
0x225b   :  { %v3740_v49 = vmax.f32 %v3739_v39, 1e-24 }
0x225d   :  { %4848 = vrsqrt.f32 %v3740_v49 }
0x225e   :  { %v3764_v6 = vpop.xlane.xlu1 %3763 }
0x225f   :  { %v3765_v4 = vmax.f32 %v3764_v6, 1e-24 }
0x2261   :  { %4850 = vrsqrt.f32 %v3765_v4 }
0x226a   :  { %v4849_v1 = vpop.eup %4848 }
0x226b   :  { %v3742_v5 = vmul.f32 %v4849_v1, %v6913_v3 }
0x226d   :  { %4705 = vmatmul.mubr.msk.f32.vlgmr.msra.gmra.mxu1 %vm2085_vm7, %v3742_v5 }
0x226e   :  { %v4851_v40 = vpop.eup %4850 }
0x226f   :  { %v3767_v61 = vmul.f32 %v4851_v40, %v3760_v12 }
0x2271   :  { %4686 = vmatmul.mubr.msk.f32.vlgmr.msra.gmra.mxu0 %vm2085_vm7, %v3767_v61 }
0x232d   :  { %v3926_v7 = vpop.f32.mrf.mxu1 }
0x232f   :  { %v4706_v59 = vpop.f32.mrf.mxu1 }
0x2331   :  { %v3853_v55 = vpop.f32.mrf.mxu0 }
0x2332   :  { %v3927_v9 = vadd.f32 %v3926_v7, %v3853_v55 }
0x2333   :  { %v4687_v52 = vpop.f32.mrf.mxu0 }
0x2334   :  { %v3937_v45 = vadd.f32 %v4017_v31, %v3927_v9 }
0x2336   :  { %v4018_v38 = vmul.f32 -1.442695, %v3937_v45 }
0x2338   :  { %4852 = vpow2.f32 %v4018_v38 }
0x2345   :  { %v4853_v16 = vpop.eup %4852 }
0x2346   :  { %v3941_v11 = vadd.f32 1.0, %v4853_v16 }
0x2348   :  { %4854 = vrcp.f32 %v3941_v11 }
0x2355   :  { %v4855_v13 = vpop.eup %4854 }
0x2356   :  { %v3944_v15 = vsel %vm297_vm2, %v4855_v13, -inf }
0x2357   :  { %3945 = vmax.xlane.f32.xlu0 %v3944_v15 }
0x23e0   :  { %v3946_v17 = vpop.xlane.xlu0 %3945 }
0x23e1   :  { %v3947_v18 = vsub.f32 %v4855_v13, %v3946_v17 }
0x23e3   :  { %v3948_v20 = vmul.f32 1.442695, %v3947_v18 }
0x23e5   :  { %4856 = vpow2.f32 %v3948_v20 }
0x23f2   :  { %v4857_v21 = vpop.eup %4856 }
0x23f3   :  { %v3950_v26 = vsel %vm297_vm2, %v4857_v21, 0.0 }
0x23f4   :  { %3951 = vadd.xlane.f32.xlu0 %v3950_v26 }
0x247d   :  { %v3952_v22 = vpop.xlane.xlu0 %3951 }
0x247e   :  { %4858 = vlog2.f32 %v3952_v22 }
0x248b   :  { %v4859_v23 = vpop.eup %4858 }
0x248c   :  { %v3954_v36 = vmul.f32 0.6931472, %v4859_v23 }
0x248e   :  { %v3955_v50 = vadd.f32 %v3954_v36, %v3946_v17 }
0x2490   :  { %v3956_v51 = vsub.f32 %v4855_v13, %v3955_v50 }
0x2492   :  { %3957 = vst.msk [vmem:[#allocation4] sm:$0x3] %vm297_vm2, %v3956_v51 }
0x2493   :  { %4891 = shalt.err (!%p4888_p4)
}
0x2494   :  { %3967 = dma.vmem_to_hbm [thread:$0]  %s3965_s11, 32, %s7013_s22, [#allocation5]  }
0x2495   :  { %4900 = dma.done.wait [#allocation5], 32  }
0x2496   :  { %4901 = vsyncadd [#allocation5], 4294967264 }
0x2497   :  { %3971 = vsyncpa [#allocation5], 1 }

</bundles_post_ra>
